<compile_context>
chip_gen: v7x
topology: tpu7x:2x2x1
jax: 0.10.0
libtpu: 0.0.40
codegen_flags: <defaults>
</compile_context>

<pallas_src>
import jax
import jax.numpy as jnp
from jax.experimental import pallas as pl
from jax.experimental.pallas import tpu as pltpu

FILTER_SIZES = (2, 3, 4, 5)
NUM_FILTERS = 64            # real conv channels per filter size
TAP_WIDTH = 128             # each tap block padded to a full 128-lane vreg width
HIDDEN = 64
N_TAPS = sum(FILTER_SIZES)                 # 14
CONV_COLS = N_TAPS * TAP_WIDTH             # 1792 (lane-aligned tap blocks)
GATE_COLS = 4 * HIDDEN                     # 256  (gate order [i, f, o, g])
BIG_COLS = CONV_COLS + GATE_COLS           # 2048


def hybrid_kernel(x_ref, mask_ref, wbig_ref, whh_ref, wrev_ref,
                  fc1_ref, fc2_ref, out_ref):
    L, B, Ea = x_ref.shape          # time-major input, Ea = E + 1 (ones column)
    H = HIDDEN

    x = x_ref[...]                                               # (L, B, Ea) f32

    # ---- ONE fused projection: conv taps + forward W_ih, biases folded ------
    # bf16 operands (fewer MXU passes), f32 accumulation.
    big = jnp.dot(x.reshape(L * B, Ea).astype(jnp.bfloat16),
                  wbig_ref[...],                                 # already bf16
                  preferred_element_type=jnp.float32)            # (L*B, 2048)
    proj = big.reshape(L, B, BIG_COLS)

    # ---- CNN branch: time-shifted adds on 128-lane-aligned tap blocks -------
    # Every slice below starts on a 128-lane boundary and only slices the
    # leading (time) axis -> no mid-vreg lane selects / sublane gathers.
    feats = []
    col = 0
    for fs in FILTER_SIZES:
        Lout = L - fs + 1
        acc = proj[0:Lout, :, col:col + TAP_WIDTH]
        col += TAP_WIDTH
        for k in range(1, fs):
            acc = acc + proj[k:k + Lout, :, col:col + TAP_WIDTH]
            col += TAP_WIDTH
        acc = jnp.maximum(acc, 0.0)          # conv bias already folded in matmul
        feats.append(jnp.max(acc, axis=0))   # (B, 128); pad lanes [64:128) stay 0
    cnn_features = jnp.concatenate(feats, axis=1)                # (B, 512)

    # ---- forward LSTM recurrence (time-major, bias folded, gates [i,f,o,g]) -
    xw_f = proj[:, :, CONV_COLS:BIG_COLS]                        # (L, B, 4H)
    whh = whh_ref[...]                                           # (H, 4H) bf16
    mask = mask_ref[...]                                         # (L, B, 1) one-hot
    h = jnp.zeros((B, H), jnp.float32)
    c = jnp.zeros((B, H), jnp.float32)
    h_last = jnp.zeros((B, H), jnp.float32)
    for t in range(L):                       # L = 16: static unroll
        gates = xw_f[t] + jnp.dot(h.astype(jnp.bfloat16), whh,
                                  preferred_element_type=jnp.float32)
        sig = jax.nn.sigmoid(gates[:, 0:3 * H])       # one EUP launch: i, f, o
        i_g = sig[:, 0:H]
        f_g = sig[:, H:2 * H]
        o_g = sig[:, 2 * H:3 * H]
        g_g = jnp.tanh(gates[:, 3 * H:4 * H])
        c = f_g * c + i_g * g_g
        h = o_g * jnp.tanh(c)
        h_last = h_last + mask[t] * h        # off-chain capture of t = len - 1

    # ---- reverse direction: one cell step on x[:, len-1, :] from zero state -
    # (pack_padded_sequence: reverse pass starts at t = len-1, so
    #  weight_hh_l0_reverse multiplies a zero state and cannot affect output.)
    x_last = jnp.sum(mask * x, axis=0)                           # (B, Ea)
    gates_r = jnp.dot(x_last, wrev_ref[...],
                      preferred_element_type=jnp.float32)        # bias in last row
    sig_r = jax.nn.sigmoid(gates_r[:, 0:3 * H])
    i_r = sig_r[:, 0:H]
    o_r = sig_r[:, 2 * H:3 * H]
    g_r = jnp.tanh(gates_r[:, 3 * H:4 * H])
    h_bwd = o_r * jnp.tanh(i_r * g_r)                            # c0 = h0 = 0

    # ---- head: fc1 -> ReLU -> dropout(identity) -> fc2 ----------------------
    ones = jnp.ones((B, 1), jnp.float32)
    combined = jnp.concatenate([cnn_features, h_last, h_bwd, ones], axis=1)
    hid = jnp.maximum(
        jnp.dot(combined, fc1_ref[...], preferred_element_type=jnp.float32),
        0.0)
    hid = jnp.concatenate([hid, ones], axis=1)
    logits = jnp.dot(hid, fc2_ref[...], preferred_element_type=jnp.float32)
    out_ref[...] = logits.astype(out_ref.dtype)


def hybrid_cnn_bilstm(x, lengths, params):
    B, L, E = x.shape
    Ea = E + 1
    C = params["fc2_aug"].shape[-1]
    last = lengths - 1

    # time-major input with a trailing ones column (all bias rows fold into
    # the matmuls) and a one-hot mask of the last valid timestep.
    ones_col = jnp.ones((B, L, 1), jnp.float32)
    x_aug = jnp.transpose(jnp.concatenate([x, ones_col], axis=-1),
                          (1, 0, 2))                             # (L, B, E+1)
    mask = (jnp.arange(L, dtype=jnp.int32)[:, None]
            == last[None, :]).astype(jnp.float32)[:, :, None]    # (L, B, 1)

    inputs = [x_aug, mask, params["w_big"], params["whh_f"], params["wrev"],
              params["fc1_aug"], params["fc2_aug"]]
    vmem = pl.BlockSpec(memory_space=pltpu.MemorySpace.VMEM)

    fc1_rows = params["fc1_aug"].shape[0]
    flops = 2 * (L * B * Ea * BIG_COLS            # fused projection
                 + L * B * HIDDEN * GATE_COLS     # recurrence
                 + B * Ea * GATE_COLS             # reverse one-step
                 + B * fc1_rows * 128             # fc1
                 + B * 129 * C)                   # fc2
    transcendentals = (L + 1) * B * 5 * HIDDEN
    bytes_accessed = sum(int(a.size) * a.dtype.itemsize for a in inputs) \
        + B * C * 4

    # NOTE: gridless on purpose (footprint << VMEM on v5e/v6e/v7x). For large
    # B on v7x, add a 1-D grid over batch with dimension_semantics=("parallel",)
    # and amortize weight DMA across calls in a serving loop.
    return pl.pallas_call(
        hybrid_kernel,
        out_shape=jax.ShapeDtypeStruct((B, C), jnp.float32),
        in_specs=[vmem] * len(inputs),
        out_specs=vmem,
        cost_estimate=pl.CostEstimate(flops=int(flops),
                                      transcendentals=int(transcendentals),
                                      bytes_accessed=int(bytes_accessed)),
    )(*inputs)


def init_params(key, embedding_dim, num_classes):
    E, C = embedding_dim, num_classes
    H, NF, TW = HIDDEN, NUM_FILTERS, TAP_WIDTH
    ks = iter(jax.random.split(key, 32))

    def nrm(shape, scale=0.1):
        return (scale * jax.random.normal(next(ks), shape)).astype(jnp.float32)

    # --- fused projection weight w_big: (E+1, 2048), stored bf16 -------------
    # column layout (a real PyTorch import must follow this mapping):
    #   14 tap blocks of width 128: for fs in (2,3,4,5), tap k in range(fs):
    #     cols [0:64)   = conv_fs.weight[:, :, k].T               (E, 64)
    #     cols [64:128) = 0 (lane padding; stays 0 through ReLU/max)
    #     bias row (E)  = conv_fs.bias on tap 0 only, else 0
    #   final 256 cols  = weight_ih_l0.T, gate columns reordered [i, f, o, g]
    #     bias row (E)  = bias_ih_l0 + bias_hh_l0  (same reorder)
    blocks = []
    for fs in FILTER_SIZES:
        for k in range(fs):
            w = jnp.zeros((E + 1, TW), jnp.float32)
            w = w.at[:E, :NF].set(nrm((E, NF)))
            if k == 0:
                w = w.at[E, :NF].set(nrm((NF,)))
            blocks.append(w)
    wihf = jnp.zeros((E + 1, GATE_COLS), jnp.float32)
    wihf = wihf.at[:E].set(nrm((E, GATE_COLS)))
    wihf = wihf.at[E].set(nrm((GATE_COLS,)))
    blocks.append(wihf)
    w_big = jnp.concatenate(blocks, axis=1).astype(jnp.bfloat16)  # (E+1, 2048)

    # weight_hh_l0.T, gate cols [i, f, o, g], stored bf16 (recurrence operand)
    whh_f = nrm((H, GATE_COLS)).astype(jnp.bfloat16)

    # weight_ih_l0_reverse.T with summed reverse biases in the last row.
    # weight_hh_l0_reverse cannot affect the gathered output (zero state) -> omitted.
    wrev = jnp.zeros((E + 1, GATE_COLS), jnp.float32)
    wrev = wrev.at[:E].set(nrm((E, GATE_COLS)))
    wrev = wrev.at[E].set(nrm((GATE_COLS,)))

    # --- head: fc1 rows follow the kernel's `combined` layout ----------------
    #   rows [0:512)    4 CNN blocks of 128 (only the first 64 of each nonzero)
    #   rows [512:640)  LSTM features (forward 64 | reverse 64)
    #   row 640         fc1 bias
    fc1 = jnp.zeros((4 * TW + 2 * H + 1, 128), jnp.float32)
    for f in range(4):
        fc1 = fc1.at[f * TW:f * TW + NF].set(nrm((NF, 128)))
    fc1 = fc1.at[4 * TW:4 * TW + 2 * H].set(nrm((2 * H, 128)))
    fc1 = fc1.at[4 * TW + 2 * H].set(nrm((128,)))

    fc2 = jnp.zeros((129, C), jnp.float32)           # rows [0:128) weights, 128 bias
    fc2 = fc2.at[:128].set(nrm((128, C)))
    fc2 = fc2.at[128].set(nrm((C,)))

    return {"w_big": w_big, "whh_f": whh_f, "wrev": wrev,
            "fc1_aug": fc1, "fc2_aug": fc2}


if __name__ == "__main__":
    key = jax.random.PRNGKey(0)
    B, L, E, C = 2, 16, 32, 4        # batch, max_length, embedding_dim, classes
    k_x, k_p = jax.random.split(key)
    x = jax.random.normal(k_x, (B, L, E), jnp.float32)
    lengths = jnp.array([16, 11], dtype=jnp.int32)
    params = init_params(k_p, E, C)

    out = hybrid_cnn_bilstm(x, lengths, params)
    jax.block_until_ready(out)
    assert out.shape == (B, C) and out.dtype == jnp.float32
    print("KERNEL_OK")
</pallas_src>

<mosaic_0001>
module attributes {stable_mosaic.version = 11 : i64} {
  func.func @hybrid_kernel(%arg0: memref<16x2x33xf32, #tpu.memory_space<vmem>>, %arg1: memref<16x2x1xf32, #tpu.memory_space<vmem>>, %arg2: memref<33x2048xbf16, #tpu.memory_space<vmem>>, %arg3: memref<64x256xbf16, #tpu.memory_space<vmem>>, %arg4: memref<33x256xf32, #tpu.memory_space<vmem>>, %arg5: memref<641x128xf32, #tpu.memory_space<vmem>>, %arg6: memref<129x4xf32, #tpu.memory_space<vmem>>, %arg7: memref<2x4xf32, #tpu.memory_space<vmem>>) attributes {dimension_semantics = [], scalar_prefetch = 0 : i64, scratch_operands = 0 : i64, tpu.core_type = #tpu.core_type<tc>} {
    %c0 = arith.constant 0 : index
    %c0_0 = arith.constant 0 : index
    %c0_1 = arith.constant 0 : index
    %0 = vector.load %arg0[%c0, %c0_0, %c0_1] : memref<16x2x33xf32, #tpu.memory_space<vmem>>, vector<16x2x33xf32>
    %1 = vector.shape_cast %0 : vector<16x2x33xf32> to vector<32x33xf32>
    %2 = arith.truncf %1 : vector<32x33xf32> to vector<32x33xbf16>
    %c0_2 = arith.constant 0 : index
    %c0_3 = arith.constant 0 : index
    %3 = vector.load %arg2[%c0_2, %c0_3] : memref<33x2048xbf16, #tpu.memory_space<vmem>>, vector<33x2048xbf16>
    %cst = arith.constant dense<0.000000e+00> : vector<32x2048xf32>
    %4 = tpu.matmul %2, %3, %cst {dimension_numbers = #tpu.dot_dimension_numbers<[1], [0], [0], [1], [0, 0, 1, 1], [], []>} : vector<32x33xbf16>, vector<33x2048xbf16>, vector<32x2048xf32> -> vector<32x2048xf32>
    %5 = vector.shape_cast %4 : vector<32x2048xf32> to vector<16x2x2048xf32>
    %6 = vector.extract_strided_slice %5 {offsets = [0, 0, 0], sizes = [15, 2, 128], strides = [1, 1, 1]} : vector<16x2x2048xf32> to vector<15x2x128xf32>
    %7 = vector.extract_strided_slice %5 {offsets = [1, 0, 128], sizes = [15, 2, 128], strides = [1, 1, 1]} : vector<16x2x2048xf32> to vector<15x2x128xf32>
    %8 = arith.addf %6, %7 : vector<15x2x128xf32>
    %cst_4 = arith.constant 0.000000e+00 : f32
    %9 = vector.broadcast %cst_4 : f32 to vector<15x2x128xf32>
    %10 = arith.maximumf %8, %9 : vector<15x2x128xf32>
    %cst_5 = arith.constant dense<0xFF800000> : vector<2x128xf32>
    %11 = vector.multi_reduction <maximumf>, %10, %cst_5 [0] : vector<15x2x128xf32> to vector<2x128xf32>
    %12 = vector.extract_strided_slice %5 {offsets = [0, 0, 256], sizes = [14, 2, 128], strides = [1, 1, 1]} : vector<16x2x2048xf32> to vector<14x2x128xf32>
    %13 = vector.extract_strided_slice %5 {offsets = [1, 0, 384], sizes = [14, 2, 128], strides = [1, 1, 1]} : vector<16x2x2048xf32> to vector<14x2x128xf32>
    %14 = arith.addf %12, %13 : vector<14x2x128xf32>
    %15 = vector.extract_strided_slice %5 {offsets = [2, 0, 512], sizes = [14, 2, 128], strides = [1, 1, 1]} : vector<16x2x2048xf32> to vector<14x2x128xf32>
    %16 = arith.addf %14, %15 : vector<14x2x128xf32>
    %cst_6 = arith.constant 0.000000e+00 : f32
    %17 = vector.broadcast %cst_6 : f32 to vector<14x2x128xf32>
    %18 = arith.maximumf %16, %17 : vector<14x2x128xf32>
    %cst_7 = arith.constant dense<0xFF800000> : vector<2x128xf32>
    %19 = vector.multi_reduction <maximumf>, %18, %cst_7 [0] : vector<14x2x128xf32> to vector<2x128xf32>
    %20 = vector.extract_strided_slice %5 {offsets = [0, 0, 640], sizes = [13, 2, 128], strides = [1, 1, 1]} : vector<16x2x2048xf32> to vector<13x2x128xf32>
    %21 = vector.extract_strided_slice %5 {offsets = [1, 0, 768], sizes = [13, 2, 128], strides = [1, 1, 1]} : vector<16x2x2048xf32> to vector<13x2x128xf32>
    %22 = arith.addf %20, %21 : vector<13x2x128xf32>
    %23 = vector.extract_strided_slice %5 {offsets = [2, 0, 896], sizes = [13, 2, 128], strides = [1, 1, 1]} : vector<16x2x2048xf32> to vector<13x2x128xf32>
    %24 = arith.addf %22, %23 : vector<13x2x128xf32>
    %25 = vector.extract_strided_slice %5 {offsets = [3, 0, 1024], sizes = [13, 2, 128], strides = [1, 1, 1]} : vector<16x2x2048xf32> to vector<13x2x128xf32>
    %26 = arith.addf %24, %25 : vector<13x2x128xf32>
    %cst_8 = arith.constant 0.000000e+00 : f32
    %27 = vector.broadcast %cst_8 : f32 to vector<13x2x128xf32>
    %28 = arith.maximumf %26, %27 : vector<13x2x128xf32>
    %cst_9 = arith.constant dense<0xFF800000> : vector<2x128xf32>
    %29 = vector.multi_reduction <maximumf>, %28, %cst_9 [0] : vector<13x2x128xf32> to vector<2x128xf32>
    %30 = vector.extract_strided_slice %5 {offsets = [0, 0, 1152], sizes = [12, 2, 128], strides = [1, 1, 1]} : vector<16x2x2048xf32> to vector<12x2x128xf32>
    %31 = vector.extract_strided_slice %5 {offsets = [1, 0, 1280], sizes = [12, 2, 128], strides = [1, 1, 1]} : vector<16x2x2048xf32> to vector<12x2x128xf32>
    %32 = arith.addf %30, %31 : vector<12x2x128xf32>
    %33 = vector.extract_strided_slice %5 {offsets = [2, 0, 1408], sizes = [12, 2, 128], strides = [1, 1, 1]} : vector<16x2x2048xf32> to vector<12x2x128xf32>
    %34 = arith.addf %32, %33 : vector<12x2x128xf32>
    %35 = vector.extract_strided_slice %5 {offsets = [3, 0, 1536], sizes = [12, 2, 128], strides = [1, 1, 1]} : vector<16x2x2048xf32> to vector<12x2x128xf32>
    %36 = arith.addf %34, %35 : vector<12x2x128xf32>
    %37 = vector.extract_strided_slice %5 {offsets = [4, 0, 1664], sizes = [12, 2, 128], strides = [1, 1, 1]} : vector<16x2x2048xf32> to vector<12x2x128xf32>
    %38 = arith.addf %36, %37 : vector<12x2x128xf32>
    %cst_10 = arith.constant 0.000000e+00 : f32
    %39 = vector.broadcast %cst_10 : f32 to vector<12x2x128xf32>
    %40 = arith.maximumf %38, %39 : vector<12x2x128xf32>
    %cst_11 = arith.constant dense<0xFF800000> : vector<2x128xf32>
    %41 = vector.multi_reduction <maximumf>, %40, %cst_11 [0] : vector<12x2x128xf32> to vector<2x128xf32>
    %42 = tpu.concatenate %11, %19, %29, %41 in 1 : vector<2x128xf32>, vector<2x128xf32>, vector<2x128xf32>, vector<2x128xf32> -> vector<2x512xf32>
    %43 = vector.extract_strided_slice %5 {offsets = [0, 0, 1792], sizes = [16, 2, 256], strides = [1, 1, 1]} : vector<16x2x2048xf32> to vector<16x2x256xf32>
    %c0_12 = arith.constant 0 : index
    %c0_13 = arith.constant 0 : index
    %44 = vector.load %arg3[%c0_12, %c0_13] : memref<64x256xbf16, #tpu.memory_space<vmem>>, vector<64x256xbf16>
    %c0_14 = arith.constant 0 : index
    %c0_15 = arith.constant 0 : index
    %c0_16 = arith.constant 0 : index
    %45 = vector.load %arg1[%c0_14, %c0_15, %c0_16] : memref<16x2x1xf32, #tpu.memory_space<vmem>>, vector<16x2x1xf32>
    %cst_17 = arith.constant 0.000000e+00 : f32
    %46 = vector.broadcast %cst_17 : f32 to vector<2x64xf32>
    %cst_18 = arith.constant 0.000000e+00 : f32
    %47 = vector.broadcast %cst_18 : f32 to vector<2x64xf32>
    %cst_19 = arith.constant 0.000000e+00 : f32
    %48 = vector.broadcast %cst_19 : f32 to vector<2x64xf32>
    %49 = vector.extract_strided_slice %43 {offsets = [0, 0, 0], sizes = [1, 2, 256], strides = [1, 1, 1]} : vector<16x2x256xf32> to vector<1x2x256xf32>
    %50 = vector.shape_cast %49 : vector<1x2x256xf32> to vector<2x256xf32>
    %51 = arith.truncf %46 : vector<2x64xf32> to vector<2x64xbf16>
    %cst_20 = arith.constant dense<0.000000e+00> : vector<2x256xf32>
    %52 = tpu.matmul %51, %44, %cst_20 {dimension_numbers = #tpu.dot_dimension_numbers<[1], [0], [0], [1], [0, 0, 1, 1], [], []>} : vector<2x64xbf16>, vector<64x256xbf16>, vector<2x256xf32> -> vector<2x256xf32>
    %53 = arith.addf %50, %52 : vector<2x256xf32>
    %54 = vector.extract_strided_slice %53 {offsets = [0, 0], sizes = [2, 192], strides = [1, 1]} : vector<2x256xf32> to vector<2x192xf32>
    %55 = arith.negf %54 : vector<2x192xf32>
    %56 = math.exp %55 : vector<2x192xf32>
    %cst_21 = arith.constant 1.000000e+00 : f32
    %57 = vector.broadcast %cst_21 : f32 to vector<2x192xf32>
    %58 = arith.addf %57, %56 : vector<2x192xf32>
    %59 = arith.divf %57, %58 : vector<2x192xf32>
    %60 = vector.extract_strided_slice %59 {offsets = [0, 0], sizes = [2, 64], strides = [1, 1]} : vector<2x192xf32> to vector<2x64xf32>
    %61 = vector.extract_strided_slice %59 {offsets = [0, 64], sizes = [2, 64], strides = [1, 1]} : vector<2x192xf32> to vector<2x64xf32>
    %62 = vector.extract_strided_slice %59 {offsets = [0, 128], sizes = [2, 64], strides = [1, 1]} : vector<2x192xf32> to vector<2x64xf32>
    %63 = vector.extract_strided_slice %53 {offsets = [0, 192], sizes = [2, 64], strides = [1, 1]} : vector<2x256xf32> to vector<2x64xf32>
    %64 = math.tanh %63 : vector<2x64xf32>
    %65 = arith.mulf %61, %47 : vector<2x64xf32>
    %66 = arith.mulf %60, %64 : vector<2x64xf32>
    %67 = arith.addf %65, %66 : vector<2x64xf32>
    %68 = math.tanh %67 : vector<2x64xf32>
    %69 = arith.mulf %62, %68 : vector<2x64xf32>
    %70 = vector.extract_strided_slice %45 {offsets = [0, 0, 0], sizes = [1, 2, 1], strides = [1, 1, 1]} : vector<16x2x1xf32> to vector<1x2x1xf32>
    %71 = vector.shape_cast %70 : vector<1x2x1xf32> to vector<2x1xf32>
    %72 = vector.broadcast %71 : vector<2x1xf32> to vector<2x64xf32>
    %73 = arith.mulf %72, %69 : vector<2x64xf32>
    %74 = arith.addf %48, %73 : vector<2x64xf32>
    %75 = vector.extract_strided_slice %43 {offsets = [1, 0, 0], sizes = [1, 2, 256], strides = [1, 1, 1]} : vector<16x2x256xf32> to vector<1x2x256xf32>
    %76 = vector.shape_cast %75 : vector<1x2x256xf32> to vector<2x256xf32>
    %77 = arith.truncf %69 : vector<2x64xf32> to vector<2x64xbf16>
    %cst_22 = arith.constant dense<0.000000e+00> : vector<2x256xf32>
    %78 = tpu.matmul %77, %44, %cst_22 {dimension_numbers = #tpu.dot_dimension_numbers<[1], [0], [0], [1], [0, 0, 1, 1], [], []>} : vector<2x64xbf16>, vector<64x256xbf16>, vector<2x256xf32> -> vector<2x256xf32>
    %79 = arith.addf %76, %78 : vector<2x256xf32>
    %80 = vector.extract_strided_slice %79 {offsets = [0, 0], sizes = [2, 192], strides = [1, 1]} : vector<2x256xf32> to vector<2x192xf32>
    %81 = arith.negf %80 : vector<2x192xf32>
    %82 = math.exp %81 : vector<2x192xf32>
    %cst_23 = arith.constant 1.000000e+00 : f32
    %83 = vector.broadcast %cst_23 : f32 to vector<2x192xf32>
    %84 = arith.addf %83, %82 : vector<2x192xf32>
    %85 = arith.divf %83, %84 : vector<2x192xf32>
    %86 = vector.extract_strided_slice %85 {offsets = [0, 0], sizes = [2, 64], strides = [1, 1]} : vector<2x192xf32> to vector<2x64xf32>
    %87 = vector.extract_strided_slice %85 {offsets = [0, 64], sizes = [2, 64], strides = [1, 1]} : vector<2x192xf32> to vector<2x64xf32>
    %88 = vector.extract_strided_slice %85 {offsets = [0, 128], sizes = [2, 64], strides = [1, 1]} : vector<2x192xf32> to vector<2x64xf32>
    %89 = vector.extract_strided_slice %79 {offsets = [0, 192], sizes = [2, 64], strides = [1, 1]} : vector<2x256xf32> to vector<2x64xf32>
    %90 = math.tanh %89 : vector<2x64xf32>
    %91 = arith.mulf %87, %67 : vector<2x64xf32>
    %92 = arith.mulf %86, %90 : vector<2x64xf32>
    %93 = arith.addf %91, %92 : vector<2x64xf32>
    %94 = math.tanh %93 : vector<2x64xf32>
    %95 = arith.mulf %88, %94 : vector<2x64xf32>
    %96 = vector.extract_strided_slice %45 {offsets = [1, 0, 0], sizes = [1, 2, 1], strides = [1, 1, 1]} : vector<16x2x1xf32> to vector<1x2x1xf32>
    %97 = vector.shape_cast %96 : vector<1x2x1xf32> to vector<2x1xf32>
    %98 = vector.broadcast %97 : vector<2x1xf32> to vector<2x64xf32>
    %99 = arith.mulf %98, %95 : vector<2x64xf32>
    %100 = arith.addf %74, %99 : vector<2x64xf32>
    %101 = vector.extract_strided_slice %43 {offsets = [2, 0, 0], sizes = [1, 2, 256], strides = [1, 1, 1]} : vector<16x2x256xf32> to vector<1x2x256xf32>
    %102 = vector.shape_cast %101 : vector<1x2x256xf32> to vector<2x256xf32>
    %103 = arith.truncf %95 : vector<2x64xf32> to vector<2x64xbf16>
    %cst_24 = arith.constant dense<0.000000e+00> : vector<2x256xf32>
    %104 = tpu.matmul %103, %44, %cst_24 {dimension_numbers = #tpu.dot_dimension_numbers<[1], [0], [0], [1], [0, 0, 1, 1], [], []>} : vector<2x64xbf16>, vector<64x256xbf16>, vector<2x256xf32> -> vector<2x256xf32>
    %105 = arith.addf %102, %104 : vector<2x256xf32>
    %106 = vector.extract_strided_slice %105 {offsets = [0, 0], sizes = [2, 192], strides = [1, 1]} : vector<2x256xf32> to vector<2x192xf32>
    %107 = arith.negf %106 : vector<2x192xf32>
    %108 = math.exp %107 : vector<2x192xf32>
    %cst_25 = arith.constant 1.000000e+00 : f32
    %109 = vector.broadcast %cst_25 : f32 to vector<2x192xf32>
    %110 = arith.addf %109, %108 : vector<2x192xf32>
    %111 = arith.divf %109, %110 : vector<2x192xf32>
    %112 = vector.extract_strided_slice %111 {offsets = [0, 0], sizes = [2, 64], strides = [1, 1]} : vector<2x192xf32> to vector<2x64xf32>
    %113 = vector.extract_strided_slice %111 {offsets = [0, 64], sizes = [2, 64], strides = [1, 1]} : vector<2x192xf32> to vector<2x64xf32>
    %114 = vector.extract_strided_slice %111 {offsets = [0, 128], sizes = [2, 64], strides = [1, 1]} : vector<2x192xf32> to vector<2x64xf32>
    %115 = vector.extract_strided_slice %105 {offsets = [0, 192], sizes = [2, 64], strides = [1, 1]} : vector<2x256xf32> to vector<2x64xf32>
    %116 = math.tanh %115 : vector<2x64xf32>
    %117 = arith.mulf %113, %93 : vector<2x64xf32>
    %118 = arith.mulf %112, %116 : vector<2x64xf32>
    %119 = arith.addf %117, %118 : vector<2x64xf32>
    %120 = math.tanh %119 : vector<2x64xf32>
    %121 = arith.mulf %114, %120 : vector<2x64xf32>
    %122 = vector.extract_strided_slice %45 {offsets = [2, 0, 0], sizes = [1, 2, 1], strides = [1, 1, 1]} : vector<16x2x1xf32> to vector<1x2x1xf32>
    %123 = vector.shape_cast %122 : vector<1x2x1xf32> to vector<2x1xf32>
    %124 = vector.broadcast %123 : vector<2x1xf32> to vector<2x64xf32>
    %125 = arith.mulf %124, %121 : vector<2x64xf32>
    %126 = arith.addf %100, %125 : vector<2x64xf32>
    %127 = vector.extract_strided_slice %43 {offsets = [3, 0, 0], sizes = [1, 2, 256], strides = [1, 1, 1]} : vector<16x2x256xf32> to vector<1x2x256xf32>
    %128 = vector.shape_cast %127 : vector<1x2x256xf32> to vector<2x256xf32>
    %129 = arith.truncf %121 : vector<2x64xf32> to vector<2x64xbf16>
    %cst_26 = arith.constant dense<0.000000e+00> : vector<2x256xf32>
    %130 = tpu.matmul %129, %44, %cst_26 {dimension_numbers = #tpu.dot_dimension_numbers<[1], [0], [0], [1], [0, 0, 1, 1], [], []>} : vector<2x64xbf16>, vector<64x256xbf16>, vector<2x256xf32> -> vector<2x256xf32>
    %131 = arith.addf %128, %130 : vector<2x256xf32>
    %132 = vector.extract_strided_slice %131 {offsets = [0, 0], sizes = [2, 192], strides = [1, 1]} : vector<2x256xf32> to vector<2x192xf32>
    %133 = arith.negf %132 : vector<2x192xf32>
    %134 = math.exp %133 : vector<2x192xf32>
    %cst_27 = arith.constant 1.000000e+00 : f32
    %135 = vector.broadcast %cst_27 : f32 to vector<2x192xf32>
    %136 = arith.addf %135, %134 : vector<2x192xf32>
    %137 = arith.divf %135, %136 : vector<2x192xf32>
    %138 = vector.extract_strided_slice %137 {offsets = [0, 0], sizes = [2, 64], strides = [1, 1]} : vector<2x192xf32> to vector<2x64xf32>
    %139 = vector.extract_strided_slice %137 {offsets = [0, 64], sizes = [2, 64], strides = [1, 1]} : vector<2x192xf32> to vector<2x64xf32>
    %140 = vector.extract_strided_slice %137 {offsets = [0, 128], sizes = [2, 64], strides = [1, 1]} : vector<2x192xf32> to vector<2x64xf32>
    %141 = vector.extract_strided_slice %131 {offsets = [0, 192], sizes = [2, 64], strides = [1, 1]} : vector<2x256xf32> to vector<2x64xf32>
    %142 = math.tanh %141 : vector<2x64xf32>
    %143 = arith.mulf %139, %119 : vector<2x64xf32>
    %144 = arith.mulf %138, %142 : vector<2x64xf32>
    %145 = arith.addf %143, %144 : vector<2x64xf32>
    %146 = math.tanh %145 : vector<2x64xf32>
    %147 = arith.mulf %140, %146 : vector<2x64xf32>
    %148 = vector.extract_strided_slice %45 {offsets = [3, 0, 0], sizes = [1, 2, 1], strides = [1, 1, 1]} : vector<16x2x1xf32> to vector<1x2x1xf32>
    %149 = vector.shape_cast %148 : vector<1x2x1xf32> to vector<2x1xf32>
    %150 = vector.broadcast %149 : vector<2x1xf32> to vector<2x64xf32>
    %151 = arith.mulf %150, %147 : vector<2x64xf32>
    %152 = arith.addf %126, %151 : vector<2x64xf32>
    %153 = vector.extract_strided_slice %43 {offsets = [4, 0, 0], sizes = [1, 2, 256], strides = [1, 1, 1]} : vector<16x2x256xf32> to vector<1x2x256xf32>
    %154 = vector.shape_cast %153 : vector<1x2x256xf32> to vector<2x256xf32>
    %155 = arith.truncf %147 : vector<2x64xf32> to vector<2x64xbf16>
    %cst_28 = arith.constant dense<0.000000e+00> : vector<2x256xf32>
    %156 = tpu.matmul %155, %44, %cst_28 {dimension_numbers = #tpu.dot_dimension_numbers<[1], [0], [0], [1], [0, 0, 1, 1], [], []>} : vector<2x64xbf16>, vector<64x256xbf16>, vector<2x256xf32> -> vector<2x256xf32>
    %157 = arith.addf %154, %156 : vector<2x256xf32>
    %158 = vector.extract_strided_slice %157 {offsets = [0, 0], sizes = [2, 192], strides = [1, 1]} : vector<2x256xf32> to vector<2x192xf32>
    %159 = arith.negf %158 : vector<2x192xf32>
    %160 = math.exp %159 : vector<2x192xf32>
    %cst_29 = arith.constant 1.000000e+00 : f32
    %161 = vector.broadcast %cst_29 : f32 to vector<2x192xf32>
    %162 = arith.addf %161, %160 : vector<2x192xf32>
    %163 = arith.divf %161, %162 : vector<2x192xf32>
    %164 = vector.extract_strided_slice %163 {offsets = [0, 0], sizes = [2, 64], strides = [1, 1]} : vector<2x192xf32> to vector<2x64xf32>
    %165 = vector.extract_strided_slice %163 {offsets = [0, 64], sizes = [2, 64], strides = [1, 1]} : vector<2x192xf32> to vector<2x64xf32>
    %166 = vector.extract_strided_slice %163 {offsets = [0, 128], sizes = [2, 64], strides = [1, 1]} : vector<2x192xf32> to vector<2x64xf32>
    %167 = vector.extract_strided_slice %157 {offsets = [0, 192], sizes = [2, 64], strides = [1, 1]} : vector<2x256xf32> to vector<2x64xf32>
    %168 = math.tanh %167 : vector<2x64xf32>
    %169 = arith.mulf %165, %145 : vector<2x64xf32>
    %170 = arith.mulf %164, %168 : vector<2x64xf32>
    %171 = arith.addf %169, %170 : vector<2x64xf32>
    %172 = math.tanh %171 : vector<2x64xf32>
    %173 = arith.mulf %166, %172 : vector<2x64xf32>
    %174 = vector.extract_strided_slice %45 {offsets = [4, 0, 0], sizes = [1, 2, 1], strides = [1, 1, 1]} : vector<16x2x1xf32> to vector<1x2x1xf32>
    %175 = vector.shape_cast %174 : vector<1x2x1xf32> to vector<2x1xf32>
    %176 = vector.broadcast %175 : vector<2x1xf32> to vector<2x64xf32>
    %177 = arith.mulf %176, %173 : vector<2x64xf32>
    %178 = arith.addf %152, %177 : vector<2x64xf32>
    %179 = vector.extract_strided_slice %43 {offsets = [5, 0, 0], sizes = [1, 2, 256], strides = [1, 1, 1]} : vector<16x2x256xf32> to vector<1x2x256xf32>
    %180 = vector.shape_cast %179 : vector<1x2x256xf32> to vector<2x256xf32>
    %181 = arith.truncf %173 : vector<2x64xf32> to vector<2x64xbf16>
    %cst_30 = arith.constant dense<0.000000e+00> : vector<2x256xf32>
    %182 = tpu.matmul %181, %44, %cst_30 {dimension_numbers = #tpu.dot_dimension_numbers<[1], [0], [0], [1], [0, 0, 1, 1], [], []>} : vector<2x64xbf16>, vector<64x256xbf16>, vector<2x256xf32> -> vector<2x256xf32>
    %183 = arith.addf %180, %182 : vector<2x256xf32>
    %184 = vector.extract_strided_slice %183 {offsets = [0, 0], sizes = [2, 192], strides = [1, 1]} : vector<2x256xf32> to vector<2x192xf32>
    %185 = arith.negf %184 : vector<2x192xf32>
    %186 = math.exp %185 : vector<2x192xf32>
    %cst_31 = arith.constant 1.000000e+00 : f32
    %187 = vector.broadcast %cst_31 : f32 to vector<2x192xf32>
    %188 = arith.addf %187, %186 : vector<2x192xf32>
    %189 = arith.divf %187, %188 : vector<2x192xf32>
    %190 = vector.extract_strided_slice %189 {offsets = [0, 0], sizes = [2, 64], strides = [1, 1]} : vector<2x192xf32> to vector<2x64xf32>
    %191 = vector.extract_strided_slice %189 {offsets = [0, 64], sizes = [2, 64], strides = [1, 1]} : vector<2x192xf32> to vector<2x64xf32>
    %192 = vector.extract_strided_slice %189 {offsets = [0, 128], sizes = [2, 64], strides = [1, 1]} : vector<2x192xf32> to vector<2x64xf32>
    %193 = vector.extract_strided_slice %183 {offsets = [0, 192], sizes = [2, 64], strides = [1, 1]} : vector<2x256xf32> to vector<2x64xf32>
    %194 = math.tanh %193 : vector<2x64xf32>
    %195 = arith.mulf %191, %171 : vector<2x64xf32>
    %196 = arith.mulf %190, %194 : vector<2x64xf32>
    %197 = arith.addf %195, %196 : vector<2x64xf32>
    %198 = math.tanh %197 : vector<2x64xf32>
    %199 = arith.mulf %192, %198 : vector<2x64xf32>
    %200 = vector.extract_strided_slice %45 {offsets = [5, 0, 0], sizes = [1, 2, 1], strides = [1, 1, 1]} : vector<16x2x1xf32> to vector<1x2x1xf32>
    %201 = vector.shape_cast %200 : vector<1x2x1xf32> to vector<2x1xf32>
    %202 = vector.broadcast %201 : vector<2x1xf32> to vector<2x64xf32>
    %203 = arith.mulf %202, %199 : vector<2x64xf32>
    %204 = arith.addf %178, %203 : vector<2x64xf32>
    %205 = vector.extract_strided_slice %43 {offsets = [6, 0, 0], sizes = [1, 2, 256], strides = [1, 1, 1]} : vector<16x2x256xf32> to vector<1x2x256xf32>
    %206 = vector.shape_cast %205 : vector<1x2x256xf32> to vector<2x256xf32>
    %207 = arith.truncf %199 : vector<2x64xf32> to vector<2x64xbf16>
    %cst_32 = arith.constant dense<0.000000e+00> : vector<2x256xf32>
    %208 = tpu.matmul %207, %44, %cst_32 {dimension_numbers = #tpu.dot_dimension_numbers<[1], [0], [0], [1], [0, 0, 1, 1], [], []>} : vector<2x64xbf16>, vector<64x256xbf16>, vector<2x256xf32> -> vector<2x256xf32>
    %209 = arith.addf %206, %208 : vector<2x256xf32>
    %210 = vector.extract_strided_slice %209 {offsets = [0, 0], sizes = [2, 192], strides = [1, 1]} : vector<2x256xf32> to vector<2x192xf32>
    %211 = arith.negf %210 : vector<2x192xf32>
    %212 = math.exp %211 : vector<2x192xf32>
    %cst_33 = arith.constant 1.000000e+00 : f32
    %213 = vector.broadcast %cst_33 : f32 to vector<2x192xf32>
    %214 = arith.addf %213, %212 : vector<2x192xf32>
    %215 = arith.divf %213, %214 : vector<2x192xf32>
    %216 = vector.extract_strided_slice %215 {offsets = [0, 0], sizes = [2, 64], strides = [1, 1]} : vector<2x192xf32> to vector<2x64xf32>
    %217 = vector.extract_strided_slice %215 {offsets = [0, 64], sizes = [2, 64], strides = [1, 1]} : vector<2x192xf32> to vector<2x64xf32>
    %218 = vector.extract_strided_slice %215 {offsets = [0, 128], sizes = [2, 64], strides = [1, 1]} : vector<2x192xf32> to vector<2x64xf32>
    %219 = vector.extract_strided_slice %209 {offsets = [0, 192], sizes = [2, 64], strides = [1, 1]} : vector<2x256xf32> to vector<2x64xf32>
    %220 = math.tanh %219 : vector<2x64xf32>
    %221 = arith.mulf %217, %197 : vector<2x64xf32>
    %222 = arith.mulf %216, %220 : vector<2x64xf32>
    %223 = arith.addf %221, %222 : vector<2x64xf32>
    %224 = math.tanh %223 : vector<2x64xf32>
    %225 = arith.mulf %218, %224 : vector<2x64xf32>
    %226 = vector.extract_strided_slice %45 {offsets = [6, 0, 0], sizes = [1, 2, 1], strides = [1, 1, 1]} : vector<16x2x1xf32> to vector<1x2x1xf32>
    %227 = vector.shape_cast %226 : vector<1x2x1xf32> to vector<2x1xf32>
    %228 = vector.broadcast %227 : vector<2x1xf32> to vector<2x64xf32>
    %229 = arith.mulf %228, %225 : vector<2x64xf32>
    %230 = arith.addf %204, %229 : vector<2x64xf32>
    %231 = vector.extract_strided_slice %43 {offsets = [7, 0, 0], sizes = [1, 2, 256], strides = [1, 1, 1]} : vector<16x2x256xf32> to vector<1x2x256xf32>
    %232 = vector.shape_cast %231 : vector<1x2x256xf32> to vector<2x256xf32>
    %233 = arith.truncf %225 : vector<2x64xf32> to vector<2x64xbf16>
    %cst_34 = arith.constant dense<0.000000e+00> : vector<2x256xf32>
    %234 = tpu.matmul %233, %44, %cst_34 {dimension_numbers = #tpu.dot_dimension_numbers<[1], [0], [0], [1], [0, 0, 1, 1], [], []>} : vector<2x64xbf16>, vector<64x256xbf16>, vector<2x256xf32> -> vector<2x256xf32>
    %235 = arith.addf %232, %234 : vector<2x256xf32>
    %236 = vector.extract_strided_slice %235 {offsets = [0, 0], sizes = [2, 192], strides = [1, 1]} : vector<2x256xf32> to vector<2x192xf32>
    %237 = arith.negf %236 : vector<2x192xf32>
    %238 = math.exp %237 : vector<2x192xf32>
    %cst_35 = arith.constant 1.000000e+00 : f32
    %239 = vector.broadcast %cst_35 : f32 to vector<2x192xf32>
    %240 = arith.addf %239, %238 : vector<2x192xf32>
    %241 = arith.divf %239, %240 : vector<2x192xf32>
    %242 = vector.extract_strided_slice %241 {offsets = [0, 0], sizes = [2, 64], strides = [1, 1]} : vector<2x192xf32> to vector<2x64xf32>
    %243 = vector.extract_strided_slice %241 {offsets = [0, 64], sizes = [2, 64], strides = [1, 1]} : vector<2x192xf32> to vector<2x64xf32>
    %244 = vector.extract_strided_slice %241 {offsets = [0, 128], sizes = [2, 64], strides = [1, 1]} : vector<2x192xf32> to vector<2x64xf32>
    %245 = vector.extract_strided_slice %235 {offsets = [0, 192], sizes = [2, 64], strides = [1, 1]} : vector<2x256xf32> to vector<2x64xf32>
    %246 = math.tanh %245 : vector<2x64xf32>
    %247 = arith.mulf %243, %223 : vector<2x64xf32>
    %248 = arith.mulf %242, %246 : vector<2x64xf32>
    %249 = arith.addf %247, %248 : vector<2x64xf32>
    %250 = math.tanh %249 : vector<2x64xf32>
    %251 = arith.mulf %244, %250 : vector<2x64xf32>
    %252 = vector.extract_strided_slice %45 {offsets = [7, 0, 0], sizes = [1, 2, 1], strides = [1, 1, 1]} : vector<16x2x1xf32> to vector<1x2x1xf32>
    %253 = vector.shape_cast %252 : vector<1x2x1xf32> to vector<2x1xf32>
    %254 = vector.broadcast %253 : vector<2x1xf32> to vector<2x64xf32>
    %255 = arith.mulf %254, %251 : vector<2x64xf32>
    %256 = arith.addf %230, %255 : vector<2x64xf32>
    %257 = vector.extract_strided_slice %43 {offsets = [8, 0, 0], sizes = [1, 2, 256], strides = [1, 1, 1]} : vector<16x2x256xf32> to vector<1x2x256xf32>
    %258 = vector.shape_cast %257 : vector<1x2x256xf32> to vector<2x256xf32>
    %259 = arith.truncf %251 : vector<2x64xf32> to vector<2x64xbf16>
    %cst_36 = arith.constant dense<0.000000e+00> : vector<2x256xf32>
    %260 = tpu.matmul %259, %44, %cst_36 {dimension_numbers = #tpu.dot_dimension_numbers<[1], [0], [0], [1], [0, 0, 1, 1], [], []>} : vector<2x64xbf16>, vector<64x256xbf16>, vector<2x256xf32> -> vector<2x256xf32>
    %261 = arith.addf %258, %260 : vector<2x256xf32>
    %262 = vector.extract_strided_slice %261 {offsets = [0, 0], sizes = [2, 192], strides = [1, 1]} : vector<2x256xf32> to vector<2x192xf32>
    %263 = arith.negf %262 : vector<2x192xf32>
    %264 = math.exp %263 : vector<2x192xf32>
    %cst_37 = arith.constant 1.000000e+00 : f32
    %265 = vector.broadcast %cst_37 : f32 to vector<2x192xf32>
    %266 = arith.addf %265, %264 : vector<2x192xf32>
    %267 = arith.divf %265, %266 : vector<2x192xf32>
    %268 = vector.extract_strided_slice %267 {offsets = [0, 0], sizes = [2, 64], strides = [1, 1]} : vector<2x192xf32> to vector<2x64xf32>
    %269 = vector.extract_strided_slice %267 {offsets = [0, 64], sizes = [2, 64], strides = [1, 1]} : vector<2x192xf32> to vector<2x64xf32>
    %270 = vector.extract_strided_slice %267 {offsets = [0, 128], sizes = [2, 64], strides = [1, 1]} : vector<2x192xf32> to vector<2x64xf32>
    %271 = vector.extract_strided_slice %261 {offsets = [0, 192], sizes = [2, 64], strides = [1, 1]} : vector<2x256xf32> to vector<2x64xf32>
    %272 = math.tanh %271 : vector<2x64xf32>
    %273 = arith.mulf %269, %249 : vector<2x64xf32>
    %274 = arith.mulf %268, %272 : vector<2x64xf32>
    %275 = arith.addf %273, %274 : vector<2x64xf32>
    %276 = math.tanh %275 : vector<2x64xf32>
    %277 = arith.mulf %270, %276 : vector<2x64xf32>
    %278 = vector.extract_strided_slice %45 {offsets = [8, 0, 0], sizes = [1, 2, 1], strides = [1, 1, 1]} : vector<16x2x1xf32> to vector<1x2x1xf32>
    %279 = vector.shape_cast %278 : vector<1x2x1xf32> to vector<2x1xf32>
    %280 = vector.broadcast %279 : vector<2x1xf32> to vector<2x64xf32>
    %281 = arith.mulf %280, %277 : vector<2x64xf32>
    %282 = arith.addf %256, %281 : vector<2x64xf32>
    %283 = vector.extract_strided_slice %43 {offsets = [9, 0, 0], sizes = [1, 2, 256], strides = [1, 1, 1]} : vector<16x2x256xf32> to vector<1x2x256xf32>
    %284 = vector.shape_cast %283 : vector<1x2x256xf32> to vector<2x256xf32>
    %285 = arith.truncf %277 : vector<2x64xf32> to vector<2x64xbf16>
    %cst_38 = arith.constant dense<0.000000e+00> : vector<2x256xf32>
    %286 = tpu.matmul %285, %44, %cst_38 {dimension_numbers = #tpu.dot_dimension_numbers<[1], [0], [0], [1], [0, 0, 1, 1], [], []>} : vector<2x64xbf16>, vector<64x256xbf16>, vector<2x256xf32> -> vector<2x256xf32>
    %287 = arith.addf %284, %286 : vector<2x256xf32>
    %288 = vector.extract_strided_slice %287 {offsets = [0, 0], sizes = [2, 192], strides = [1, 1]} : vector<2x256xf32> to vector<2x192xf32>
    %289 = arith.negf %288 : vector<2x192xf32>
    %290 = math.exp %289 : vector<2x192xf32>
    %cst_39 = arith.constant 1.000000e+00 : f32
    %291 = vector.broadcast %cst_39 : f32 to vector<2x192xf32>
    %292 = arith.addf %291, %290 : vector<2x192xf32>
    %293 = arith.divf %291, %292 : vector<2x192xf32>
    %294 = vector.extract_strided_slice %293 {offsets = [0, 0], sizes = [2, 64], strides = [1, 1]} : vector<2x192xf32> to vector<2x64xf32>
    %295 = vector.extract_strided_slice %293 {offsets = [0, 64], sizes = [2, 64], strides = [1, 1]} : vector<2x192xf32> to vector<2x64xf32>
    %296 = vector.extract_strided_slice %293 {offsets = [0, 128], sizes = [2, 64], strides = [1, 1]} : vector<2x192xf32> to vector<2x64xf32>
    %297 = vector.extract_strided_slice %287 {offsets = [0, 192], sizes = [2, 64], strides = [1, 1]} : vector<2x256xf32> to vector<2x64xf32>
    %298 = math.tanh %297 : vector<2x64xf32>
    %299 = arith.mulf %295, %275 : vector<2x64xf32>
    %300 = arith.mulf %294, %298 : vector<2x64xf32>
    %301 = arith.addf %299, %300 : vector<2x64xf32>
    %302 = math.tanh %301 : vector<2x64xf32>
    %303 = arith.mulf %296, %302 : vector<2x64xf32>
    %304 = vector.extract_strided_slice %45 {offsets = [9, 0, 0], sizes = [1, 2, 1], strides = [1, 1, 1]} : vector<16x2x1xf32> to vector<1x2x1xf32>
    %305 = vector.shape_cast %304 : vector<1x2x1xf32> to vector<2x1xf32>
    %306 = vector.broadcast %305 : vector<2x1xf32> to vector<2x64xf32>
    %307 = arith.mulf %306, %303 : vector<2x64xf32>
    %308 = arith.addf %282, %307 : vector<2x64xf32>
    %309 = vector.extract_strided_slice %43 {offsets = [10, 0, 0], sizes = [1, 2, 256], strides = [1, 1, 1]} : vector<16x2x256xf32> to vector<1x2x256xf32>
    %310 = vector.shape_cast %309 : vector<1x2x256xf32> to vector<2x256xf32>
    %311 = arith.truncf %303 : vector<2x64xf32> to vector<2x64xbf16>
    %cst_40 = arith.constant dense<0.000000e+00> : vector<2x256xf32>
    %312 = tpu.matmul %311, %44, %cst_40 {dimension_numbers = #tpu.dot_dimension_numbers<[1], [0], [0], [1], [0, 0, 1, 1], [], []>} : vector<2x64xbf16>, vector<64x256xbf16>, vector<2x256xf32> -> vector<2x256xf32>
    %313 = arith.addf %310, %312 : vector<2x256xf32>
    %314 = vector.extract_strided_slice %313 {offsets = [0, 0], sizes = [2, 192], strides = [1, 1]} : vector<2x256xf32> to vector<2x192xf32>
    %315 = arith.negf %314 : vector<2x192xf32>
    %316 = math.exp %315 : vector<2x192xf32>
    %cst_41 = arith.constant 1.000000e+00 : f32
    %317 = vector.broadcast %cst_41 : f32 to vector<2x192xf32>
    %318 = arith.addf %317, %316 : vector<2x192xf32>
    %319 = arith.divf %317, %318 : vector<2x192xf32>
    %320 = vector.extract_strided_slice %319 {offsets = [0, 0], sizes = [2, 64], strides = [1, 1]} : vector<2x192xf32> to vector<2x64xf32>
    %321 = vector.extract_strided_slice %319 {offsets = [0, 64], sizes = [2, 64], strides = [1, 1]} : vector<2x192xf32> to vector<2x64xf32>
    %322 = vector.extract_strided_slice %319 {offsets = [0, 128], sizes = [2, 64], strides = [1, 1]} : vector<2x192xf32> to vector<2x64xf32>
    %323 = vector.extract_strided_slice %313 {offsets = [0, 192], sizes = [2, 64], strides = [1, 1]} : vector<2x256xf32> to vector<2x64xf32>
    %324 = math.tanh %323 : vector<2x64xf32>
    %325 = arith.mulf %321, %301 : vector<2x64xf32>
    %326 = arith.mulf %320, %324 : vector<2x64xf32>
    %327 = arith.addf %325, %326 : vector<2x64xf32>
    %328 = math.tanh %327 : vector<2x64xf32>
    %329 = arith.mulf %322, %328 : vector<2x64xf32>
    %330 = vector.extract_strided_slice %45 {offsets = [10, 0, 0], sizes = [1, 2, 1], strides = [1, 1, 1]} : vector<16x2x1xf32> to vector<1x2x1xf32>
    %331 = vector.shape_cast %330 : vector<1x2x1xf32> to vector<2x1xf32>
    %332 = vector.broadcast %331 : vector<2x1xf32> to vector<2x64xf32>
    %333 = arith.mulf %332, %329 : vector<2x64xf32>
    %334 = arith.addf %308, %333 : vector<2x64xf32>
    %335 = vector.extract_strided_slice %43 {offsets = [11, 0, 0], sizes = [1, 2, 256], strides = [1, 1, 1]} : vector<16x2x256xf32> to vector<1x2x256xf32>
    %336 = vector.shape_cast %335 : vector<1x2x256xf32> to vector<2x256xf32>
    %337 = arith.truncf %329 : vector<2x64xf32> to vector<2x64xbf16>
    %cst_42 = arith.constant dense<0.000000e+00> : vector<2x256xf32>
    %338 = tpu.matmul %337, %44, %cst_42 {dimension_numbers = #tpu.dot_dimension_numbers<[1], [0], [0], [1], [0, 0, 1, 1], [], []>} : vector<2x64xbf16>, vector<64x256xbf16>, vector<2x256xf32> -> vector<2x256xf32>
    %339 = arith.addf %336, %338 : vector<2x256xf32>
    %340 = vector.extract_strided_slice %339 {offsets = [0, 0], sizes = [2, 192], strides = [1, 1]} : vector<2x256xf32> to vector<2x192xf32>
    %341 = arith.negf %340 : vector<2x192xf32>
    %342 = math.exp %341 : vector<2x192xf32>
    %cst_43 = arith.constant 1.000000e+00 : f32
    %343 = vector.broadcast %cst_43 : f32 to vector<2x192xf32>
    %344 = arith.addf %343, %342 : vector<2x192xf32>
    %345 = arith.divf %343, %344 : vector<2x192xf32>
    %346 = vector.extract_strided_slice %345 {offsets = [0, 0], sizes = [2, 64], strides = [1, 1]} : vector<2x192xf32> to vector<2x64xf32>
    %347 = vector.extract_strided_slice %345 {offsets = [0, 64], sizes = [2, 64], strides = [1, 1]} : vector<2x192xf32> to vector<2x64xf32>
    %348 = vector.extract_strided_slice %345 {offsets = [0, 128], sizes = [2, 64], strides = [1, 1]} : vector<2x192xf32> to vector<2x64xf32>
    %349 = vector.extract_strided_slice %339 {offsets = [0, 192], sizes = [2, 64], strides = [1, 1]} : vector<2x256xf32> to vector<2x64xf32>
    %350 = math.tanh %349 : vector<2x64xf32>
    %351 = arith.mulf %347, %327 : vector<2x64xf32>
    %352 = arith.mulf %346, %350 : vector<2x64xf32>
    %353 = arith.addf %351, %352 : vector<2x64xf32>
    %354 = math.tanh %353 : vector<2x64xf32>
    %355 = arith.mulf %348, %354 : vector<2x64xf32>
    %356 = vector.extract_strided_slice %45 {offsets = [11, 0, 0], sizes = [1, 2, 1], strides = [1, 1, 1]} : vector<16x2x1xf32> to vector<1x2x1xf32>
    %357 = vector.shape_cast %356 : vector<1x2x1xf32> to vector<2x1xf32>
    %358 = vector.broadcast %357 : vector<2x1xf32> to vector<2x64xf32>
    %359 = arith.mulf %358, %355 : vector<2x64xf32>
    %360 = arith.addf %334, %359 : vector<2x64xf32>
    %361 = vector.extract_strided_slice %43 {offsets = [12, 0, 0], sizes = [1, 2, 256], strides = [1, 1, 1]} : vector<16x2x256xf32> to vector<1x2x256xf32>
    %362 = vector.shape_cast %361 : vector<1x2x256xf32> to vector<2x256xf32>
    %363 = arith.truncf %355 : vector<2x64xf32> to vector<2x64xbf16>
    %cst_44 = arith.constant dense<0.000000e+00> : vector<2x256xf32>
    %364 = tpu.matmul %363, %44, %cst_44 {dimension_numbers = #tpu.dot_dimension_numbers<[1], [0], [0], [1], [0, 0, 1, 1], [], []>} : vector<2x64xbf16>, vector<64x256xbf16>, vector<2x256xf32> -> vector<2x256xf32>
    %365 = arith.addf %362, %364 : vector<2x256xf32>
    %366 = vector.extract_strided_slice %365 {offsets = [0, 0], sizes = [2, 192], strides = [1, 1]} : vector<2x256xf32> to vector<2x192xf32>
    %367 = arith.negf %366 : vector<2x192xf32>
    %368 = math.exp %367 : vector<2x192xf32>
    %cst_45 = arith.constant 1.000000e+00 : f32
    %369 = vector.broadcast %cst_45 : f32 to vector<2x192xf32>
    %370 = arith.addf %369, %368 : vector<2x192xf32>
    %371 = arith.divf %369, %370 : vector<2x192xf32>
    %372 = vector.extract_strided_slice %371 {offsets = [0, 0], sizes = [2, 64], strides = [1, 1]} : vector<2x192xf32> to vector<2x64xf32>
    %373 = vector.extract_strided_slice %371 {offsets = [0, 64], sizes = [2, 64], strides = [1, 1]} : vector<2x192xf32> to vector<2x64xf32>
    %374 = vector.extract_strided_slice %371 {offsets = [0, 128], sizes = [2, 64], strides = [1, 1]} : vector<2x192xf32> to vector<2x64xf32>
    %375 = vector.extract_strided_slice %365 {offsets = [0, 192], sizes = [2, 64], strides = [1, 1]} : vector<2x256xf32> to vector<2x64xf32>
    %376 = math.tanh %375 : vector<2x64xf32>
    %377 = arith.mulf %373, %353 : vector<2x64xf32>
    %378 = arith.mulf %372, %376 : vector<2x64xf32>
    %379 = arith.addf %377, %378 : vector<2x64xf32>
    %380 = math.tanh %379 : vector<2x64xf32>
    %381 = arith.mulf %374, %380 : vector<2x64xf32>
    %382 = vector.extract_strided_slice %45 {offsets = [12, 0, 0], sizes = [1, 2, 1], strides = [1, 1, 1]} : vector<16x2x1xf32> to vector<1x2x1xf32>
    %383 = vector.shape_cast %382 : vector<1x2x1xf32> to vector<2x1xf32>
    %384 = vector.broadcast %383 : vector<2x1xf32> to vector<2x64xf32>
    %385 = arith.mulf %384, %381 : vector<2x64xf32>
    %386 = arith.addf %360, %385 : vector<2x64xf32>
    %387 = vector.extract_strided_slice %43 {offsets = [13, 0, 0], sizes = [1, 2, 256], strides = [1, 1, 1]} : vector<16x2x256xf32> to vector<1x2x256xf32>
    %388 = vector.shape_cast %387 : vector<1x2x256xf32> to vector<2x256xf32>
    %389 = arith.truncf %381 : vector<2x64xf32> to vector<2x64xbf16>
    %cst_46 = arith.constant dense<0.000000e+00> : vector<2x256xf32>
    %390 = tpu.matmul %389, %44, %cst_46 {dimension_numbers = #tpu.dot_dimension_numbers<[1], [0], [0], [1], [0, 0, 1, 1], [], []>} : vector<2x64xbf16>, vector<64x256xbf16>, vector<2x256xf32> -> vector<2x256xf32>
    %391 = arith.addf %388, %390 : vector<2x256xf32>
    %392 = vector.extract_strided_slice %391 {offsets = [0, 0], sizes = [2, 192], strides = [1, 1]} : vector<2x256xf32> to vector<2x192xf32>
    %393 = arith.negf %392 : vector<2x192xf32>
    %394 = math.exp %393 : vector<2x192xf32>
    %cst_47 = arith.constant 1.000000e+00 : f32
    %395 = vector.broadcast %cst_47 : f32 to vector<2x192xf32>
    %396 = arith.addf %395, %394 : vector<2x192xf32>
    %397 = arith.divf %395, %396 : vector<2x192xf32>
    %398 = vector.extract_strided_slice %397 {offsets = [0, 0], sizes = [2, 64], strides = [1, 1]} : vector<2x192xf32> to vector<2x64xf32>
    %399 = vector.extract_strided_slice %397 {offsets = [0, 64], sizes = [2, 64], strides = [1, 1]} : vector<2x192xf32> to vector<2x64xf32>
    %400 = vector.extract_strided_slice %397 {offsets = [0, 128], sizes = [2, 64], strides = [1, 1]} : vector<2x192xf32> to vector<2x64xf32>
    %401 = vector.extract_strided_slice %391 {offsets = [0, 192], sizes = [2, 64], strides = [1, 1]} : vector<2x256xf32> to vector<2x64xf32>
    %402 = math.tanh %401 : vector<2x64xf32>
    %403 = arith.mulf %399, %379 : vector<2x64xf32>
    %404 = arith.mulf %398, %402 : vector<2x64xf32>
    %405 = arith.addf %403, %404 : vector<2x64xf32>
    %406 = math.tanh %405 : vector<2x64xf32>
    %407 = arith.mulf %400, %406 : vector<2x64xf32>
    %408 = vector.extract_strided_slice %45 {offsets = [13, 0, 0], sizes = [1, 2, 1], strides = [1, 1, 1]} : vector<16x2x1xf32> to vector<1x2x1xf32>
    %409 = vector.shape_cast %408 : vector<1x2x1xf32> to vector<2x1xf32>
    %410 = vector.broadcast %409 : vector<2x1xf32> to vector<2x64xf32>
    %411 = arith.mulf %410, %407 : vector<2x64xf32>
    %412 = arith.addf %386, %411 : vector<2x64xf32>
    %413 = vector.extract_strided_slice %43 {offsets = [14, 0, 0], sizes = [1, 2, 256], strides = [1, 1, 1]} : vector<16x2x256xf32> to vector<1x2x256xf32>
    %414 = vector.shape_cast %413 : vector<1x2x256xf32> to vector<2x256xf32>
    %415 = arith.truncf %407 : vector<2x64xf32> to vector<2x64xbf16>
    %cst_48 = arith.constant dense<0.000000e+00> : vector<2x256xf32>
    %416 = tpu.matmul %415, %44, %cst_48 {dimension_numbers = #tpu.dot_dimension_numbers<[1], [0], [0], [1], [0, 0, 1, 1], [], []>} : vector<2x64xbf16>, vector<64x256xbf16>, vector<2x256xf32> -> vector<2x256xf32>
    %417 = arith.addf %414, %416 : vector<2x256xf32>
    %418 = vector.extract_strided_slice %417 {offsets = [0, 0], sizes = [2, 192], strides = [1, 1]} : vector<2x256xf32> to vector<2x192xf32>
    %419 = arith.negf %418 : vector<2x192xf32>
    %420 = math.exp %419 : vector<2x192xf32>
    %cst_49 = arith.constant 1.000000e+00 : f32
    %421 = vector.broadcast %cst_49 : f32 to vector<2x192xf32>
    %422 = arith.addf %421, %420 : vector<2x192xf32>
    %423 = arith.divf %421, %422 : vector<2x192xf32>
    %424 = vector.extract_strided_slice %423 {offsets = [0, 0], sizes = [2, 64], strides = [1, 1]} : vector<2x192xf32> to vector<2x64xf32>
    %425 = vector.extract_strided_slice %423 {offsets = [0, 64], sizes = [2, 64], strides = [1, 1]} : vector<2x192xf32> to vector<2x64xf32>
    %426 = vector.extract_strided_slice %423 {offsets = [0, 128], sizes = [2, 64], strides = [1, 1]} : vector<2x192xf32> to vector<2x64xf32>
    %427 = vector.extract_strided_slice %417 {offsets = [0, 192], sizes = [2, 64], strides = [1, 1]} : vector<2x256xf32> to vector<2x64xf32>
    %428 = math.tanh %427 : vector<2x64xf32>
    %429 = arith.mulf %425, %405 : vector<2x64xf32>
    %430 = arith.mulf %424, %428 : vector<2x64xf32>
    %431 = arith.addf %429, %430 : vector<2x64xf32>
    %432 = math.tanh %431 : vector<2x64xf32>
    %433 = arith.mulf %426, %432 : vector<2x64xf32>
    %434 = vector.extract_strided_slice %45 {offsets = [14, 0, 0], sizes = [1, 2, 1], strides = [1, 1, 1]} : vector<16x2x1xf32> to vector<1x2x1xf32>
    %435 = vector.shape_cast %434 : vector<1x2x1xf32> to vector<2x1xf32>
    %436 = vector.broadcast %435 : vector<2x1xf32> to vector<2x64xf32>
    %437 = arith.mulf %436, %433 : vector<2x64xf32>
    %438 = arith.addf %412, %437 : vector<2x64xf32>
    %439 = vector.extract_strided_slice %43 {offsets = [15, 0, 0], sizes = [1, 2, 256], strides = [1, 1, 1]} : vector<16x2x256xf32> to vector<1x2x256xf32>
    %440 = vector.shape_cast %439 : vector<1x2x256xf32> to vector<2x256xf32>
    %441 = arith.truncf %433 : vector<2x64xf32> to vector<2x64xbf16>
    %cst_50 = arith.constant dense<0.000000e+00> : vector<2x256xf32>
    %442 = tpu.matmul %441, %44, %cst_50 {dimension_numbers = #tpu.dot_dimension_numbers<[1], [0], [0], [1], [0, 0, 1, 1], [], []>} : vector<2x64xbf16>, vector<64x256xbf16>, vector<2x256xf32> -> vector<2x256xf32>
    %443 = arith.addf %440, %442 : vector<2x256xf32>
    %444 = vector.extract_strided_slice %443 {offsets = [0, 0], sizes = [2, 192], strides = [1, 1]} : vector<2x256xf32> to vector<2x192xf32>
    %445 = arith.negf %444 : vector<2x192xf32>
    %446 = math.exp %445 : vector<2x192xf32>
    %cst_51 = arith.constant 1.000000e+00 : f32
    %447 = vector.broadcast %cst_51 : f32 to vector<2x192xf32>
    %448 = arith.addf %447, %446 : vector<2x192xf32>
    %449 = arith.divf %447, %448 : vector<2x192xf32>
    %450 = vector.extract_strided_slice %449 {offsets = [0, 0], sizes = [2, 64], strides = [1, 1]} : vector<2x192xf32> to vector<2x64xf32>
    %451 = vector.extract_strided_slice %449 {offsets = [0, 64], sizes = [2, 64], strides = [1, 1]} : vector<2x192xf32> to vector<2x64xf32>
    %452 = vector.extract_strided_slice %449 {offsets = [0, 128], sizes = [2, 64], strides = [1, 1]} : vector<2x192xf32> to vector<2x64xf32>
    %453 = vector.extract_strided_slice %443 {offsets = [0, 192], sizes = [2, 64], strides = [1, 1]} : vector<2x256xf32> to vector<2x64xf32>
    %454 = math.tanh %453 : vector<2x64xf32>
    %455 = arith.mulf %451, %431 : vector<2x64xf32>
    %456 = arith.mulf %450, %454 : vector<2x64xf32>
    %457 = arith.addf %455, %456 : vector<2x64xf32>
    %458 = math.tanh %457 : vector<2x64xf32>
    %459 = arith.mulf %452, %458 : vector<2x64xf32>
    %460 = vector.extract_strided_slice %45 {offsets = [15, 0, 0], sizes = [1, 2, 1], strides = [1, 1, 1]} : vector<16x2x1xf32> to vector<1x2x1xf32>
    %461 = vector.shape_cast %460 : vector<1x2x1xf32> to vector<2x1xf32>
    %462 = vector.broadcast %461 : vector<2x1xf32> to vector<2x64xf32>
    %463 = arith.mulf %462, %459 : vector<2x64xf32>
    %464 = arith.addf %438, %463 : vector<2x64xf32>
    %465 = vector.broadcast %45 : vector<16x2x1xf32> to vector<16x2x33xf32>
    %466 = arith.mulf %465, %0 : vector<16x2x33xf32>
    %cst_52 = arith.constant dense<0.000000e+00> : vector<2x33xf32>
    %467 = vector.multi_reduction <add>, %466, %cst_52 [0] : vector<16x2x33xf32> to vector<2x33xf32>
    %c0_53 = arith.constant 0 : index
    %c0_54 = arith.constant 0 : index
    %468 = vector.load %arg4[%c0_53, %c0_54] : memref<33x256xf32, #tpu.memory_space<vmem>>, vector<33x256xf32>
    %cst_55 = arith.constant dense<0.000000e+00> : vector<2x256xf32>
    %469 = tpu.matmul %467, %468, %cst_55 {dimension_numbers = #tpu.dot_dimension_numbers<[1], [0], [0], [1], [0, 0, 1, 1], [], []>} : vector<2x33xf32>, vector<33x256xf32>, vector<2x256xf32> -> vector<2x256xf32>
    %470 = vector.extract_strided_slice %469 {offsets = [0, 0], sizes = [2, 192], strides = [1, 1]} : vector<2x256xf32> to vector<2x192xf32>
    %471 = arith.negf %470 : vector<2x192xf32>
    %472 = math.exp %471 : vector<2x192xf32>
    %cst_56 = arith.constant 1.000000e+00 : f32
    %473 = vector.broadcast %cst_56 : f32 to vector<2x192xf32>
    %474 = arith.addf %473, %472 : vector<2x192xf32>
    %475 = arith.divf %473, %474 : vector<2x192xf32>
    %476 = vector.extract_strided_slice %475 {offsets = [0, 0], sizes = [2, 64], strides = [1, 1]} : vector<2x192xf32> to vector<2x64xf32>
    %477 = vector.extract_strided_slice %475 {offsets = [0, 128], sizes = [2, 64], strides = [1, 1]} : vector<2x192xf32> to vector<2x64xf32>
    %478 = vector.extract_strided_slice %469 {offsets = [0, 192], sizes = [2, 64], strides = [1, 1]} : vector<2x256xf32> to vector<2x64xf32>
    %479 = math.tanh %478 : vector<2x64xf32>
    %480 = arith.mulf %476, %479 : vector<2x64xf32>
    %481 = math.tanh %480 : vector<2x64xf32>
    %482 = arith.mulf %477, %481 : vector<2x64xf32>
    %cst_57 = arith.constant 1.000000e+00 : f32
    %483 = vector.broadcast %cst_57 : f32 to vector<2x1xf32>
    %484 = tpu.concatenate %42, %464, %482, %483 in 1 : vector<2x512xf32>, vector<2x64xf32>, vector<2x64xf32>, vector<2x1xf32> -> vector<2x641xf32>
    %c0_58 = arith.constant 0 : index
    %c0_59 = arith.constant 0 : index
    %485 = vector.load %arg5[%c0_58, %c0_59] : memref<641x128xf32, #tpu.memory_space<vmem>>, vector<641x128xf32>
    %cst_60 = arith.constant dense<0.000000e+00> : vector<2x128xf32>
    %486 = tpu.matmul %484, %485, %cst_60 {dimension_numbers = #tpu.dot_dimension_numbers<[1], [0], [0], [1], [0, 0, 1, 1], [], []>} : vector<2x641xf32>, vector<641x128xf32>, vector<2x128xf32> -> vector<2x128xf32>
    %cst_61 = arith.constant 0.000000e+00 : f32
    %487 = vector.broadcast %cst_61 : f32 to vector<2x128xf32>
    %488 = arith.maximumf %486, %487 : vector<2x128xf32>
    %489 = tpu.concatenate %488, %483 in 1 : vector<2x128xf32>, vector<2x1xf32> -> vector<2x129xf32>
    %c0_62 = arith.constant 0 : index
    %c0_63 = arith.constant 0 : index
    %490 = vector.load %arg6[%c0_62, %c0_63] : memref<129x4xf32, #tpu.memory_space<vmem>>, vector<129x4xf32>
    %cst_64 = arith.constant dense<0.000000e+00> : vector<2x4xf32>
    %491 = tpu.matmul %489, %490, %cst_64 {dimension_numbers = #tpu.dot_dimension_numbers<[1], [0], [0], [1], [0, 0, 1, 1], [], []>} : vector<2x129xf32>, vector<129x4xf32>, vector<2x4xf32> -> vector<2x4xf32>
    %c0_65 = arith.constant 0 : index
    %c0_66 = arith.constant 0 : index
    %492 = vector.load %arg7[%c0_65, %c0_66] : memref<2x4xf32, #tpu.memory_space<vmem>>, vector<2x4xf32>
    tpu.vector_store %arg7[%c0_65, %c0_66], %491 {strides = array<i32>} : memref<2x4xf32, #tpu.memory_space<vmem>>, vector<2x4xf32>,
    return
  }
}

</mosaic_0001>

<bundles_post_ra>
// kernel: tpu_custom_call.1
= control target key start
LH: loop header
LB: loop body
LE: loop exit
PB: predicated region body
PF: predicated region fallthrough
CT: control target
= control target key end

     0   :  { %12 = vsyncpa [#allocation3], 0  ;;  %s6635_s0 = inlined_call_operand.vmem [shape: f32[16,2,33], index: 0, kind: input, shape index: {}]   ;;  %s6636_s1 = inlined_call_operand.vmem [shape: f32[16,2,1], index: 1, kind: input, shape index: {}]   ;;  %s6637_s2 = inlined_call_operand.hbm [shape: bf16[33,2048], index: 2, kind: input, shape index: {}]   ;;  %s6638_s3 = inlined_call_operand.vmem [shape: bf16[64,256], index: 3, kind: input, shape index: {}]   ;;  %s6639_s4 = inlined_call_operand.vmem [shape: f32[33,256], index: 4, kind: input, shape index: {}]   ;;  %s6640_s5 = inlined_call_operand.hbm [shape: f32[641,128], index: 5, kind: input, shape index: {}]   ;;  %s6641_s6 = inlined_call_operand.vmem [shape: f32[129,4], index: 6, kind: input, shape index: {}]   ;;  %s6642_s7 = inlined_call_operand.hbm [shape: f32[2,4], index: 7, kind: output, shape index: {}]  }
   0x1   :  { %13 = vsyncpa [#allocation6], 0 }
   0x2   :  { %14 = vsyncpa [#allocation4], 0  ;;  %s4845_s24 = smov [#allocation2]   ;;  %s4773_s28 = scalar_lea.hbm %s6637_s2, 5120 }
   0x3   :  { %s24_s25 = sshll.u32 %s4845_s24, 4  ;;  %p4774_p0 = scmp.ne.s32.totalorder %s6637_s2, %s4773_s28  ;;  %s25_s25 = int_to_ptr.vmem [resolvable:$true] %s24_s25 }
   0x4   :  { %p4777_p1 = scmp.lt.u32.totalorder %s4773_s28, %s6637_s2 }
   0x6   :  { %p4779_p2 = pnand %p4777_p1, %p4774_p0 }
   0x8   :  { %4782 = shalt.err (!%p4779_p2)
}
   0x9   :  { %s4783_s10 = scalar_lea.vmem %s25_s25, 5120  ;;  %p4788_p4 = scmp.lt.s32.totalorder %s25_s25, %s25_s25 }
   0xa   :  { %p4784_p3 = scmp.ne.s32.totalorder %s25_s25, %s4783_s10  ;;  %p4789_p5 = scmp.lt.s32.totalorder %s4783_s10, %s4783_s10 }
   0xc   :  { %p4790_p6 = por %p4789_p5, %p4788_p4 }
   0xe   :  { %p4791_p7 = pnand %p4790_p6, %p4784_p3 }
  0x10   :  { %4794 = shalt.err (!%p4791_p7)
}
  0x11   :  { %s4846_s11 = smov 1024   ;;  %s4847_s12 = smov 64  }
  0x12   :  { %30 = dma.hbm_to_vmem [thread:$0]  %s6637_s2, 5120, %s25_s25, [#allocation3], %s4846_s11, %s4846_s11, %s4847_s12  }
  0x13   :  { %s4848_s15 = smov [#allocation5]   ;;  %s4795_s19 = scalar_lea.hbm %s6640_s5, 10368 }
  0x14   :  { %s40_s16 = sshll.u32 %s4848_s15, 4  ;;  %p4796_p8 = scmp.ne.s32.totalorder %s6640_s5, %s4795_s19  ;;  %s41_s16 = int_to_ptr.vmem [resolvable:$true] %s40_s16 }
  0x15   :  { %p4799_p9 = scmp.lt.u32.totalorder %s4795_s19, %s6640_s5 }
  0x17   :  { %p4801_p10 = pnand %p4799_p9, %p4796_p8 }
  0x19   :  { %4804 = shalt.err (!%p4801_p10)
}
  0x1a   :  { %s4805_s24 = scalar_lea.vmem %s41_s16, 10368  ;;  %p4810_p12 = scmp.lt.s32.totalorder %s41_s16, %s41_s16 }
  0x1b   :  { %p4806_p11 = scmp.ne.s32.totalorder %s41_s16, %s4805_s24  ;;  %p4811_p13 = scmp.lt.s32.totalorder %s4805_s24, %s4805_s24 }
  0x1d   :  { %p4812_p0 = por %p4811_p13, %p4810_p12 }
  0x1f   :  { %p4813_p1 = pnand %p4812_p0, %p4806_p11 }
  0x21   :  { %4816 = shalt.err (!%p4813_p1)
}
  0x22   :  { %s4849_s2 = smov 128   ;;  %s4850_s25 = smov 8  }
  0x23   :  { %46 = dma.hbm_to_vmem [thread:$0]  %s6640_s5, 10368, %s41_s16, [#allocation6], %s4849_s2, %s4849_s2, %s4850_s25  }
  0x24   :  { %4839 = dma.done.wait [#allocation3], 5120  }
  0x25   :  { %4840 = vsyncadd [#allocation3], 4294962176 }
  0x26   :  { %4841 = dma.done.wait [#allocation6], 10368  }
  0x27   :  { %4842 = vsyncadd [#allocation6], 4294956928  ;;  %v6643_v0 = vmov 0   ;;  %v4852_v1 = vmov 1983009808   ;;  %v93_v3 = vlaneseq  ;;  %vm409_vm0 = vcmask 1040384  }
  0x28   :  { %492 = vmatprep.mubr.bf16.mxu0 %v6643_v0  ;;  %545 = vmatprep.mubr.bf16.mxu1 %v6643_v0  ;;  %v91_v2 = vunpack.c.l.s4 %v4852_v1  ;;  %v162_v6 = vld [vmem:[#allocation2] sm:$0xff]  ;;  %v163_v8 = vld [vmem:[#allocation2 + $0x8] sm:$0xff]  ;;  %v4928_v14 = vsel %vm409_vm0, 65535, %v6643_v0  ;;  %v164_v44 = vld [vmem:[#allocation2 + $0x10] sm:$0xff]  ;;  %vm402_vm1 = vcmask 269312   ;;  %vm1638_vm2 = vcmask 1041408  }
  0x29   :  { %4579 = vset.pattern.permute.xlu1 %v6643_v0  ;;  %4580 = vset.pattern.permute.xlu0 %v6643_v0  ;;  %v94_v5 = vshrl.u32 %v93_v3, 7  ;;  %v170_v7 = vld [vmem:[#allocation2 + $0x40] sm:$0xff]  ;;  %v171_v10 = vld [vmem:[#allocation2 + $0x48] sm:$0xff]  ;;  %v172_v45 = vld [vmem:[#allocation2 + $0x50] sm:$0xff]  ;;  %vm2193_vm3 = vcmask 523264   ;;  %vm3711_vm4 = vcmask 263168  }
  0x2a   :  { %v92_v4 = vunpack.c.0.s8 %v91_v2  ;;  %v4266_v9 = vcombine.high %v162_v6, %v170_v7  ;;  %v4265_v11 = vcombine.low %v162_v6, %v170_v7  ;;  %v178_v12 = vld [vmem:[#allocation2 + $0x80] sm:$0xff]  ;;  %v4268_v15 = vcombine.high %v163_v8, %v171_v10  ;;  %v179_v18 = vld [vmem:[#allocation2 + $0x88] sm:$0xff]  ;;  %v165_v48 = vld [vmem:[#allocation2 + $0x18] sm:$0xff]  ;;  %s4856_s5 = smov [#allocation7]  }
  0x2b   :  { %v186_v13 = vld [vmem:[#allocation2 + $0xc0] sm:$0xff]  ;;  %v4267_v16 = vcombine.low %v163_v8, %v171_v10  ;;  %v187_v19 = vld [vmem:[#allocation2 + $0xc8] sm:$0xff]  ;;  %v173_v49 = vld [vmem:[#allocation2 + $0x58] sm:$0xff]  ;;  %v4270_v59 = vcombine.high %v164_v44, %v172_v45  ;;  %v4269_v8 = vcombine.low %v164_v44, %v172_v45  ;;  %vm3939_vm5 = vcmask 7168   ;;  %s4255_s28 = sshll.u32 %s4856_s5, 4  ;;  %s4256_s28 = int_to_ptr.vmem [resolvable:$true] %s4255_s28 }
  0x2c   :  { %v4282_v17 = vcombine.high %v178_v12, %v186_v13  ;;  %v194_v20 = vld [vmem:[#allocation2 + $0x100] sm:$0x11]  ;;  %v4930_v21 = vsub.s32 %v92_v4, %v94_v5  ;;  %460 = vmatprep.subr.bf16.mxu0 %v4266_v9  ;;  %v4284_v22 = vcombine.high %v179_v18, %v187_v19  ;;  %v4281_v23 = vcombine.low %v178_v12, %v186_v13  ;;  %v195_v25 = vld [vmem:[#allocation2 + $0x108] sm:$0x11]  ;;  %v57_v28 = vld [vmem:[%s6635_s0 + $0x2] sm:$0x3]  ;;  %p4822_p3 = scmp.lt.s32.totalorder %s4256_s28, %s4256_s28 }
  0x2d   :  { %v4298_v24 = vcombine.high %v194_v20, %v194_v20  ;;  %v4297_v26 = vcombine.low %v194_v20, %v194_v20  ;;  %v56_v27 = vld [vmem:[%s6635_s0] sm:$0x3]  ;;  %513 = vmatprep.subr.bf16.mxu1 %v4268_v15  ;;  %461 = vmatpush1.bf16.msra.mxu0 %v4265_v11  ;;  %v4300_v29 = vcombine.high %v195_v25, %v195_v25  ;;  %v58_v31 = vld [vmem:[%s6635_s0 + $0x4] sm:$0x3]  ;;  %v59_v32 = vld [vmem:[%s6635_s0 + $0x6] sm:$0x3] }
  0x2e   :  { %v4299_v30 = vcombine.low %v195_v25, %v195_v25  ;;  %v60_v33 = vld [vmem:[%s6635_s0 + $0x8] sm:$0x3]  ;;  %v88_v34 = vcombine.low %v56_v27, %v57_v28  ;;  %514 = vmatpush1.bf16.msra.mxu1 %v4267_v16  ;;  %462 = vmatprep.subr.bf16.mxu0 %v4282_v17  ;;  %v4283_v35 = vcombine.low %v179_v18, %v187_v19  ;;  %v61_v37 = vld [vmem:[%s6635_s0 + $0xa] sm:$0x3]  ;;  %v62_v38 = vld [vmem:[%s6635_s0 + $0xc] sm:$0x3] }
  0x2f   :  { %v416_v36 = vand.u32 %v4298_v24, %v4928_v14  ;;  %v63_v39 = vld [vmem:[%s6635_s0 + $0xe] sm:$0x3]  ;;  %v89_v40 = vcombine.low %v58_v31, %v59_v32  ;;  %515 = vmatprep.subr.bf16.mxu1 %v4284_v22  ;;  %v422_v41 = vand.u32 %v4300_v29, %v4928_v14  ;;  %v105_v43 = vcombine.low %v60_v33, %v61_v37  ;;  %v180_v53 = vld [vmem:[#allocation2 + $0x90] sm:$0xff]  ;;  %v68_v61 = vld [vmem:[%s6635_s0 + $0x18] sm:$0x3]  ;;  %s4817_s29 = scalar_lea.vmem %s4256_s28, 32 }
  0x30   :  { %v96_v42 = vrot.slane %v88_v34, %v4930_v21  ;;  %v106_v47 = vcombine.low %v62_v38, %v63_v39  ;;  %v413_v50 = vand.u32 %v4297_v26, %v4928_v14  ;;  %v419_v51 = vand.u32 %v4299_v30, %v4928_v14  ;;  %v64_v54 = vld [vmem:[%s6635_s0 + $0x10] sm:$0x3]  ;;  %v65_v55 = vld [vmem:[%s6635_s0 + $0x12] sm:$0x3]  ;;  %v66_v56 = vld [vmem:[%s6635_s0 + $0x14] sm:$0x3]  ;;  %p4818_p2 = scmp.ne.s32.totalorder %s4256_s28, %s4817_s29  ;;  %p4823_p4 = scmp.lt.s32.totalorder %s4817_s29, %s4817_s29 }
  0x31   :  { %v103_v46 = vrot.slane %v89_v40, %v4930_v21  ;;  %463 = vmatpush1.bf16.msra.mxu0 %v4281_v23  ;;  %v113_v52 = vrot.slane %v105_v43, %v4930_v21  ;;  %v67_v60 = vld [vmem:[%s6635_s0 + $0x16] sm:$0x3]  ;;  %v69_v62 = vld [vmem:[%s6635_s0 + $0x1a] sm:$0x3]  ;;  %v4272_v63 = vcombine.high %v165_v48, %v173_v49  ;;  %v70_v2 = vld [vmem:[%s6635_s0 + $0x1c] sm:$0x3]  ;;  %v122_v4 = vcombine.low %v64_v54, %v65_v55 }
  0x32   :  { %516 = vmatpush1.bf16.msra.mxu1 %v4283_v35  ;;  %464 = vmatprep.subr.bf16.mxu0 %v416_v36  ;;  %v120_v58 = vrot.slane %v106_v47, %v4930_v21  ;;  %v188_v1 = vld [vmem:[#allocation2 + $0xd0] sm:$0xff]  ;;  %v71_v3 = vld [vmem:[%s6635_s0 + $0x1e] sm:$0x3]  ;;  %v123_v5 = vcombine.low %v66_v56, %v67_v60  ;;  %v139_v6 = vcombine.low %v68_v61, %v69_v62  ;;  %v197_v18 = vld [vmem:[#allocation2 + $0x118] sm:$0x11]  ;;  %vm4247_vm6 = vcmask 25600   ;;  %p4824_p5 = por %p4823_p4, %p4822_p3 }
  0x33   :  { %v104_v57 = vcombine.low %v96_v42, %v103_v46  ;;  %517 = vmatprep.subr.bf16.mxu1 %v422_v41  ;;  %v140_v9 = vcombine.low %v70_v2, %v71_v3  ;;  %v196_v10 = vld [vmem:[#allocation2 + $0x110] sm:$0x11]  ;;  %v4271_v11 = vcombine.low %v165_v48, %v173_v49  ;;  %v130_v12 = vrot.slane %v122_v4, %v4930_v21  ;;  %v181_v16 = vld [vmem:[#allocation2 + $0x98] sm:$0xff]  ;;  %v166_v34 = vld [vmem:[#allocation2 + $0x20] sm:$0xff] }
  0x34   :  { %v121_v7 = vcombine.low %v113_v52, %v120_v58  ;;  %v137_v13 = vrot.slane %v123_v5, %v4930_v21  ;;  %v147_v15 = vrot.slane %v139_v6, %v4930_v21  ;;  %v189_v17 = vld [vmem:[#allocation2 + $0xd8] sm:$0xff]  ;;  %v4286_v20 = vcombine.high %v180_v53, %v188_v1  ;;  %v174_v36 = vld [vmem:[#allocation2 + $0x60] sm:$0xff]  ;;  %v167_v37 = vld [vmem:[#allocation2 + $0x28] sm:$0xff]  ;;  %p4825_p6 = pnand %p4824_p5, %p4818_p2 }
  0x35   :  { %465 = vmatpush1.bf16.msra.mxu0 %v413_v50  ;;  %v154_v22 = vrot.slane %v140_v9, %v4930_v21  ;;  %v4302_v23 = vcombine.high %v196_v10, %v196_v10  ;;  %v4288_v26 = vcombine.high %v181_v16, %v189_v17  ;;  %v4304_v27 = vcombine.high %v197_v18, %v197_v18  ;;  %v175_v39 = vld [vmem:[#allocation2 + $0x68] sm:$0xff]  ;;  %v182_v43 = vld [vmem:[#allocation2 + $0xa0] sm:$0xff]  ;;  %v168_v61 = vld [vmem:[#allocation2 + $0x30] sm:$0xff] }
  0x36   :  { %518 = vmatpush1.bf16.msra.mxu1 %v419_v51  ;;  %v4991_v19 = vpack.c.bf16 %v121_v7, %v104_v57  ;;  %566 = vmatprep.subr.bf16.mxu0 %v4270_v59  ;;  %v138_v24 = vcombine.low %v130_v12, %v137_v13  ;;  %v4285_v28 = vcombine.low %v180_v53, %v188_v1  ;;  %v190_v44 = vld [vmem:[#allocation2 + $0xe0] sm:$0xff]  ;;  %v199_v46 = vld [vmem:[#allocation2 + $0x128] sm:$0x11]  ;;  %v176_v62 = vld [vmem:[#allocation2 + $0x70] sm:$0xff] }
  0x37   :  { %619 = vmatprep.subr.bf16.mxu1 %v4272_v63  ;;  %v155_v25 = vcombine.low %v147_v15, %v154_v22  ;;  %v4301_v29 = vcombine.low %v196_v10, %v196_v10  ;;  %v4287_v30 = vcombine.low %v181_v16, %v189_v17  ;;  %v428_v31 = vand.u32 %v4302_v23, %v4928_v14  ;;  %v198_v45 = vld [vmem:[#allocation2 + $0x120] sm:$0x11]  ;;  %v183_v48 = vld [vmem:[#allocation2 + $0xa8] sm:$0xff]  ;;  %v169_v1 = vld [vmem:[#allocation2 + $0x38] sm:$0xff] }
  0x38   :  { %4313 = vmatmul.mubr.msk.bf16.vlgmr.msra.gmra.mrb[0].mxu0 %vm402_vm1, %v4991_v19  ;;  %v4303_v32 = vcombine.low %v197_v18, %v197_v18  ;;  %v434_v33 = vand.u32 %v4304_v27, %v4928_v14  ;;  %v4274_v41 = vcombine.high %v166_v34, %v174_v36  ;;  %v4276_v42 = vcombine.high %v167_v37, %v175_v39  ;;  %v191_v49 = vld [vmem:[#allocation2 + $0xe8] sm:$0xff]  ;;  %v177_v2 = vld [vmem:[#allocation2 + $0x78] sm:$0xff]  ;;  %v184_v6 = vld [vmem:[#allocation2 + $0xb0] sm:$0xff] }
  0x39   :  { %4315 = vmatmul.mubr.msk.bf16.vlgmr.msra.gmra.mrb[0].mxu1 %vm402_vm1, %v4991_v19  ;;  %567 = vmatpush1.bf16.msra.mxu0 %v4269_v8  ;;  %v5002_v35 = vpack.c.bf16 %v155_v25, %v138_v24  ;;  %v425_v38 = vand.u32 %v4301_v29, %v4928_v14  ;;  %v4273_v47 = vcombine.low %v166_v34, %v174_v36  ;;  %v192_v7 = vld [vmem:[#allocation2 + $0xf0] sm:$0xff]  ;;  %v201_v9 = vld [vmem:[#allocation2 + $0x138] sm:$0x11]  ;;  %v4597_v29 = vld [vmem:[%s6638_s3 + $0x4] ss:$8 sps:$4 sm:$0xff]  }
  0x3a   :  { %620 = vmatpush1.bf16.msra.mxu1 %v4271_v11  ;;  %568 = vmatprep.subr.bf16.mxu0 %v4286_v20  ;;  %v431_v40 = vand.u32 %v4303_v32, %v4928_v14  ;;  %v4275_v50 = vcombine.low %v167_v37, %v175_v39  ;;  %v4290_v51 = vcombine.high %v182_v43, %v190_v44  ;;  %v200_v8 = vld [vmem:[#allocation2 + $0x130] sm:$0x11]  ;;  %v185_v11 = vld [vmem:[#allocation2 + $0xb8] sm:$0xff]  ;;  %v4603_v32 = vld [vmem:[%s6638_s3 + $0x24] ss:$8 sps:$4 sm:$0xff]  }
  0x3b   :  { %502 = vmatprep.mubr.bf16.mxu0 %v6643_v0  ;;  %555 = vmatprep.mubr.bf16.mxu1 %v6643_v0  ;;  %v4306_v52 = vcombine.high %v198_v45, %v198_v45  ;;  %v4308_v53 = vcombine.high %v199_v46, %v199_v46  ;;  %v4292_v54 = vcombine.high %v183_v48, %v191_v49  ;;  %v193_v12 = vld [vmem:[#allocation2 + $0xf8] sm:$0xff] }
  0x3c   :  { %621 = vmatprep.subr.bf16.mxu1 %v4288_v26  ;;  %v4289_v55 = vcombine.low %v182_v43, %v190_v44  ;;  %v4305_v56 = vcombine.low %v198_v45, %v198_v45  ;;  %v4291_v57 = vcombine.low %v183_v48, %v191_v49  ;;  %v4307_v59 = vcombine.low %v199_v46, %v199_v46  ;;  %v4608_v34 = vld [vmem:[%s6638_s3 + $0x30] ss:$8 sps:$4 sm:$0xff]  }
  0x3d   :  { %569 = vmatpush1.bf16.msra.mxu0 %v4285_v28  ;;  %v440_v58 = vand.u32 %v4306_v52, %v4928_v14  ;;  %v446_v60 = vand.u32 %v4308_v53, %v4928_v14  ;;  %v4278_v4 = vcombine.high %v168_v61, %v176_v62  ;;  %v4280_v5 = vcombine.high %v169_v1, %v177_v2 }
  0x3e   :  { %622 = vmatpush1.bf16.msra.mxu1 %v4287_v30  ;;  %570 = vmatprep.subr.bf16.mxu0 %v428_v31  ;;  %v437_v63 = vand.u32 %v4305_v56, %v4928_v14  ;;  %v443_v3 = vand.u32 %v4307_v59, %v4928_v14  ;;  %v4277_v10 = vcombine.low %v168_v61, %v176_v62  ;;  %v4600_v30 = vld [vmem:[%s6638_s3 + $0x14] ss:$8 sps:$4 sm:$0xff]   ;;  %v4602_v31 = vld [vmem:[%s6638_s3 + $0x10] ss:$8 sps:$4 sm:$0xff]  }
  0x3f   :  { %623 = vmatprep.subr.bf16.mxu1 %v434_v33  ;;  %v4279_v13 = vcombine.low %v169_v1, %v177_v2  ;;  %v4294_v15 = vcombine.high %v184_v6, %v192_v7  ;;  %v4310_v16 = vcombine.high %v200_v8, %v200_v8  ;;  %v4312_v17 = vcombine.high %v201_v9, %v201_v9  ;;  %v4606_v33 = vld [vmem:[%s6638_s3 + $0x34] ss:$8 sps:$4 sm:$0xff]  }
  0x40   :  { %4314 = vmatmul.mubr.msk.bf16.gmra.mrb[4].mxu0 %vm402_vm1, %v5002_v35  ;;  %v4296_v18 = vcombine.high %v185_v11, %v193_v12  ;;  %v4293_v20 = vcombine.low %v184_v6, %v192_v7  ;;  %v4309_v22 = vcombine.low %v200_v8, %v200_v8  ;;  %v4295_v23 = vcombine.low %v185_v11, %v193_v12 }
  0x41   :  { %4316 = vmatmul.mubr.msk.bf16.gmra.mrb[4].mxu1 %vm402_vm1, %v5002_v35  ;;  %571 = vmatpush1.bf16.msra.mxu0 %v425_v38  ;;  %v452_v24 = vand.u32 %v4310_v16, %v4928_v14  ;;  %v4311_v25 = vcombine.low %v201_v9, %v201_v9  ;;  %v458_v26 = vand.u32 %v4312_v17, %v4928_v14 }
  0x42   :  { %624 = vmatpush1.bf16.msra.mxu1 %v431_v40  ;;  %598 = vmatprep.mubr.bf16.mxu0 %v6643_v0  ;;  %v449_v27 = vand.u32 %v4309_v22, %v4928_v14 }
  0x43   :  { %651 = vmatprep.mubr.bf16.mxu1 %v6643_v0  ;;  %672 = vmatprep.subr.bf16.mxu0 %v4274_v41  ;;  %v455_v28 = vand.u32 %v4311_v25, %v4928_v14  ;;  %v4599_v14 = vld [vmem:[%s6638_s3] ss:$8 sps:$4 sm:$0xff]  }
  0x44   :  { %725 = vmatprep.subr.bf16.mxu1 %v4276_v42 }
  0x48   :  { %4317 = vmatmul.mubr.msk.bf16.vlgmr.msra.gmra.mrb[8].mxu0 %vm402_vm1, %v4991_v19 }
  0x49   :  { %4319 = vmatmul.mubr.msk.bf16.vlgmr.msra.gmra.mrb[8].mxu1 %vm402_vm1, %v4991_v19  ;;  %673 = vmatpush1.bf16.msra.mxu0 %v4273_v47 }
  0x4a   :  { %726 = vmatpush1.bf16.msra.mxu1 %v4275_v50  ;;  %674 = vmatprep.subr.bf16.mxu0 %v4290_v51 }
  0x4b   :  { %608 = vmatprep.mubr.bf16.mxu0 %v6643_v0  ;;  %661 = vmatprep.mubr.bf16.mxu1 %v6643_v0 }
  0x4c   :  { %727 = vmatprep.subr.bf16.mxu1 %v4292_v54 }
  0x4d   :  { %675 = vmatpush1.bf16.msra.mxu0 %v4289_v55 }
  0x4e   :  { %728 = vmatpush1.bf16.msra.mxu1 %v4291_v57  ;;  %676 = vmatprep.subr.bf16.mxu0 %v440_v58 }
  0x4f   :  { %729 = vmatprep.subr.bf16.mxu1 %v446_v60 }
  0x50   :  { %4318 = vmatmul.mubr.msk.bf16.gmra.mrb[12].mxu0 %vm402_vm1, %v5002_v35 }
  0x51   :  { %4320 = vmatmul.mubr.msk.bf16.gmra.mrb[12].mxu1 %vm402_vm1, %v5002_v35  ;;  %677 = vmatpush1.bf16.msra.mxu0 %v437_v63 }
  0x52   :  { %730 = vmatpush1.bf16.msra.mxu1 %v443_v3  ;;  %704 = vmatprep.mubr.bf16.mxu0 %v6643_v0 }
  0x53   :  { %757 = vmatprep.mubr.bf16.mxu1 %v6643_v0  ;;  %778 = vmatprep.subr.bf16.mxu0 %v4278_v4 }
  0x54   :  { %831 = vmatprep.subr.bf16.mxu1 %v4280_v5 }
  0x58   :  { %4321 = vmatmul.mubr.msk.bf16.vlgmr.msra.gmra.mrb[16].mxu0 %vm402_vm1, %v4991_v19 }
  0x59   :  { %4323 = vmatmul.mubr.msk.bf16.vlgmr.msra.gmra.mrb[16].mxu1 %vm402_vm1, %v4991_v19  ;;  %779 = vmatpush1.bf16.msra.mxu0 %v4277_v10 }
  0x5a   :  { %832 = vmatpush1.bf16.msra.mxu1 %v4279_v13  ;;  %780 = vmatprep.subr.bf16.mxu0 %v4294_v15 }
  0x5b   :  { %714 = vmatprep.mubr.bf16.mxu0 %v6643_v0  ;;  %767 = vmatprep.mubr.bf16.mxu1 %v6643_v0 }
  0x5c   :  { %833 = vmatprep.subr.bf16.mxu1 %v4296_v18 }
  0x5d   :  { %781 = vmatpush1.bf16.msra.mxu0 %v4293_v20 }
  0x5e   :  { %834 = vmatpush1.bf16.msra.mxu1 %v4295_v23  ;;  %782 = vmatprep.subr.bf16.mxu0 %v452_v24 }
  0x5f   :  { %835 = vmatprep.subr.bf16.mxu1 %v458_v26 }
  0x60   :  { %4322 = vmatmul.mubr.msk.bf16.gmra.mrb[20].mxu0 %vm402_vm1, %v5002_v35 }
  0x61   :  { %4324 = vmatmul.mubr.msk.bf16.gmra.mrb[20].mxu1 %vm402_vm1, %v5002_v35  ;;  %783 = vmatpush1.bf16.msra.mxu0 %v449_v27 }
  0x62   :  { %836 = vmatpush1.bf16.msra.mxu1 %v455_v28  ;;  %810 = vmatprep.mubr.bf16.mxu0 %v6643_v0 }
  0x63   :  { %863 = vmatprep.mubr.bf16.mxu1 %v6643_v0  ;;  %2197 = vmatprep.subr.bf16.mxu0 %v4597_v29 }
  0x64   :  { %2291 = vmatprep.subr.bf16.mxu1 %v4597_v29 }
  0x68   :  { %4325 = vmatmul.mubr.msk.bf16.vlgmr.msra.gmra.mrb[24].mxu0 %vm402_vm1, %v4991_v19 }
  0x69   :  { %4327 = vmatmul.mubr.msk.bf16.vlgmr.msra.gmra.mrb[24].mxu1 %vm402_vm1, %v4991_v19  ;;  %2198 = vmatpush1.bf16.msra.mxu0 %v4599_v14  ;;  %v4605_v19 = vld [vmem:[%s6638_s3 + $0x20] ss:$8 sps:$4 sm:$0xff]  }
  0x6a   :  { %2199 = vmatprep.subr.bf16.mxu0 %v4600_v30  ;;  %820 = vmatprep.mubr.bf16.mxu0 %v6643_v0 }
  0x6b   :  { %873 = vmatprep.mubr.bf16.mxu1 %v6643_v0  ;;  %2292 = vmatpush1.bf16.msra.mxu1 %v4599_v14 }
  0x6c   :  { %2293 = vmatprep.subr.bf16.mxu1 %v4600_v30 }
  0x6d   :  { %2200 = vmatpush1.bf16.msra.mxu0 %v4602_v31 }
  0x6e   :  { %2201 = vmatprep.subr.bf16.mxu0 %v4603_v32 }
  0x6f   :  { %2294 = vmatpush1.bf16.msra.mxu1 %v4602_v31 }
  0x70   :  { %4326 = vmatmul.mubr.msk.bf16.gmra.mrb[28].mxu0 %vm402_vm1, %v5002_v35  ;;  %2295 = vmatprep.subr.bf16.mxu1 %v4603_v32 }
  0x71   :  { %4328 = vmatmul.mubr.msk.bf16.gmra.mrb[28].mxu1 %vm402_vm1, %v5002_v35  ;;  %2202 = vmatpush1.bf16.msra.mxu0 %v4605_v19 }
  0x72   :  { %2203 = vmatprep.subr.bf16.mxu0 %v4606_v33  ;;  %2229 = vmatprep.mubr.bf16.mxu0 %v6643_v0 }
  0x73   :  { %2296 = vmatpush1.bf16.msra.mxu1 %v4605_v19  ;;  %2323 = vmatprep.mubr.bf16.mxu1 %v6643_v0 }
  0x74   :  { %2297 = vmatprep.subr.bf16.mxu1 %v4606_v33 }
  0x75   :  { %2204 = vmatpush1.bf16.msra.mxu0 %v4608_v34 }
  0x76   :  { %2385 = vmatprep.subr.bf16.mxu0 %v4597_v29 }
  0x77   :  { %2298 = vmatpush1.bf16.msra.mxu1 %v4608_v34 }
  0x78   :  { %2230 = vmatmul.mubr.bf16.vlgmr.msra.gmra.mrb[32].mxu0 %v6643_v0  ;;  %2479 = vmatprep.subr.bf16.mxu1 %v4597_v29 }
  0x79   :  { %2386 = vmatpush1.bf16.msra.mxu0 %v4599_v14  ;;  %2417 = vmatprep.mubr.bf16.mxu0 %v6643_v0 }
  0x7a   :  { %2387 = vmatprep.subr.bf16.mxu0 %v4600_v30 }
  0x7d   :  { %2388 = vmatpush1.bf16.msra.mxu0 %v4602_v31 }
  0x7e   :  { %2389 = vmatprep.subr.bf16.mxu0 %v4603_v32 }
  0x81   :  { %2390 = vmatpush1.bf16.msra.mxu0 %v4605_v19 }
  0x82   :  { %2391 = vmatprep.subr.bf16.mxu0 %v4606_v33 }
  0x85   :  { %2392 = vmatpush1.bf16.msra.mxu0 %v4608_v34 }
  0x86   :  { %2573 = vmatprep.subr.bf16.mxu0 %v4597_v29 }
 0x10b   :  { %v494_v35 = vpop.f32.mrb[0].mxu0 }
 0x10c   :  { %v547_v36 = vpop.f32.mrb[0].mxu1  ;;  %v496_v37 = vpop.f32.mrb[1].mxu0 }
 0x10d   :  { %v948_v38 = vcombine.low %v494_v35, %v496_v37  ;;  %v949_v39 = vcombine.high %v494_v35, %v496_v37  ;;  %v549_v40 = vpop.f32.mrb[1].mxu1  ;;  %v498_v41 = vpop.f32.mrb[2].mxu0 }
 0x10e   :  { %v950_v42 = vcombine.low %v547_v36, %v549_v40  ;;  %v951_v43 = vcombine.high %v547_v36, %v549_v40  ;;  %v551_v44 = vpop.f32.mrb[2].mxu1  ;;  %v500_v45 = vpop.f32.mrb[3].mxu0 }
 0x10f   :  { %v958_v46 = vrot.slane %v948_v38, %v4930_v21  ;;  %v965_v47 = vrot.slane %v949_v39, %v4930_v21  ;;  %v1092_v48 = vcombine.low %v498_v41, %v500_v45  ;;  %v1093_v49 = vcombine.high %v498_v41, %v500_v45  ;;  %v553_v50 = vpop.f32.mrb[3].mxu1 }
 0x110   :  { %v972_v51 = vrot.slane %v950_v42, %v4930_v21  ;;  %v979_v52 = vrot.slane %v951_v43, %v4930_v21  ;;  %v1094_v53 = vcombine.low %v551_v44, %v553_v50  ;;  %v1095_v54 = vcombine.high %v551_v44, %v553_v50 }
 0x111   :  { %v1102_v59 = vrot.slane %v1092_v48, %v4930_v21  ;;  %v1109_v60 = vrot.slane %v1093_v49, %v4930_v21 }
 0x112   :  { %v980_v55 = vcombine.low %v958_v46, %v972_v51  ;;  %v5086_v56 = vcombine.high %v958_v46, %v972_v51  ;;  %v5088_v57 = vcombine.low %v965_v47, %v979_v52  ;;  %v5090_v58 = vcombine.high %v965_v47, %v979_v52 }
 0x113   :  { %v1116_v61 = vrot.slane %v1094_v53, %v4930_v21  ;;  %v1123_v62 = vrot.slane %v1095_v54, %v4930_v21  ;;  %v504_v63 = vpop.f32.mrb[4].mxu0 }
 0x114   :  { %6687 = vst [vmem:[#allocation11_spill] sm:$0xff] %v5088_v57  ;;  %6688 = vst [vmem:[#allocation12_spill] sm:$0xff] %v5090_v58  ;;  %v1578_v1 = vrot.slane %v5086_v56, 2  ;;  %v1579_v2 = vrot.slane %v5088_v57, 2  ;;  %v1580_v3 = vrot.slane %v5090_v58, 2  ;;  %v1668_v4 = vrot.slane %v980_v55, 4 }
 0x115   :  { %v557_v5 = vpop.f32.mrb[4].mxu1  ;;  %v506_v6 = vpop.f32.mrb[5].mxu0  ;;  %v1696_v7 = vrot.slane %v5086_v56, 6  ;;  %v5114_v17 = vcombine.low %v1102_v59, %v1116_v61  ;;  %v5116_v18 = vcombine.high %v1102_v59, %v1116_v61  ;;  %v5118_v22 = vcombine.low %v1109_v60, %v1123_v62 }
 0x116   :  { %v559_v8 = vpop.f32.mrb[5].mxu1  ;;  %v5100_v9 = vpop.f32.mrb[6].mxu0  ;;  %v1608_v10 = vadd.f32 %v1578_v1, %v980_v55  ;;  %v5103_v11 = vadd.f32 %v1579_v2, %v5086_v56  ;;  %v5106_v12 = vadd.f32 %v1580_v3, %v5088_v57  ;;  %v5120_v23 = vcombine.high %v1109_v60, %v1123_v62 }
 0x117   :  { %v5108_v13 = vpop.f32.mrb[6].mxu1  ;;  %v5110_v15 = vpop.f32.mrb[7].mxu0  ;;  %v5112_v16 = vadd.f32 %v1696_v7, %v1668_v4  ;;  %6689 = vst [vmem:[#allocation13_spill] sm:$0xff] %v5114_v17  ;;  %6690 = vst [vmem:[#allocation14_spill] sm:$0xff] %v5118_v22  ;;  %v1581_v24 = vrot.slane %v5114_v17, 2  ;;  %v1582_v25 = vrot.slane %v5116_v18, 2  ;;  %v1236_v37 = vcombine.low %v504_v63, %v506_v6 }
 0x118   :  { %v563_v20 = vpop.f32.mrb[7].mxu1  ;;  %6691 = vst [vmem:[#allocation15_spill] sm:$0xff] %v5120_v23  ;;  %v1583_v26 = vrot.slane %v5118_v22, 2  ;;  %v1584_v27 = vrot.slane %v5120_v23, 2  ;;  %v1669_v35 = vrot.slane %v5086_v56, 4  ;;  %v1697_v41 = vrot.slane %v5088_v57, 6 }
 0x119   :  { %v5127_v28 = vadd.f32 %v1581_v24, %v5090_v58  ;;  %v5130_v29 = vadd.f32 %v1582_v25, %v5114_v17  ;;  %v1237_v42 = vcombine.high %v504_v63, %v506_v6  ;;  %v1238_v43 = vcombine.low %v557_v5, %v559_v8 }
 0x11a   :  { %v5135_v30 = vadd.f32 %v1583_v26, %v5116_v18  ;;  %v5142_v19 = vadd.f32 %v1584_v27, %v5118_v22  ;;  %v1623_v45 = vmax.f32 %v1608_v10, 0.0  ;;  %v1246_v46 = vrot.slane %v1236_v37, %v4930_v21 }
 0x11b   :  { %6692 = vst [vmem:[#allocation16_spill] sm:$0xff] %v5127_v28  ;;  %v5132_v14 = vpop.f32.mrb[8].mxu0  ;;  %v1239_v47 = vcombine.high %v557_v5, %v559_v8  ;;  %v1380_v48 = vcombine.low %v5100_v9, %v5110_v15  ;;  %v1253_v50 = vrot.slane %v1237_v42, %v4930_v21  ;;  %v1260_v51 = vrot.slane %v1238_v43, %v4930_v21 }
 0x11c   :  { %v5137_v31 = vpop.f32.mrb[8].mxu1  ;;  %v5139_v32 = vpop.f32.mrb[9].mxu0  ;;  %v1381_v52 = vcombine.high %v5100_v9, %v5110_v15  ;;  %v1624_v53 = vmax.f32 %v5103_v11, 0.0  ;;  %v1382_v55 = vcombine.low %v5108_v13, %v563_v20  ;;  %v1383_v59 = vcombine.high %v5108_v13, %v563_v20 }
 0x11d   :  { %v5144_v33 = vpop.f32.mrb[9].mxu1  ;;  %v5146_v34 = vpop.f32.mrb[10].mxu0  ;;  %v1267_v54 = vrot.slane %v1239_v47, %v4930_v21  ;;  %v1625_v60 = vmax.f32 %v5106_v12, 0.0  ;;  %v5171_v61 = vcombine.low %v1246_v46, %v1260_v51  ;;  %v5173_v62 = vcombine.high %v1246_v46, %v1260_v51 }
 0x11e   :  { %v5150_v38 = vpop.f32.mrb[10].mxu1  ;;  %v5152_v39 = vpop.f32.mrb[11].mxu0  ;;  %v984_v63 = vcombine.low %v5132_v14, %v5139_v32  ;;  %v5180_v2 = vsel %vm1638_vm2, %v1623_v45, -inf  ;;  %v1390_v10 = vrot.slane %v1380_v48, %v4930_v21  ;;  %v1404_v11 = vrot.slane %v1382_v55, %v4930_v21 }
 0x11f   :  { %v5156_v44 = vpop.f32.mrb[11].mxu1  ;;  %6693 = vst [vmem:[#allocation17_spill] sm:$0xff] %v5171_v61  ;;  %6694 = vst [vmem:[#allocation18_spill] sm:$0xff] %v5173_v62  ;;  %v5183_v4 = vcombine.low %v1253_v50, %v1267_v54  ;;  %v5185_v5 = vcombine.high %v1253_v50, %v1267_v54  ;;  %v1585_v8 = vrot.slane %v5171_v61, 2  ;;  %v1586_v9 = vrot.slane %v5173_v62, 2 }
 0x120   :  { %6695 = vst [vmem:[#allocation19_spill] sm:$0xff] %v5180_v2  ;;  %v1397_v24 = vrot.slane %v1381_v52, %v4930_v21  ;;  %v1411_v25 = vrot.slane %v1383_v59, %v4930_v21  ;;  %v5208_v37 = vsel %vm1638_vm2, %v1624_v53, -inf  ;;  %v5211_v42 = vsel %vm1638_vm2, %v1625_v60, -inf }
 0x121   :  { %6696 = vst [vmem:[#allocation20_spill] sm:$0xff] %v5183_v4  ;;  %6697 = vst [vmem:[#allocation21_spill] sm:$0xff] %v5185_v5  ;;  %v1587_v15 = vrot.slane %v5183_v4, 2  ;;  %v1588_v20 = vrot.slane %v5185_v5, 2  ;;  %v5214_v43 = vadd.f32 %v1585_v8, %v5120_v23  ;;  %v5217_v45 = vadd.f32 %v1586_v9, %v5171_v61 }
 0x122   :  { %6698 = vst [vmem:[#allocation22_spill] sm:$0xff] %v5208_v37  ;;  %6699 = vst [vmem:[#allocation23_spill] sm:$0xff] %v5211_v42  ;;  %v5231_v54 = vcombine.low %v1390_v10, %v1404_v11  ;;  %v5233_v55 = vcombine.high %v1390_v10, %v1404_v11  ;;  %v1627_v60 = vmax.f32 %v5130_v29, 0.0  ;;  %v5237_v8 = vcombine.low %v1397_v24, %v1411_v25 }
 0x123   :  { %v5177_v1 = vpop.f32.mrb[12].mxu0  ;;  %6700 = vst [vmem:[#allocation24_spill] sm:$0xff] %v5214_v43  ;;  %6701 = vst [vmem:[#allocation25_spill] sm:$0xff] %v5217_v45  ;;  %v5224_v50 = vadd.f32 %v1587_v15, %v5173_v62  ;;  %v5227_v51 = vadd.f32 %v1588_v20, %v5183_v4  ;;  %v1415_v9 = vcombine.high %v1397_v24, %v1411_v25  ;;  %v1628_v15 = vmax.f32 %v5135_v30, 0.0 }
 0x124   :  { %v5187_v6 = vpop.f32.mrb[12].mxu1  ;;  %v5189_v7 = vpop.f32.mrb[13].mxu0  ;;  %6704 = vst [vmem:[#allocation28_spill] sm:$0xff] %v5231_v54  ;;  %v1590_v0 = vrot.slane %v5233_v55, 2  ;;  %v985_v52 = vcombine.high %v5132_v14, %v5139_v32  ;;  %v1629_v10 = vmax.f32 %v5142_v19, 0.0  ;;  %v1591_v11 = vrot.slane %v5237_v8, 2 }
 0x125   :  { %v5195_v12 = vpop.f32.mrb[13].mxu1  ;;  %v5197_v13 = vpop.f32.mrb[14].mxu0  ;;  %6702 = vst [vmem:[#allocation26_spill] sm:$0xff] %v5224_v50  ;;  %6703 = vst [vmem:[#allocation27_spill] sm:$0xff] %v5227_v51  ;;  %v1592_v59 = vrot.slane %v1415_v9, 2  ;;  %v994_v29 = vrot.slane %v984_v63, %v4930_v21  ;;  %v986_v14 = vcombine.low %v5137_v31, %v5144_v33  ;;  %v987_v32 = vcombine.high %v5137_v31, %v5144_v33 }
 0x126   :  { %v5203_v26 = vpop.f32.mrb[14].mxu1  ;;  %v5205_v27 = vpop.f32.mrb[15].mxu0  ;;  %v5254_v30 = vadd.f32 %v1590_v0, %v5231_v54  ;;  %v1001_v25 = vrot.slane %v985_v52, %v4930_v21  ;;  %v5266_v63 = vadd.f32 %v1591_v11, %v5233_v55  ;;  %v1725_v0 = vadd.f32 %v1697_v41, %v1669_v35 }
 0x127   :  { %v5219_v46 = vpop.f32.mrb[15].mxu1  ;;  %v5269_v40 = vadd.f32 %v1592_v59, %v5237_v8  ;;  %v1128_v52 = vcombine.low %v5146_v34, %v5152_v39  ;;  %v1701_v33 = vrot.slane %v5118_v22, 6  ;;  %v1008_v11 = vrot.slane %v986_v14, %v4930_v21 }
 0x128   :  { %6705 = vst [vmem:[#allocation29_spill] sm:$0xff] %v5254_v30  ;;  %6706 = vst [vmem:[#allocation30_spill] sm:$0xff] %v5266_v63  ;;  %v1015_v36 = vrot.slane %v987_v32, %v4930_v21  ;;  %v1129_v59 = vcombine.high %v5146_v34, %v5152_v39  ;;  %v5289_v35 = vsel %vm1638_vm2, %v1627_v60, -inf  ;;  %v5292_v41 = vsel %vm1638_vm2, %v1628_v15, -inf }
 0x129   :  { %6707 = vst [vmem:[#allocation31_spill] sm:$0xff] %v5289_v35  ;;  %6708 = vst [vmem:[#allocation32_spill] sm:$0xff] %v5292_v41  ;;  %v1130_v20 = vcombine.low %v5150_v38, %v5156_v44  ;;  %v1016_v3 = vcombine.low %v994_v29, %v1008_v11  ;;  %v1017_v14 = vcombine.high %v994_v29, %v1008_v11  ;;  %v5300_v34 = vsel %vm1638_vm2, %v1629_v10, -inf }
 0x12a   :  { %v1018_v42 = vcombine.low %v1001_v25, %v1015_v36  ;;  %v5297_v32 = vcombine.high %v1001_v25, %v1015_v36  ;;  %6709 = vst [vmem:[#allocation33_spill] sm:$0xff] %v5300_v34  ;;  %v1138_v39 = vrot.slane %v1128_v52, %v4930_v21  ;;  %v1131_v60 = vcombine.high %v5150_v38, %v5156_v44 }
 0x12b   :  { %v5244_v48 = vpop.f32.mrb[16].mxu0  ;;  %v1152_v15 = vrot.slane %v1130_v20, %v4930_v21  ;;  %v1793_v29 = vrot.slane %v1016_v3, 2  ;;  %v1794_v11 = vrot.slane %v1017_v14, 2  ;;  %v1819_v10 = vrot.slane %v1017_v14, 4 }
 0x12c   :  { %v5249_v53 = vpop.f32.mrb[16].mxu1  ;;  %v5251_v24 = vpop.f32.mrb[17].mxu0  ;;  %v5307_v47 = vadd.f32 %v5112_v16, %v1018_v42  ;;  %v5310_v37 = vadd.f32 %v1725_v0, %v5297_v32  ;;  %v1795_v25 = vrot.slane %v1018_v42, 2  ;;  %v1820_v34 = vrot.slane %v1018_v42, 4 }
 0x12d   :  { %v5261_v19 = vpop.f32.mrb[17].mxu1  ;;  %v5263_v9 = vpop.f32.mrb[18].mxu0  ;;  %v1145_v52 = vrot.slane %v1129_v59, %v4930_v21  ;;  %v1821_v20 = vrot.slane %v5297_v32, 4  ;;  %v1858_v0 = vrot.slane %v1018_v42, 6  ;;  %v1845_v35 = vadd.f32 %v1819_v10, %v1793_v29 }
 0x12e   :  { %v5277_v49 = vpop.f32.mrb[18].mxu1  ;;  %v5279_v31 = vpop.f32.mrb[19].mxu0  ;;  %6710 = vst [vmem:[#allocation34_spill] sm:$0xff] %v5307_v47  ;;  %6711 = vst [vmem:[#allocation35_spill] sm:$0xff] %v5310_v37  ;;  %v1846_v14 = vadd.f32 %v1820_v34, %v1794_v11  ;;  %v1859_v28 = vrot.slane %v5297_v32, 6  ;;  %v1159_v59 = vrot.slane %v1131_v60, %v4930_v21  ;;  %v5334_v16 = vcombine.low %v1138_v39, %v1152_v15 }
 0x12f   :  { %v5286_v56 = vpop.f32.mrb[19].mxu1  ;;  %v5332_v44 = vadd.f32 %v1821_v20, %v1795_v25  ;;  %v5336_v58 = vcombine.high %v1138_v39, %v1152_v15  ;;  %v6714_v42 = vrot.slane %v5114_v17, 4  ;;  %v6715_v57 = vrot.slane %v5116_v18, 6 }
 0x130   :  { %6712 = vst [vmem:[#allocation36_spill] sm:$0xff] %v5334_v16  ;;  %v5344_v11 = vadd.f32 %v1858_v0, %v1845_v35  ;;  %v5346_v60 = vadd.f32 %v1859_v28, %v1846_v14  ;;  %v5348_v10 = vcombine.low %v1145_v52, %v1159_v59  ;;  %v5350_v37 = vcombine.high %v1145_v52, %v1159_v59 }
 0x131   :  { %6713 = vst [vmem:[#allocation37_spill] sm:$0xff] %v5336_v58  ;;  %v1728_v29 = vadd.f32 %v6715_v57, %v6714_v42  ;;  %v6716_v20 = vrot.slane %v5116_v18, 4  ;;  %v1709_v57 = vrot.slane %v5237_v8, 6  ;;  %v1273_v25 = vcombine.high %v5177_v1, %v5189_v7 }
 0x132   :  { %v1799_v0 = vrot.slane %v5348_v10, 2  ;;  %v1825_v42 = vrot.slane %v5350_v37, 4  ;;  %v1274_v14 = vcombine.low %v5187_v6, %v5195_v12  ;;  %v1418_v51 = vcombine.low %v5203_v26, %v5219_v46 }
 0x133   :  { %v5312_v36 = vpop.f32.mrb[20].mxu0  ;;  %v1729_v17 = vadd.f32 %v1701_v33, %v6716_v20  ;;  %v5360_v28 = vadd.f32 %v1728_v29, %v5348_v10  ;;  %v1637_v29 = vmax.f32 %v5269_v40, 0.0  ;;  %v1272_v20 = vcombine.low %v5177_v1, %v5189_v7 }
 0x134   :  { %v5315_v41 = vpop.f32.mrb[20].mxu1  ;;  %v5317_v38 = vpop.f32.mrb[21].mxu0  ;;  %v5382_v15 = vadd.f32 %v1825_v42, %v1799_v0  ;;  %v1275_v0 = vcombine.high %v5187_v6, %v5195_v12  ;;  %v1416_v42 = vcombine.low %v5197_v13, %v5205_v27  ;;  %v1417_v40 = vcombine.high %v5197_v13, %v5205_v27 }
 0x135   :  { %v5322_v3 = vpop.f32.mrb[21].mxu1  ;;  %v5324_v2 = vpop.f32.mrb[22].mxu0  ;;  %6717 = vst [vmem:[#allocation38_spill] sm:$0xff] %v5360_v28  ;;  %v5366_v59 = vadd.f32 %v1729_v17, %v5350_v37  ;;  %v1707_v17 = vrot.slane %v5231_v54, 6  ;;  %v1282_v7 = vrot.slane %v1272_v20, %v4930_v21  ;;  %v1289_v50 = vrot.slane %v1273_v25, %v4930_v21 }
 0x136   :  { %v5328_v23 = vpop.f32.mrb[22].mxu1  ;;  %v5330_v22 = vpop.f32.mrb[23].mxu0  ;;  %v1296_v45 = vrot.slane %v1274_v14, %v4930_v21  ;;  %v1419_v6 = vcombine.high %v5203_v26, %v5219_v46  ;;  %v1822_v12 = vrot.slane %v5334_v16, 4  ;;  %v1303_v43 = vrot.slane %v1275_v0, %v4930_v21 }
 0x137   :  { %v5342_v34 = vpop.f32.mrb[23].mxu1  ;;  %6718 = vst [vmem:[#allocation39_spill] sm:$0xff] %v5366_v59  ;;  %v1426_v13 = vrot.slane %v1416_v42, %v4930_v21  ;;  %v1440_v27 = vrot.slane %v1418_v51, %v4930_v21  ;;  %v1433_v20 = vrot.slane %v1417_v40, %v4930_v21  ;;  %v1796_v42 = vrot.slane %v5297_v32, 2 }
 0x138   :  { %v5418_v4 = vcombine.low %v1282_v7, %v1296_v45  ;;  %v5420_v62 = vcombine.high %v1282_v7, %v1296_v45  ;;  %v1447_v25 = vrot.slane %v1419_v6, %v4930_v21  ;;  %v5424_v14 = vcombine.low %v1289_v50, %v1303_v43 }
 0x139   :  { %v5426_v61 = vcombine.high %v1289_v50, %v1303_v43  ;;  %v5428_v26 = vcombine.low %v1426_v13, %v1440_v27  ;;  %v5430_v46 = vcombine.high %v1426_v13, %v1440_v27  ;;  %v1797_v45 = vrot.slane %v5334_v16, 2 }
 0x13a   :  { %v1823_v40 = vrot.slane %v5336_v58, 4  ;;  %v5443_v43 = vsel %vm1638_vm2, %v1637_v29, -inf  ;;  %v1798_v13 = vrot.slane %v5336_v58, 2  ;;  %v1680_v27 = vrot.slane %v5231_v54, 4 }
 0x13b   :  { %v5369_v18 = vpop.f32.mrb[24].mxu0  ;;  %6722 = vst [vmem:[#allocation43_spill] sm:$0xff] %v5443_v43  ;;  %v1824_v59 = vrot.slane %v5348_v10, 4  ;;  %v5454_v28 = vadd.f32 %v1822_v12, %v1796_v42  ;;  %v1451_v50 = vcombine.high %v1433_v20, %v1447_v25  ;;  %v1681_v47 = vrot.slane %v5233_v55, 4 }
 0x13c   :  { %v5375_v35 = vpop.f32.mrb[24].mxu1  ;;  %v5377_v52 = vpop.f32.mrb[25].mxu0  ;;  %v1708_v54 = vrot.slane %v5233_v55, 6  ;;  %v1849_v63 = vadd.f32 %v1823_v40, %v1797_v45  ;;  %v1860_v12 = vrot.slane %v5334_v16, 6  ;;  %v1861_v42 = vrot.slane %v5336_v58, 6 }
 0x13d   :  { %v5384_v39 = vpop.f32.mrb[25].mxu1  ;;  %v5386_v33 = vpop.f32.mrb[26].mxu0  ;;  %v1021_v55 = vcombine.high %v5244_v48, %v5251_v24  ;;  %v1164_v45 = vcombine.low %v5263_v9, %v5279_v31  ;;  %v5484_v40 = vadd.f32 %v1824_v59, %v1798_v13  ;;  %v1167_v13 = vcombine.high %v5277_v49, %v5286_v56 }
 0x13e   :  { %v5395_v30 = vpop.f32.mrb[26].mxu1  ;;  %v5397_v8 = vpop.f32.mrb[27].mxu0 }
 0x13f   :  { %v5407_v1 = vpop.f32.mrb[27].mxu1  ;;  %v1195_v58 = vrot.slane %v1167_v13, %v4930_v21 }
 0x143   :  { %v5432_v0 = vpop.f32.mrb[28].mxu0 }
 0x144   :  { %6719 = vst [vmem:[#allocation40_spill] sm:$0xff] %v5432_v0  ;;  %v5438_v7 = vpop.f32.mrb[28].mxu1  ;;  %v5440_v6 = vpop.f32.mrb[29].mxu0 }
 0x145   :  { %6720 = vst [vmem:[#allocation41_spill] sm:$0xff] %v5438_v7  ;;  %6721 = vst [vmem:[#allocation42_spill] sm:$0xff] %v5440_v6  ;;  %v5448_v51 = vpop.f32.mrb[29].mxu1  ;;  %v5450_v32 = vpop.f32.mrb[30].mxu0  ;;  %v5456_v7 = vcombine.low %v1433_v20, %v1447_v25  ;;  %v1736_v6 = vadd.f32 %v1708_v54, %v1680_v27  ;;  %v1022_v25 = vcombine.low %v5249_v53, %v5261_v19 }
 0x146   :  { %6723 = vst [vmem:[#allocation44_spill] sm:$0xff] %v5448_v51  ;;  %6724 = vst [vmem:[#allocation45_spill] sm:$0xff] %v5450_v32  ;;  %v5458_v29 = vpop.f32.mrb[30].mxu1  ;;  %v5460_v43 = vpop.f32.mrb[31].mxu0  ;;  %v6727_v51 = vrot.slane %v5185_v5, 4 }
 0x147   :  { %6725 = vst [vmem:[#allocation46_spill] sm:$0xff] %v5458_v29  ;;  %6726 = vst [vmem:[#allocation47_spill] sm:$0xff] %v5460_v43  ;;  %v5466_v0 = vpop.f32.mrb[31].mxu1  ;;  %v1020_v29 = vcombine.low %v5244_v48, %v5251_v24  ;;  %v1737_v43 = vadd.f32 %v1709_v57, %v1681_v47  ;;  %v5487_v47 = vadd.f32 %v1736_v6, %v5456_v7  ;;  %v1862_v57 = vrot.slane %v5348_v10, 6 }
 0x148   :  { %v1735_v32 = vadd.f32 %v1707_v17, %v6727_v51  ;;  %v1023_v51 = vcombine.high %v5249_v53, %v5261_v19  ;;  %v1037_v48 = vrot.slane %v1021_v55, %v4930_v21  ;;  %v1044_v27 = vrot.slane %v1022_v25, %v4930_v21 }
 0x149   :  { %v1030_v17 = vrot.slane %v1020_v29, %v4930_v21  ;;  %6729 = vst [vmem:[#allocation49_spill] sm:$0xff] %v5487_v47  ;;  %v5489_v54 = vadd.f32 %v1737_v43, %v1451_v50  ;;  %v1165_v19 = vcombine.high %v5263_v9, %v5279_v31  ;;  %v1863_v6 = vrot.slane %v5350_v37, 6 }
 0x14a   :  { %v5473_v20 = vadd.f32 %v1735_v32, %v5430_v46  ;;  %v1051_v53 = vrot.slane %v1023_v51, %v4930_v21  ;;  %v1174_v43 = vrot.slane %v1164_v45, %v4930_v21  ;;  %v1166_v50 = vcombine.low %v5277_v49, %v5286_v56 }
 0x14b   :  { %6730 = vst [vmem:[#allocation50_spill] sm:$0xff] %v5489_v54  ;;  %v5492_v24 = vpop.f32.mrb[32].mxu0  ;;  %v1052_v32 = vcombine.low %v1030_v17, %v1044_v27  ;;  %v1053_v29 = vcombine.high %v1030_v17, %v1044_v27  ;;  %v1801_v31 = vrot.slane %v5418_v4, 2  ;;  %v1181_v51 = vrot.slane %v1165_v19, %v4930_v21 }
 0x14c   :  { %6728 = vst [vmem:[#allocation48_spill] sm:$0xff] %v5473_v20  ;;  %6731 = vst [vmem:[#allocation51_spill] sm:$0xff] %v5492_v24  ;;  %v5499_v59 = vpop.f32.mrb[33].mxu0  ;;  %v5507_v55 = vcombine.low %v1037_v48, %v1051_v53  ;;  %v5509_v25 = vcombine.high %v1037_v48, %v1051_v53  ;;  %v1188_v45 = vrot.slane %v1166_v50, %v4930_v21  ;;  %v1826_v48 = vrot.slane %v5418_v4, 4 }
 0x14d   :  { %6732 = vst [vmem:[#allocation52_spill] sm:$0xff] %v5499_v59  ;;  %v2235_v10 = vpop.f32.mrb[34].mxu0  ;;  %v1948_v49 = vrot.slane %v1052_v32, 2  ;;  %v1949_v56 = vrot.slane %v1053_v29, 2  ;;  %v1972_v27 = vrot.slane %v1053_v29, 4  ;;  %v1827_v19 = vrot.slane %v5420_v62, 4 }
 0x14e   :  { %6733 = vst [vmem:[#allocation53_spill] sm:$0xff] %v5507_v55  ;;  %v2236_v9 = vpop.f32.mrb[35].mxu0  ;;  %v5517_v16 = vadd.f32 %v5344_v11, %v5509_v25  ;;  %v1950_v17 = vrot.slane %v5507_v55, 2  ;;  %v1973_v53 = vrot.slane %v5507_v55, 4  ;;  %v1974_v10 = vrot.slane %v5509_v25, 4 }
 0x14f   :  { %v2009_v50 = vrot.slane %v5509_v25, 6  ;;  %v5525_v13 = vcombine.low %v1174_v43, %v1188_v45  ;;  %v1886_v11 = vadd.f32 %v1860_v12, %v5332_v44  ;;  %v5528_v9 = vadd.f32 %v1972_v27, %v1948_v49 }
 0x150   :  { %v1997_v32 = vadd.f32 %v1973_v53, %v1949_v56  ;;  %v5530_v5 = vadd.f32 %v1974_v10, %v1950_v17  ;;  %v5532_v54 = vcombine.high %v1174_v43, %v1188_v45  ;;  %v5534_v29 = vcombine.low %v1181_v51, %v1195_v58 }
 0x151   :  { %v5536_v47 = vcombine.high %v1181_v51, %v1195_v58  ;;  %v1887_v20 = vadd.f32 %v1861_v42, %v5454_v28  ;;  %v1888_v55 = vadd.f32 %v1862_v57, %v1849_v63  ;;  %v5544_v44 = vadd.f32 %v5346_v60, %v5525_v13 }
 0x152   :  { %v5540_v59 = vadd.f32 %v2009_v50, %v1997_v32  ;;  %v5547_v12 = vadd.f32 %v1886_v11, %v5532_v54  ;;  %v1864_v45 = vrot.slane %v5418_v4, 6  ;;  %v6734_v28 = vrot.slane %v5350_v37, 2 }
 0x153   :  { %v5552_v58 = vadd.f32 %v1887_v20, %v5534_v29  ;;  %v5555_v63 = vadd.f32 %v1888_v55, %v5536_v47  ;;  %v1853_v57 = vadd.f32 %v1827_v19, %v1801_v31  ;;  %v1865_v60 = vrot.slane %v5420_v62, 6 }
 0x154   :  { %v1852_v42 = vadd.f32 %v1826_v48, %v6734_v28  ;;  %v1866_v51 = vrot.slane %v5424_v14, 6  ;;  %v1831_v56 = vrot.slane %v5430_v46, 4  ;;  %v1869_v17 = vrot.slane %v5430_v46, 6 }
 0x155   :  { %v1870_v20 = vrot.slane %v5456_v7, 6  ;;  %v1910_v27 = vmax.f32 %v5517_v16, 0.0  ;;  %v1951_v55 = vrot.slane %v5509_v25, 2  ;;  %v1308_v53 = vcombine.low %v5312_v36, %v5317_v38 }
 0x156   :  { %v1309_v10 = vcombine.high %v5312_v36, %v5317_v38  ;;  %v1310_v19 = vcombine.low %v5315_v41, %v5322_v3  ;;  %v1912_v50 = vmax.f32 %v5547_v12, 0.0  ;;  %v1311_v32 = vcombine.high %v5315_v41, %v5322_v3 }
 0x157   :  { %v1889_v28 = vadd.f32 %v1863_v6, %v5484_v40  ;;  %v1975_v49 = vrot.slane %v5525_v13, 4  ;;  %v1318_v43 = vrot.slane %v1308_v53, %v4930_v21  ;;  %v1452_v12 = vcombine.low %v5324_v2, %v5330_v22 }
 0x158   :  { %v1325_v24 = vrot.slane %v1309_v10, %v4930_v21  ;;  %v1332_v36 = vrot.slane %v1310_v19, %v4930_v21  ;;  %v1339_v38 = vrot.slane %v1311_v32, %v4930_v21  ;;  %v1453_v11 = vcombine.high %v5324_v2, %v5330_v22 }
 0x159   :  { %v1454_v41 = vcombine.low %v5328_v23, %v5342_v34  ;;  %v1890_v6 = vadd.f32 %v1864_v45, %v5382_v15  ;;  %v1455_v53 = vcombine.high %v5328_v23, %v5342_v34  ;;  %v1891_v32 = vadd.f32 %v1865_v60, %v1852_v42 }
 0x15a   :  { %v5592_v3 = vcombine.low %v1318_v43, %v1332_v36  ;;  %v5594_v40 = vcombine.high %v1318_v43, %v1332_v36  ;;  %v5599_v10 = vcombine.low %v1325_v24, %v1339_v38  ;;  %v5601_v19 = vcombine.high %v1325_v24, %v1339_v38 }
 0x15b   :  { %v1892_v48 = vadd.f32 %v1866_v51, %v1853_v57  ;;  %v1913_v22 = vmax.f32 %v5552_v58, 0.0  ;;  %v1914_v2 = vmax.f32 %v5555_v63, 0.0  ;;  %v1462_v63 = vrot.slane %v1452_v12, %v4930_v21 }
 0x15c   :  { %v5606_v31 = vadd.f32 %v1889_v28, %v5592_v3  ;;  %v1903_v43 = vadd.f32 %v1890_v6, %v5594_v40  ;;  %v1904_v23 = vadd.f32 %v1891_v32, %v5599_v10  ;;  %v1469_v51 = vrot.slane %v1453_v11, %v4930_v21 }
 0x15d   :  { %v1905_v34 = vadd.f32 %v1892_v48, %v5601_v19  ;;  %v1803_v28 = vrot.slane %v5424_v14, 2  ;;  %v1476_v6 = vrot.slane %v1454_v41, %v4930_v21  ;;  %v1483_v24 = vrot.slane %v1455_v53, %v4930_v21 }
 0x15e   :  { %v1916_v36 = vmax.f32 %v1903_v43, 0.0  ;;  %v1917_v38 = vmax.f32 %v1904_v23, 0.0  ;;  %v1805_v45 = vrot.slane %v5428_v26, 2  ;;  %v1829_v12 = vrot.slane %v5426_v61, 4 }
 0x15f   :  { %v1918_v32 = vmax.f32 %v1905_v34, 0.0  ;;  %v5626_v57 = vcombine.low %v1462_v63, %v1476_v6  ;;  %v1485_v60 = vcombine.high %v1462_v63, %v1476_v6  ;;  %v1804_v11 = vrot.slane %v5426_v61, 2 }
 0x160   :  { %v1830_v58 = vrot.slane %v5428_v26, 4  ;;  %v1486_v43 = vcombine.low %v1469_v51, %v1483_v24  ;;  %v1487_v23 = vcombine.high %v1469_v51, %v1483_v24  ;;  %v1855_v42 = vadd.f32 %v1829_v12, %v1803_v28 }
 0x161   :  { %v1857_v48 = vadd.f32 %v1831_v56, %v1805_v45  ;;  %v1957_v41 = vrot.slane %v5594_v40, 2  ;;  %v1868_v15 = vrot.slane %v5428_v26, 6  ;;  %v1979_v37 = vrot.slane %v5592_v3, 4 }
 0x162   :  { %v1856_v53 = vadd.f32 %v1830_v58, %v1804_v11  ;;  %v1923_v6 = vsel %vm1638_vm2, %v1910_v27, -inf  ;;  %v1927_v24 = vsel %vm1638_vm2, %v1914_v2, -inf  ;;  %v1925_v45 = vsel %vm1638_vm2, %v1912_v50, -inf }
 0x163   :  { %v1896_v63 = vadd.f32 %v1870_v20, %v1857_v48  ;;  %v1894_v51 = vadd.f32 %v1868_v15, %v1855_v42  ;;  %v1928_v58 = vmax.f32 %v1923_v6, %v1927_v24  ;;  %v1931_v12 = vsel %vm1638_vm2, %v1916_v36, -inf }
 0x164   :  { %v1895_v56 = vadd.f32 %v1869_v17, %v1856_v53  ;;  %v1933_v11 = vsel %vm1638_vm2, %v1917_v38, -inf  ;;  %v1935_v7 = vsel %vm1638_vm2, %v1918_v32, -inf  ;;  %v1926_v27 = vsel %vm1638_vm2, %v1913_v22, -inf }
 0x165   :  { %v1909_v28 = vadd.f32 %v1896_v63, %v1487_v23  ;;  %v1907_v20 = vadd.f32 %v1894_v51, %v1485_v60  ;;  %v1932_v48 = vmax.f32 %v1925_v45, %v1931_v12  ;;  %v1980_v2 = vrot.slane %v5594_v40, 4 }
 0x166   :  { %v1908_v16 = vadd.f32 %v1895_v56, %v1486_v43  ;;  %v1934_v46 = vmax.f32 %v1926_v27, %v1933_v11  ;;  %v5648_v17 = vmax.f32 %v1928_v58, %v1935_v7  ;;  %v1959_v23 = vrot.slane %v5601_v19, 2 }
 0x167   :  { %v1922_v15 = vmax.f32 %v1909_v28, 0.0  ;;  %v1920_v50 = vmax.f32 %v1907_v20, 0.0  ;;  %v1983_v36 = vrot.slane %v5626_v57, 4  ;;  %v2019_v32 = vrot.slane %v1485_v60, 6 }
 0x168   :  { %v1921_v42 = vmax.f32 %v1908_v16, 0.0  ;;  %v1056_v22 = vcombine.low %v5369_v18, %v5377_v52  ;;  %v1057_v43 = vcombine.high %v5369_v18, %v5377_v52  ;;  %v1058_v28 = vcombine.low %v5375_v35, %v5384_v39 }
 0x169   :  { %v5653_v38 = vsel %vm1638_vm2, %v1922_v15, -inf  ;;  %v1939_v53 = vsel %vm1638_vm2, %v1920_v50, -inf  ;;  %v2007_v24 = vadd.f32 %v1983_v36, %v1959_v23  ;;  %v1059_v12 = vcombine.high %v5375_v35, %v5384_v39  ;;  %v6766_v39 = vld [vmem:[#allocation52_spill] sm:$0xff]  ;;  %v6767_v35 = vld [vmem:[#allocation51_spill] sm:$0xff] }
 0x16a   :  { %v1941_v63 = vsel %vm1638_vm2, %v1921_v42, -inf  ;;  %v5665_v45 = vmax.f32 %v1932_v48, %v1939_v53  ;;  %v1200_v11 = vcombine.low %v5386_v33, %v5397_v8  ;;  %v1201_v7 = vcombine.high %v5386_v33, %v5397_v8  ;;  %v6740_v53 = vld [vmem:[#allocation42_spill] sm:$0xff] }
 0x16b   :  { %v5667_v60 = vmax.f32 %v1934_v46, %v1941_v63  ;;  %v5669_v58 = vadd.f32 %v2019_v32, %v2007_v24  ;;  %v1202_v20 = vcombine.low %v5395_v30, %v5407_v1  ;;  %v1203_v16 = vcombine.high %v5395_v30, %v5407_v1  ;;  %v6741_v63 = vld [vmem:[#allocation40_spill] sm:$0xff] }
 0x16c   :  { %v1999_v27 = vadd.f32 %v1975_v49, %v1951_v55  ;;  %v2014_v48 = vrot.slane %v5592_v3, 6  ;;  %v2015_v15 = vrot.slane %v5594_v40, 6  ;;  %v1210_v46 = vrot.slane %v1200_v11, %v4930_v21 }
 0x16d   :  { %v6735_v50 = vrot.slane %v5525_v13, 2  ;;  %v6736_v33 = vrot.slane %v5532_v54, 4  ;;  %v1217_v42 = vrot.slane %v1201_v7, %v4930_v21  ;;  %v1224_v30 = vrot.slane %v1202_v20, %v4930_v21 }
 0x16e   :  { %v1231_v1 = vrot.slane %v1203_v16, %v4930_v21  ;;  %v6737_v25 = vrot.slane %v5525_v13, 6  ;;  %v6738_v55 = vrot.slane %v5532_v54, 6  ;;  %v6739_v36 = vrot.slane %v5534_v29, 6 }
 0x16f   :  { %v2000_v8 = vadd.f32 %v6736_v33, %v6735_v50  ;;  %v1344_v24 = vcombine.low %v6741_v63, %v6740_v53  ;;  %v1345_v11 = vcombine.high %v6741_v63, %v6740_v53  ;;  %v5708_v7 = vcombine.low %v1210_v46, %v1224_v30  ;;  %v6745_v50 = vld [vmem:[#allocation44_spill] sm:$0xff]  ;;  %v6746_v33 = vld [vmem:[#allocation41_spill] sm:$0xff] }
 0x170   :  { %v2034_v49 = vadd.f32 %v6737_v25, %v5530_v5  ;;  %v2035_v23 = vadd.f32 %v6738_v55, %v1999_v27  ;;  %v5710_v20 = vcombine.high %v1210_v46, %v1224_v30  ;;  %v5712_v16 = vcombine.low %v1217_v42, %v1231_v1 }
 0x171   :  { %v2036_v32 = vadd.f32 %v6739_v36, %v2000_v8  ;;  %v5714_v13 = vcombine.high %v1217_v42, %v1231_v1  ;;  %v1354_v5 = vrot.slane %v1344_v24, %v4930_v21  ;;  %v1361_v27 = vrot.slane %v1345_v11, %v4930_v21 }
 0x172   :  { %6742 = vst [vmem:[#allocation42_spill] sm:$0xff] %v5710_v20  ;;  %6743 = vst [vmem:[#allocation40_spill] sm:$0xff] %v5712_v16  ;;  %v1346_v8 = vcombine.low %v6746_v33, %v6745_v50  ;;  %v1347_v25 = vcombine.high %v6746_v33, %v6745_v50  ;;  %v2045_v55 = vadd.f32 %v5540_v59, %v5708_v7  ;;  %v2016_v1 = vrot.slane %v5599_v10, 6 }
 0x173   :  { %6744 = vst [vmem:[#allocation54_spill] sm:$0xff] %v5714_v13  ;;  %v2046_v46 = vadd.f32 %v2034_v49, %v5710_v20  ;;  %v2047_v30 = vadd.f32 %v2035_v23, %v5712_v16  ;;  %v2048_v42 = vadd.f32 %v2036_v32, %v5714_v13  ;;  %v2057_v36 = vrot.slane %v5710_v20, 2 }
 0x174   :  { %v2058_v53 = vrot.slane %v5712_v16, 2  ;;  %v2059_v63 = vrot.slane %v5714_v13, 2  ;;  %v1368_v24 = vrot.slane %v1346_v8, %v4930_v21  ;;  %v1375_v11 = vrot.slane %v1347_v25, %v4930_v21  ;;  %v6800_v13 = vld [vmem:[#allocation36_spill] sm:$0xff] }
 0x175   :  { %v6747_v59 = vrot.slane %v5532_v54, 2  ;;  %v6748_v49 = vrot.slane %v5534_v29, 4  ;;  %v6749_v23 = vrot.slane %v5534_v29, 2  ;;  %v6750_v32 = vrot.slane %v5536_v47, 4 }
 0x176   :  { %v5741_v6 = vadd.f32 %v2057_v36, %v2045_v55  ;;  %v5743_v56 = vadd.f32 %v2058_v53, %v2046_v46  ;;  %v5745_v34 = vadd.f32 %v2059_v63, %v2047_v30  ;;  %v6751_v8 = vrot.slane %v5536_v47, 2 }
 0x177   :  { %v2001_v50 = vadd.f32 %v6748_v49, %v6747_v59  ;;  %v2002_v33 = vadd.f32 %v6750_v32, %v6749_v23  ;;  %v5751_v54 = vcombine.low %v1354_v5, %v1368_v24  ;;  %v5753_v51 = vcombine.high %v1354_v5, %v1368_v24 }
 0x178   :  { %v2003_v25 = vadd.f32 %v1979_v37, %v6751_v8  ;;  %v5755_v59 = vcombine.low %v1361_v27, %v1375_v11  ;;  %v5757_v29 = vcombine.high %v1361_v27, %v1375_v11  ;;  %v6756_v55 = vrot.slane %v5420_v62, 2 }
 0x179   :  { %6752 = vst [vmem:[#allocation44_spill] sm:$0xff] %v5751_v54  ;;  %6753 = vst [vmem:[#allocation41_spill] sm:$0xff] %v5753_v51  ;;  %v6757_v46 = vrot.slane %v5424_v14, 4  ;;  %v2018_v30 = vrot.slane %v5626_v57, 6  ;;  %v5765_v53 = vrot.slane %v1056_v22, %v4930_v21  ;;  %v6758_v37 = vrot.slane %v5592_v3, 2 }
 0x17a   :  { %6754 = vst [vmem:[#allocation55_spill] sm:$0xff] %v5755_v59  ;;  %6755 = vst [vmem:[#allocation56_spill] sm:$0xff] %v5757_v29  ;;  %v6759_v63 = vrot.slane %v5536_v47, 6  ;;  %v2038_v27 = vadd.f32 %v2014_v48, %v2002_v33  ;;  %v2039_v11 = vadd.f32 %v2015_v15, %v2003_v25  ;;  %v2060_v49 = vrot.slane %v5751_v54, 2  ;;  %v6760_v48 = vld [vmem:[#allocation47_spill] sm:$0xff]  ;;  %v6761_v15 = vld [vmem:[#allocation45_spill] sm:$0xff] }
 0x17b   :  { %v1854_v36 = vadd.f32 %v6757_v46, %v6756_v55  ;;  %v2004_v5 = vadd.f32 %v1980_v2, %v6758_v37  ;;  %v2061_v32 = vrot.slane %v5753_v51, 2  ;;  %v2062_v8 = vrot.slane %v5755_v59, 2  ;;  %v6762_v33 = vld [vmem:[#allocation46_spill] sm:$0xff] }
 0x17c   :  { %v2037_v24 = vadd.f32 %v6759_v63, %v2001_v50  ;;  %v2063_v22 = vrot.slane %v5757_v29, 2  ;;  %v2050_v3 = vadd.f32 %v2038_v27, %v5753_v51  ;;  %v2051_v2 = vadd.f32 %v2039_v11, %v5755_v59 }
 0x17d   :  { %v2040_v23 = vadd.f32 %v2016_v1, %v2004_v5  ;;  %v5780_v46 = vadd.f32 %v2060_v49, %v2048_v42  ;;  %v1488_v1 = vcombine.low %v6761_v15, %v6760_v48  ;;  %v1489_v50 = vcombine.high %v6761_v15, %v6760_v48 }
 0x17e   :  { %v2049_v55 = vadd.f32 %v2037_v24, %v5751_v54  ;;  %v1490_v25 = vcombine.low %v6762_v33, %v5466_v0  ;;  %v5795_v37 = vrot.slane %v1058_v28, %v4930_v21  ;;  %v5799_v5 = vadd.f32 %v2062_v8, %v2050_v3 }
 0x17f   :  { %v5783_v47 = vadd.f32 %v2040_v23, %v5757_v29  ;;  %v5801_v63 = vadd.f32 %v2063_v22, %v2051_v2  ;;  %v1498_v24 = vrot.slane %v1488_v1, %v4930_v21  ;;  %v1505_v27 = vrot.slane %v1489_v50, %v4930_v21  ;;  %v6786_v29 = vld [vmem:[#allocation15_spill] sm:$0xff] }
 0x180   :  { %v5797_v42 = vadd.f32 %v2061_v32, %v2049_v55  ;;  %v1491_v11 = vcombine.high %v6762_v33, %v5466_v0  ;;  %v1512_v49 = vrot.slane %v1490_v25, %v4930_v21  ;;  %v2017_v23 = vrot.slane %v5601_v19, 6 }
 0x181   :  { %v5813_v28 = vrot.slane %v1057_v43, %v4930_v21  ;;  %v5819_v32 = vrot.slane %v1059_v12, %v4930_v21  ;;  %v6763_v0 = vrot.slane %v5599_v10, 4  ;;  %v6764_v52 = vrot.slane %v5599_v10, 2 }
 0x182   :  { %v1519_v22 = vrot.slane %v1491_v11, %v4930_v21  ;;  %v5826_v55 = vcombine.low %v1498_v24, %v1512_v49  ;;  %v5828_v3 = vcombine.high %v1498_v24, %v1512_v49  ;;  %v6765_v18 = vrot.slane %v5601_v19, 4  ;;  %v6770_v19 = vld [vmem:[#allocation53_spill] sm:$0xff] }
 0x183   :  { %v2005_v8 = vadd.f32 %v6763_v0, %v1957_v41  ;;  %v2240_v12 = vcombine.low %v6767_v35, %v6766_v39  ;;  %v1088_v40 = vcombine.low %v5765_v53, %v5795_v37  ;;  %v6768_v48 = vrot.slane %v5426_v61, 6  ;;  %v6773_v39 = vld [vmem:[#allocation39_spill] sm:$0xff] }
 0x184   :  { %v2006_v43 = vadd.f32 %v6765_v18, %v6764_v52  ;;  %v5842_v1 = vcombine.low %v1505_v27, %v1519_v22  ;;  %v5844_v50 = vcombine.high %v1505_v27, %v1519_v22  ;;  %v2008_v33 = vrot.slane %v6770_v19, 6  ;;  %v6777_v22 = vld [vmem:[#allocation11_spill] sm:$0xff] }
 0x185   :  { %v2041_v2 = vadd.f32 %v2017_v23, %v2005_v8  ;;  %v1893_v15 = vadd.f32 %v6768_v48, %v1854_v36  ;;  %v2247_v24 = vrot.slane %v2240_v12, %v4930_v21  ;;  %v2151_v11 = vrot.slane %v1088_v40, 4  ;;  %v6774_v12 = vld [vmem:[#allocation48_spill] sm:$0xff]  ;;  %v6775_v48 = vld [vmem:[#allocation49_spill] sm:$0xff] }
 0x186   :  { %6769 = vst [vmem:[#allocation47_spill] sm:$0xff] %v5844_v50  ;;  %v2042_v10 = vadd.f32 %v2018_v30, %v2006_v43  ;;  %v2055_v36 = vadd.f32 %v5669_v58, %v5842_v1  ;;  %v2067_v27 = vrot.slane %v5844_v50, 2  ;;  %v6771_v30 = vld [vmem:[#allocation35_spill] sm:$0xff]  ;;  %v5867_v52 = vcombine.high %v5813_v28, %v5819_v32  ;;  %v6784_v50 = vld [vmem:[#allocation14_spill] sm:$0xff] }
 0x187   :  { %v5848_v25 = vadd.f32 %v2041_v2, %v5826_v55  ;;  %v5852_v49 = vadd.f32 %v1893_v15, %v5626_v57  ;;  %v1753_v0 = vmax.f32 %v6771_v30, 0.0  ;;  %v5861_v8 = vadd.f32 %v2247_v24, %v2151_v11  ;;  %v6772_v57 = vld [vmem:[#allocation38_spill] sm:$0xff] }
 0x188   :  { %v5855_v23 = vadd.f32 %v2042_v10, %v5828_v3  ;;  %v1756_v18 = vmax.f32 %v6772_v57, 0.0  ;;  %v2056_v43 = vrot.slane %v5708_v7, 2  ;;  %v5871_v2 = vadd.f32 %v2067_v27, %v2055_v36  ;;  %v6776_v10 = vld [vmem:[#allocation50_spill] sm:$0xff]  ;;  %v6779_v36 = vld [vmem:[#allocation12_spill] sm:$0xff] }
 0x189   :  { %v2032_v58 = vadd.f32 %v2008_v33, %v5528_v9  ;;  %v1757_v35 = vmax.f32 %v6773_v39, 0.0  ;;  %v1763_v40 = vmax.f32 %v6774_v12, 0.0  ;;  %v1764_v15 = vmax.f32 %v6775_v48, 0.0  ;;  %2257 = vrot.lane.b32.xlu0 %v5861_v8, %s4847_s12  ;;  %v6782_v33 = vld [vmem:[#allocation13_spill] sm:$0xff] }
 0x18a   :  { %v1765_v19 = vmax.f32 %v6776_v10, 0.0  ;;  %v6778_v41 = vrot.slane %v6777_v22, 4  ;;  %v6781_v24 = vrot.slane %v6779_v36, 4  ;;  %v6783_v9 = vrot.slane %v6782_v33, 6  ;;  %v6789_v48 = vld [vmem:[#allocation17_spill] sm:$0xff] }
 0x18b   :  { %v2044_v27 = vadd.f32 %v2032_v58, %v5867_v52  ;;  %v6780_v58 = vrot.slane %v6779_v36, 6  ;;  %v6785_v57 = vrot.slane %v6784_v50, 4  ;;  %v6787_v39 = vrot.slane %v6786_v29, 6 }
 0x18c   :  { %v1727_v30 = vadd.f32 %v6783_v9, %v6781_v24  ;;  %v6788_v12 = vrot.slane %v6786_v29, 4  ;;  %v6791_v51 = vrot.slane %v6789_v48, 4  ;;  %v6795_v24 = vld [vmem:[#allocation20_spill] sm:$0xff] }
 0x18d   :  { %v5891_v10 = vadd.f32 %v2056_v43, %v2044_v27  ;;  %v1726_v11 = vadd.f32 %v6780_v58, %v6778_v41  ;;  %v1730_v59 = vadd.f32 %v6787_v39, %v6785_v57  ;;  %v6790_v43 = vrot.slane %v6789_v48, 6  ;;  %v6792_v41 = vld [vmem:[#allocation18_spill] sm:$0xff]  ;;  %v6798_v57 = vld [vmem:[#allocation21_spill] sm:$0xff] }
 0x18e   :  { %v6793_v58 = vrot.slane %v6792_v41, 6  ;;  %v6794_v33 = vrot.slane %v6792_v41, 4  ;;  %v6796_v9 = vrot.slane %v6795_v24, 6  ;;  %v6797_v54 = vrot.slane %v6795_v24, 4 }
 0x18f   :  { %v1731_v27 = vadd.f32 %v6790_v43, %v6788_v12  ;;  %v6799_v39 = vrot.slane %v6798_v57, 6  ;;  %v1740_v16 = vadd.f32 %v1726_v11, %v6800_v13  ;;  %v6801_v12 = vld [vmem:[#allocation37_spill] sm:$0xff]  ;;  %v1744_v22 = vadd.f32 %v1730_v59, %v5418_v4 }
 0x190   :  { %v1732_v36 = vadd.f32 %v6793_v58, %v6791_v51  ;;  %v1733_v50 = vadd.f32 %v6796_v9, %v6794_v33  ;;  %v1741_v43 = vadd.f32 %v1727_v30, %v6801_v12  ;;  %v6802_v33 = vld [vmem:[#allocation34_spill] sm:$0xff]  ;;  %v1767_v4 = vsel %vm1638_vm2, %v1753_v0, -inf }
 0x191   :  { %v1734_v29 = vadd.f32 %v6799_v39, %v6797_v54  ;;  %v1745_v48 = vadd.f32 %v1731_v27, %v5420_v62  ;;  %v6803_v9 = vmax.f32 %v6802_v33, 0.0  ;;  %v1754_v20 = vmax.f32 %v1740_v16, 0.0 }
 0x192   :  { %v1746_v51 = vadd.f32 %v1732_v36, %v5424_v14  ;;  %v1747_v41 = vadd.f32 %v1733_v50, %v5426_v61  ;;  %v1755_v54 = vmax.f32 %v1741_v43, 0.0  ;;  %v1758_v39 = vmax.f32 %v1744_v22, 0.0 }
 0x193   :  { %v1748_v58 = vadd.f32 %v1734_v29, %v5428_v26  ;;  %v1766_v24 = vsel %vm1638_vm2, %v6803_v9, -inf  ;;  %v1759_v13 = vmax.f32 %v1745_v48, 0.0  ;;  %v1768_v62 = vsel %vm1638_vm2, %v1754_v20, -inf }
 0x194   :  { %v1760_v11 = vmax.f32 %v1746_v51, 0.0  ;;  %v1761_v30 = vmax.f32 %v1747_v41, 0.0  ;;  %v1769_v14 = vsel %vm1638_vm2, %v1755_v54, -inf  ;;  %v1770_v61 = vsel %vm1638_vm2, %v1756_v18, -inf }
 0x195   :  { %v1762_v12 = vmax.f32 %v1748_v58, 0.0  ;;  %v1772_v26 = vsel %vm1638_vm2, %v1757_v35, -inf  ;;  %v1771_v59 = vmax.f32 %v1766_v24, %v1770_v61  ;;  %v1774_v16 = vsel %vm1638_vm2, %v1758_v39, -inf  ;;  %v6804_v39 = vld [vmem:[#allocation28_spill] sm:$0xff] }
 0x196   :  { %v1773_v27 = vmax.f32 %v1767_v4, %v1772_v26  ;;  %v1776_v22 = vsel %vm1638_vm2, %v1759_v13, -inf  ;;  %v1775_v36 = vmax.f32 %v1768_v62, %v1774_v16  ;;  %v1778_v29 = vsel %vm1638_vm2, %v1760_v11, -inf  ;;  %v6808_v62 = vld [vmem:[#allocation31_spill] sm:$0xff]  ;;  %v6810_v61 = vld [vmem:[#allocation32_spill] sm:$0xff] }
 0x197   :  { %v1777_v50 = vmax.f32 %v1769_v14, %v1776_v22  ;;  %v1780_v0 = vsel %vm1638_vm2, %v1761_v30, -inf  ;;  %v2066_v20 = vrot.slane %v5842_v1, 2  ;;  %v1779_v43 = vmax.f32 %v1771_v59, %v1778_v29  ;;  %v6806_v30 = vld [vmem:[#allocation16_spill] sm:$0xff]  ;;  %v6809_v14 = vld [vmem:[#allocation19_spill] sm:$0xff] }
 0x198   :  { %v1781_v48 = vmax.f32 %v1773_v27, %v1780_v0  ;;  %v1782_v18 = vsel %vm1638_vm2, %v1762_v12, -inf  ;;  %v1784_v35 = vsel %vm1638_vm2, %v1763_v40, -inf  ;;  %v1786_v41 = vsel %vm1638_vm2, %v1764_v15, -inf  ;;  %v6811_v15 = vld [vmem:[#allocation22_spill] sm:$0xff]  ;;  %v6813_v27 = vld [vmem:[#allocation23_spill] sm:$0xff]  ;;  %v6814_v22 = vld [vmem:[#allocation24_spill] sm:$0xff] }
 0x199   :  { %v1783_v51 = vmax.f32 %v1775_v36, %v1782_v18  ;;  %v1788_v58 = vsel %vm1638_vm2, %v1765_v19, -inf  ;;  %v2092_v33 = vmax.f32 %v5891_v10, 0.0  ;;  %v1785_v9 = vmax.f32 %v1777_v50, %v1784_v35  ;;  %v6812_v10 = vld [vmem:[#allocation33_spill] sm:$0xff]  ;;  %v6818_v18 = vld [vmem:[#allocation26_spill] sm:$0xff] }
 0x19a   :  { %v1787_v24 = vmax.f32 %v1779_v43, %v1786_v41  ;;  %v1789_v54 = vmax.f32 %v1781_v48, %v1788_v58  ;;  %v6805_v13 = vrot.slane %v6804_v39, 2  ;;  %v6807_v4 = vmax.f32 %v6806_v30, 0.0  ;;  %v6816_v0 = vld [vmem:[#allocation25_spill] sm:$0xff] }
 0x19b   :  { %v1644_v40 = vmax.f32 %v6809_v14, %v6808_v62  ;;  %v1646_v26 = vmax.f32 %v6811_v15, %v6810_v61  ;;  %v1791_v59 = vmax.f32 %v1783_v51, %v1785_v9  ;;  %v1648_v16 = vmax.f32 %v6813_v27, %v6812_v10  ;;  %v6822_v30 = vld [vmem:[#allocation29_spill] sm:$0xff]  ;;  %v6824_v62 = vld [vmem:[#allocation30_spill] sm:$0xff]  ;;  %v6827_v27 = vld [vmem:[#allocation43_spill] sm:$0xff] }
 0x19c   :  { %v1619_v11 = vadd.f32 %v6805_v13, %v6798_v57  ;;  %v1642_v12 = vsel %vm1638_vm2, %v6807_v4, -inf  ;;  %v1790_v19 = vmax.f32 %v1787_v24, %v1789_v54  ;;  %v6815_v36 = vmax.f32 %v6814_v22, 0.0  ;;  %v6820_v24 = vld [vmem:[#allocation27_spill] sm:$0xff] }
 0x19d   :  { %v6817_v43 = vmax.f32 %v6816_v0, 0.0  ;;  %v6819_v35 = vmax.f32 %v6818_v18, 0.0  ;;  %v6821_v54 = vmax.f32 %v6820_v24, 0.0  ;;  %v6823_v4 = vmax.f32 %v6822_v30, 0.0 }
 0x19e   :  { %v1649_v50 = vsel %vm1638_vm2, %v6815_v36, -inf  ;;  %v1634_v57 = vmax.f32 %v1619_v11, 0.0  ;;  %v5968_v58 = vmax.f32 %v1790_v19, %v1791_v59  ;;  %v6825_v14 = vmax.f32 %v6824_v62, 0.0 }
 0x19f   :  { %v1650_v29 = vmax.f32 %v1642_v12, %v1649_v50  ;;  %v1651_v48 = vsel %vm1638_vm2, %v6817_v43, -inf  ;;  %v1653_v41 = vsel %vm1638_vm2, %v6819_v35, -inf  ;;  %v1655_v39 = vsel %vm1638_vm2, %v6821_v54, -inf }
 0x1a0   :  { %v1652_v51 = vmax.f32 %v1644_v40, %v1651_v48  ;;  %v1654_v9 = vmax.f32 %v1646_v26, %v1653_v41  ;;  %v1656_v13 = vmax.f32 %v1648_v16, %v1655_v39  ;;  %v1657_v11 = vsel %vm1638_vm2, %v1634_v57, -inf }
 0x1a1   :  { %v1659_v12 = vsel %vm1638_vm2, %v6823_v4, -inf  ;;  %v1661_v61 = vsel %vm1638_vm2, %v6825_v14, -inf  ;;  %v1658_v15 = vmax.f32 %v1650_v29, %v1657_v11  ;;  %v6826_v40 = vrot.slane %v5826_v55, 2 }
 0x1a2   :  { %v1660_v19 = vmax.f32 %v1652_v51, %v1659_v12  ;;  %v1662_v59 = vmax.f32 %v1654_v9, %v1661_v61  ;;  %v2095_v10 = vmax.f32 %v5745_v34, 0.0  ;;  %v1664_v16 = vmax.f32 %v1656_v13, %v6827_v27 }
 0x1a3   :  { %v2088_v26 = vadd.f32 %v6826_v40, %v5783_v47  ;;  %v6828_v22 = vrot.slane %v5828_v3, 2  ;;  %v2090_v50 = vadd.f32 %v2066_v20, %v5855_v23  ;;  %v2103_v57 = vmax.f32 %v5871_v2, 0.0 }
 0x1a4   :  { %v5990_v0 = vmax.f32 %v1660_v19, %v1662_v59  ;;  %v2104_v43 = vsel %vm1638_vm2, %v2092_v33, -inf  ;;  %v5993_v48 = vmax.f32 %v1664_v16, %v1658_v15  ;;  %v6829_v34 = vmax.f32 %v5741_v6, 0.0 }
 0x1a5   :  { %v2089_v36 = vadd.f32 %v6828_v22, %v5848_v25  ;;  %v2100_v29 = vmax.f32 %v2088_v26, 0.0  ;;  %v2102_v18 = vmax.f32 %v2090_v50, 0.0  ;;  %v6830_v41 = vmax.f32 %v5780_v46, 0.0 }
 0x1a6   :  { %v2105_v35 = vsel %vm1638_vm2, %v6829_v34, -inf  ;;  %v6831_v23 = vmax.f32 %v5797_v42, 0.0  ;;  %v6832_v20 = vmax.f32 %v5799_v5, 0.0  ;;  %v6833_v51 = vmax.f32 %v5801_v63, 0.0 }
 0x1a7   :  { %v2101_v47 = vmax.f32 %v2089_v36, 0.0  ;;  %v2108_v25 = vsel %vm1638_vm2, %v6830_v41, -inf  ;;  %v1667_v6 = vmax.f32 %v5990_v0, %v5993_v48  ;;  %v6834_v24 = vmax.f32 %v5743_v56, 0.0 }
 0x1a8   :  { %v2110_v2 = vsel %vm1638_vm2, %v6831_v23, -inf  ;;  %v2112_v33 = vsel %vm1638_vm2, %v6832_v20, -inf  ;;  %v2114_v9 = vsel %vm1638_vm2, %v6833_v51, -inf  ;;  %v2107_v54 = vsel %vm1638_vm2, %v2095_v10, -inf  ;;  %v6049_v20 = vld [vmem:[%s6638_s3] ss:$8 sps:$4 sm:$0xff]  }
 0x1a9   :  { %v2106_v46 = vsel %vm1638_vm2, %v6834_v24, -inf  ;;  %v2109_v42 = vmax.f32 %v2104_v43, %v2108_v25  ;;  %v2111_v39 = vmax.f32 %v2105_v35, %v2110_v2  ;;  %v2115_v11 = vmax.f32 %v2107_v54, %v2114_v9  ;;  %v6056_v51 = vld [vmem:[%s6638_s3 + $0x14] ss:$8 sps:$4 sm:$0xff]   ;;  %v6062_v9 = vld [vmem:[%s6638_s3 + $0x10] ss:$8 sps:$4 sm:$0xff]  }
 0x1aa   :  { %v2113_v13 = vmax.f32 %v2106_v46, %v2112_v33  ;;  %v2116_v5 = vsel %vm1638_vm2, %v2100_v29, -inf  ;;  %v2118_v63 = vsel %vm1638_vm2, %v2101_v47, -inf  ;;  %v2120_v4 = vsel %vm1638_vm2, %v2102_v18, -inf  ;;  %v6068_v24 = vld [vmem:[%s6638_s3 + $0x24] ss:$8 sps:$4 sm:$0xff]  }
 0x1ab   :  { %v2117_v30 = vmax.f32 %v2109_v42, %v2116_v5  ;;  %v2122_v12 = vsel %vm1638_vm2, %v2103_v57, -inf  ;;  %v2119_v62 = vmax.f32 %v2111_v39, %v2118_v63  ;;  %v6835_v61 = vmax.f32 %v5544_v44, 0.0  ;;  %v6074_v46 = vld [vmem:[%s6638_s3 + $0x20] ss:$8 sps:$4 sm:$0xff]   ;;  %v6080_v54 = vld [vmem:[%s6638_s3 + $0x34] ss:$8 sps:$4 sm:$0xff]  }
 0x1ac   :  { %v2121_v14 = vmax.f32 %v2113_v13, %v2120_v4  ;;  %v2123_v56 = vmax.f32 %v2115_v11, %v2122_v12  ;;  %v6836_v19 = vmax.f32 %v5606_v31, 0.0  ;;  %v6837_v40 = vmax.f32 %v5852_v49, 0.0  ;;  %v6086_v42 = vld [vmem:[%s6638_s3 + $0x30] ss:$8 sps:$4 sm:$0xff]   ;;  %v6092_v39 = vld [vmem:[%s6638_s3 + $0x4] ss:$8 sps:$4 sm:$0xff]  }
 0x1ad   :  { %v1924_v15 = vsel %vm1638_vm2, %v6835_v61, -inf  ;;  %v1946_v10 = vmax.f32 %v5665_v45, %v5667_v60  ;;  %v2124_v27 = vmax.f32 %v2117_v30, %v2119_v62  ;;  %v6838_v44 = vmax.f32 %v5648_v17, %v5653_v38 }
 0x1ae   :  { %v1929_v59 = vsel %vm1638_vm2, %v6836_v19, -inf  ;;  %v1937_v26 = vsel %vm1638_vm2, %v6837_v40, -inf  ;;  %v2125_v16 = vmax.f32 %v2121_v14, %v2123_v56  ;;  %v4337_v29 = vmul.f32 -1.442695, %v5861_v8 }
 0x1af   :  { %v1930_v22 = vmax.f32 %v1924_v15, %v1929_v59  ;;  %v6839_v33 = vmov 0   ;;  %v6840_v12 = vcombine.high %v5765_v53, %v5795_v37 }
 0x1b0   :  { %v6031_v36 = vmax.f32 %v2124_v27, %v2125_v16  ;;  %4609 = vpow2.f32 %v4337_v29 }
 0x1b1   :  { %v1938_v50 = vmax.f32 %v1930_v22, %v1937_v26  ;;  %v2285_v62 = vrot.slane %v6840_v12, 4 }
 0x1b3   :  { %v1945_v57 = vmax.f32 %v6838_v44, %v1938_v50 }
 0x1b5   :  { %v6036_v31 = vmax.f32 %v1945_v57, %v1946_v10 }
 0x1ba   :  { %v4610_v49 = vpop.eup %4609 }
 0x1bb   :  { %v2253_v43 = vadd.f32 1.0, %v4610_v49 }
 0x1bd   :  { %4611 = vrcp.f32 %v2253_v43 }
 0x1c7   :  { %v4612_v45 = vpop.eup %4611 }
 0x1c8   :  { %v2262_v35 = vmul.f32 0.0, %v4612_v45  ;;  %v2271_v8 = vrot.slane %v4612_v45, 2 }
 0x1fb   :  { %v2258_v47 = vpop.permute.xlu0 %2257 }
 0x1fc   :  { %v2259_v18 = vrot.slane %v2258_v47, 2 }
 0x1fe   :  { %4613 = vtanh.f32 %v2259_v18 }
 0x208   :  { %v4614_v60 = vpop.eup %4613 }
 0x209   :  { %v2263_v34 = vmul.f32 %v4614_v60, %v4612_v45  ;;  %v6841_v60 = vcombine.low %v5813_v28, %v5819_v32 }
 0x20b   :  { %2265 = vrot.lane.b32.xlu0 %v2263_v34, %s4847_s12  ;;  %v2379_v34 = vrot.slane %v6841_v60, 4 }
 0x27d   :  { %v2266_v41 = vpop.permute.xlu0 %2265 }
 0x27e   :  { %v2268_v17 = vadd.f32 %v2266_v41, %v2262_v35 }
 0x280   :  { %4615 = vtanh.f32 %v2268_v17 }
 0x28a   :  { %v4616_v38 = vpop.eup %4615 }
 0x28b   :  { %2274 = vrot.lane.b32.xlu1 %v4616_v38, %s4847_s12 }
 0x2fd   :  { %v2275_v25 = vpop.permute.xlu1 %2274 }
 0x2fe   :  { %v6041_v23 = vmul.f32 %v2275_v25, %v2271_v8 }
 0x300   :  { %v2287_v2 = vpack.c.bf16 %v6041_v23, %v6041_v23 }
 0x302   :  { %4338 = vmatmul.mubr.msk.bf16.vlgmr.msra.gmra.mrb[32].mxu1 %vm2193_vm3, %v2287_v2 }
 0x303   :  { %2480 = vmatpush1.bf16.msra.mxu1 %v6049_v20  ;;  %2511 = vmatprep.mubr.bf16.mxu1 %v6839_v33 }
 0x304   :  { %2481 = vmatprep.subr.bf16.mxu1 %v6056_v51 }
 0x307   :  { %2482 = vmatpush1.bf16.msra.mxu1 %v6062_v9 }
 0x308   :  { %2483 = vmatprep.subr.bf16.mxu1 %v6068_v24 }
 0x30b   :  { %2484 = vmatpush1.bf16.msra.mxu1 %v6074_v46 }
 0x30c   :  { %2485 = vmatprep.subr.bf16.mxu1 %v6080_v54 }
 0x30f   :  { %2486 = vmatpush1.bf16.msra.mxu1 %v6086_v42 }
 0x310   :  { %2667 = vmatprep.subr.bf16.mxu1 %v6092_v39 }
 0x3d5   :  { %v2325_v13 = vpop.f32.mrb[32].mxu1 }
 0x3d6   :  { %v2327_v11 = vpop.f32.mrb[33].mxu1 }
 0x3d7   :  { %v2334_v5 = vcombine.low %v2325_v13, %v2327_v11  ;;  %v2329_v30 = vpop.f32.mrb[34].mxu1 }
 0x3d8   :  { %v2330_v63 = vpop.f32.mrb[35].mxu1 }
 0x3d9   :  { %v2341_v4 = vrot.slane %v2334_v5, %v4930_v21 }
 0x3db   :  { %v2343_v14 = vadd.f32 %v2341_v4, %v2285_v62 }
 0x3dd   :  { %2351 = vrot.lane.b32.xlu1 %v2343_v14, %s4847_s12  ;;  %v4339_v56 = vmul.f32 -1.442695, %v2343_v14 }
 0x3df   :  { %4617 = vpow2.f32 %v4339_v56 }
 0x3e9   :  { %v4618_v61 = vpop.eup %4617 }
 0x3ea   :  { %v2347_v15 = vadd.f32 1.0, %v4618_v61 }
 0x3ec   :  { %4619 = vrcp.f32 %v2347_v15 }
 0x3f6   :  { %v4620_v40 = vpop.eup %4619 }
 0x3f7   :  { %v2356_v27 = vmul.f32 %v4620_v40, %v2268_v17  ;;  %v2365_v22 = vrot.slane %v4620_v40, 2 }
 0x44f   :  { %v2352_v19 = vpop.permute.xlu1 %2351 }
 0x450   :  { %v2353_v59 = vrot.slane %v2352_v19, 2 }
 0x452   :  { %4621 = vtanh.f32 %v2353_v59 }
 0x45c   :  { %v4622_v26 = vpop.eup %4621 }
 0x45d   :  { %v2357_v10 = vmul.f32 %v4622_v26, %v4620_v40  ;;  %v2473_v40 = vrot.slane %v5867_v52, 4 }
 0x45f   :  { %2359 = vrot.lane.b32.xlu0 %v2357_v10, %s4847_s12 }
 0x4d1   :  { %v2360_v16 = vpop.permute.xlu0 %2359 }
 0x4d2   :  { %v2362_v53 = vadd.f32 %v2360_v16, %v2356_v27 }
 0x4d4   :  { %4623 = vtanh.f32 %v2362_v53 }
 0x4de   :  { %v4624_v37 = vpop.eup %4623 }
 0x4df   :  { %2368 = vrot.lane.b32.xlu1 %v4624_v37, %s4847_s12 }
 0x551   :  { %v2369_v50 = vpop.permute.xlu1 %2368 }
 0x552   :  { %v6102_v44 = vmul.f32 %v2369_v50, %v2365_v22 }
 0x554   :  { %v2381_v57 = vpack.c.bf16 %v6102_v44, %v6102_v44 }
 0x556   :  { %4340 = vmatmul.mubr.msk.bf16.vlgmr.msra.gmra.mrb[36].mxu0 %vm2193_vm3, %v2381_v57 }
 0x557   :  { %2574 = vmatpush1.bf16.msra.mxu0 %v6049_v20  ;;  %2605 = vmatprep.mubr.bf16.mxu0 %v6839_v33 }
 0x558   :  { %2575 = vmatprep.subr.bf16.mxu0 %v6056_v51 }
 0x55b   :  { %2576 = vmatpush1.bf16.msra.mxu0 %v6062_v9 }
 0x55c   :  { %2577 = vmatprep.subr.bf16.mxu0 %v6068_v24 }
 0x55f   :  { %2578 = vmatpush1.bf16.msra.mxu0 %v6074_v46 }
 0x560   :  { %2579 = vmatprep.subr.bf16.mxu0 %v6080_v54 }
 0x563   :  { %2580 = vmatpush1.bf16.msra.mxu0 %v6086_v42 }
 0x564   :  { %2761 = vmatprep.subr.bf16.mxu0 %v6092_v39 }
 0x629   :  { %v2419_v29 = vpop.f32.mrb[36].mxu0 }
 0x62a   :  { %v2421_v49 = vpop.f32.mrb[37].mxu0 }
 0x62b   :  { %v2428_v43 = vcombine.low %v2419_v29, %v2421_v49  ;;  %v2423_v47 = vpop.f32.mrb[38].mxu0 }
 0x62c   :  { %v2424_v18 = vpop.f32.mrb[39].mxu0 }
 0x62d   :  { %v2435_v45 = vrot.slane %v2428_v43, %v4930_v21 }
 0x62f   :  { %v2437_v35 = vadd.f32 %v2435_v45, %v2379_v34 }
 0x631   :  { %2445 = vrot.lane.b32.xlu0 %v2437_v35, %s4847_s12  ;;  %v4341_v41 = vmul.f32 -1.442695, %v2437_v35 }
 0x633   :  { %4625 = vpow2.f32 %v4341_v41 }
 0x63d   :  { %v4626_v17 = vpop.eup %4625 }
 0x63e   :  { %v2441_v38 = vadd.f32 1.0, %v4626_v17 }
 0x640   :  { %4627 = vrcp.f32 %v2441_v38 }
 0x64a   :  { %v4628_v2 = vpop.eup %4627 }
 0x64b   :  { %v2450_v5 = vmul.f32 %v4628_v2, %v2362_v53  ;;  %v2459_v63 = vrot.slane %v4628_v2, 2 }
 0x6a3   :  { %v2446_v8 = vpop.permute.xlu0 %2445 }
 0x6a4   :  { %v2447_v25 = vrot.slane %v2446_v8, 2 }
 0x6a6   :  { %4629 = vtanh.f32 %v2447_v25  ;;  %v2567_v25 = vrot.slane %v5708_v7, 4 }
 0x6b0   :  { %v4630_v13 = vpop.eup %4629 }
 0x6b1   :  { %v2451_v11 = vmul.f32 %v4630_v13, %v4628_v2 }
 0x6b3   :  { %2453 = vrot.lane.b32.xlu1 %v2451_v11, %s4847_s12 }
 0x725   :  { %v2454_v30 = vpop.permute.xlu1 %2453 }
 0x726   :  { %v2456_v28 = vadd.f32 %v2454_v30, %v2450_v5 }
 0x728   :  { %4631 = vtanh.f32 %v2456_v28 }
 0x732   :  { %v4632_v32 = vpop.eup %4631 }
 0x733   :  { %2462 = vrot.lane.b32.xlu0 %v4632_v32, %s4847_s12 }
 0x7a5   :  { %v2463_v4 = vpop.permute.xlu0 %2462 }
 0x7a6   :  { %v6123_v12 = vmul.f32 %v2463_v4, %v2459_v63 }
 0x7a8   :  { %v2475_v62 = vpack.c.bf16 %v6123_v12, %v6123_v12 }
 0x7aa   :  { %4342 = vmatmul.mubr.msk.bf16.vlgmr.msra.gmra.mrb[36].mxu1 %vm2193_vm3, %v2475_v62 }
 0x7ab   :  { %2668 = vmatpush1.bf16.msra.mxu1 %v6049_v20  ;;  %2699 = vmatprep.mubr.bf16.mxu1 %v6839_v33 }
 0x7ac   :  { %2669 = vmatprep.subr.bf16.mxu1 %v6056_v51 }
 0x7af   :  { %2670 = vmatpush1.bf16.msra.mxu1 %v6062_v9 }
 0x7b0   :  { %2671 = vmatprep.subr.bf16.mxu1 %v6068_v24 }
 0x7b3   :  { %2672 = vmatpush1.bf16.msra.mxu1 %v6074_v46 }
 0x7b4   :  { %2673 = vmatprep.subr.bf16.mxu1 %v6080_v54 }
 0x7b7   :  { %2674 = vmatpush1.bf16.msra.mxu1 %v6086_v42 }
 0x7b8   :  { %2855 = vmatprep.subr.bf16.mxu1 %v6092_v39 }
 0x87d   :  { %v2513_v14 = vpop.f32.mrb[36].mxu1 }
 0x87e   :  { %v2515_v56 = vpop.f32.mrb[37].mxu1 }
 0x87f   :  { %v2522_v61 = vcombine.low %v2513_v14, %v2515_v56  ;;  %v2517_v15 = vpop.f32.mrb[38].mxu1 }
 0x880   :  { %v2518_v19 = vpop.f32.mrb[39].mxu1 }
 0x881   :  { %v2529_v59 = vrot.slane %v2522_v61, %v4930_v21 }
 0x883   :  { %v2531_v26 = vadd.f32 %v2529_v59, %v2473_v40 }
 0x885   :  { %2539 = vrot.lane.b32.xlu1 %v2531_v26, %s4847_s12  ;;  %v4343_v10 = vmul.f32 -1.442695, %v2531_v26 }
 0x887   :  { %4633 = vpow2.f32 %v4343_v10 }
 0x891   :  { %v4634_v27 = vpop.eup %4633 }
 0x892   :  { %v2535_v16 = vadd.f32 1.0, %v4634_v27 }
 0x894   :  { %4635 = vrcp.f32 %v2535_v16 }
 0x89e   :  { %v4636_v22 = vpop.eup %4635 }
 0x89f   :  { %v2544_v29 = vmul.f32 %v4636_v22, %v2456_v28  ;;  %v2553_v47 = vrot.slane %v4636_v22, 2 }
 0x8f7   :  { %v2540_v53 = vpop.permute.xlu1 %2539 }
 0x8f8   :  { %v2541_v37 = vrot.slane %v2540_v53, 2 }
 0x8fa   :  { %4637 = vtanh.f32 %v2541_v37  ;;  %v6842_v37 = vld [vmem:[#allocation42_spill] sm:$0xff] }
 0x904   :  { %v4638_v50 = vpop.eup %4637 }
 0x905   :  { %v2545_v57 = vmul.f32 %v4638_v50, %v4636_v22  ;;  %v2661_v22 = vrot.slane %v6842_v37, 4 }
 0x907   :  { %2547 = vrot.lane.b32.xlu0 %v2545_v57, %s4847_s12 }
 0x979   :  { %v2548_v49 = vpop.permute.xlu0 %2547 }
 0x97a   :  { %v2550_v43 = vadd.f32 %v2548_v49, %v2544_v29 }
 0x97c   :  { %4639 = vtanh.f32 %v2550_v43 }
 0x986   :  { %v4640_v52 = vpop.eup %4639 }
 0x987   :  { %2556 = vrot.lane.b32.xlu1 %v4640_v52, %s4847_s12 }
 0x9f9   :  { %v2557_v18 = vpop.permute.xlu1 %2556 }
 0x9fa   :  { %v6142_v45 = vmul.f32 %v2557_v18, %v2553_v47 }
 0x9fc   :  { %v2569_v60 = vpack.c.bf16 %v6142_v45, %v6142_v45 }
 0x9fe   :  { %4344 = vmatmul.mubr.msk.bf16.vlgmr.msra.gmra.mrb[40].mxu0 %vm2193_vm3, %v2569_v60 }
 0x9ff   :  { %2762 = vmatpush1.bf16.msra.mxu0 %v6049_v20  ;;  %2793 = vmatprep.mubr.bf16.mxu0 %v6839_v33 }
 0xa00   :  { %2763 = vmatprep.subr.bf16.mxu0 %v6056_v51 }
 0xa03   :  { %2764 = vmatpush1.bf16.msra.mxu0 %v6062_v9 }
 0xa04   :  { %2765 = vmatprep.subr.bf16.mxu0 %v6068_v24 }
 0xa07   :  { %2766 = vmatpush1.bf16.msra.mxu0 %v6074_v46 }
 0xa08   :  { %2767 = vmatprep.subr.bf16.mxu0 %v6080_v54 }
 0xa0b   :  { %2768 = vmatpush1.bf16.msra.mxu0 %v6086_v42 }
 0xa0c   :  { %2949 = vmatprep.subr.bf16.mxu0 %v6092_v39 }
 0xad1   :  { %v2607_v34 = vpop.f32.mrb[40].mxu0 }
 0xad2   :  { %v2609_v35 = vpop.f32.mrb[41].mxu0 }
 0xad3   :  { %v2616_v41 = vcombine.low %v2607_v34, %v2609_v35  ;;  %v2611_v17 = vpop.f32.mrb[42].mxu0 }
 0xad4   :  { %v2612_v38 = vpop.f32.mrb[43].mxu0 }
 0xad5   :  { %v2623_v8 = vrot.slane %v2616_v41, %v4930_v21 }
 0xad7   :  { %v2625_v2 = vadd.f32 %v2623_v8, %v2567_v25 }
 0xad9   :  { %2633 = vrot.lane.b32.xlu0 %v2625_v2, %s4847_s12  ;;  %v4345_v13 = vmul.f32 -1.442695, %v2625_v2 }
 0xadb   :  { %4641 = vpow2.f32 %v4345_v13 }
 0xae5   :  { %v4642_v11 = vpop.eup %4641 }
 0xae6   :  { %v2629_v5 = vadd.f32 1.0, %v4642_v11 }
 0xae8   :  { %4643 = vrcp.f32 %v2629_v5 }
 0xaf2   :  { %v4644_v32 = vpop.eup %4643 }
 0xaf3   :  { %v2638_v62 = vmul.f32 %v4644_v32, %v2550_v43  ;;  %v2647_v61 = vrot.slane %v4644_v32, 2 }
 0xb4b   :  { %v2634_v30 = vpop.permute.xlu0 %2633 }
 0xb4c   :  { %v2635_v28 = vrot.slane %v2634_v30, 2 }
 0xb4e   :  { %4645 = vtanh.f32 %v2635_v28 }
 0xb58   :  { %v4646_v63 = vpop.eup %4645 }
 0xb59   :  { %v2639_v4 = vmul.f32 %v4646_v63, %v4644_v32  ;;  %v6843_v63 = vld [vmem:[#allocation40_spill] sm:$0xff] }
 0xb5b   :  { %2641 = vrot.lane.b32.xlu1 %v2639_v4, %s4847_s12  ;;  %v2755_v4 = vrot.slane %v6843_v63, 4 }
 0xbcd   :  { %v2642_v14 = vpop.permute.xlu1 %2641 }
 0xbce   :  { %v2644_v56 = vadd.f32 %v2642_v14, %v2638_v62 }
 0xbd0   :  { %4647 = vtanh.f32 %v2644_v56 }
 0xbda   :  { %v4648_v7 = vpop.eup %4647 }
 0xbdb   :  { %2650 = vrot.lane.b32.xlu0 %v4648_v7, %s4847_s12 }
 0xc4d   :  { %v2651_v15 = vpop.permute.xlu0 %2650 }
 0xc4e   :  { %v6161_v19 = vmul.f32 %v2651_v15, %v2647_v61 }
 0xc50   :  { %v2663_v59 = vpack.c.bf16 %v6161_v19, %v6161_v19 }
 0xc52   :  { %4346 = vmatmul.mubr.msk.bf16.vlgmr.msra.gmra.mrb[40].mxu1 %vm2193_vm3, %v2663_v59 }
 0xc53   :  { %2856 = vmatpush1.bf16.msra.mxu1 %v6049_v20  ;;  %2887 = vmatprep.mubr.bf16.mxu1 %v6839_v33 }
 0xc54   :  { %2857 = vmatprep.subr.bf16.mxu1 %v6056_v51 }
 0xc57   :  { %2858 = vmatpush1.bf16.msra.mxu1 %v6062_v9 }
 0xc58   :  { %2859 = vmatprep.subr.bf16.mxu1 %v6068_v24 }
 0xc5b   :  { %2860 = vmatpush1.bf16.msra.mxu1 %v6074_v46 }
 0xc5c   :  { %2861 = vmatprep.subr.bf16.mxu1 %v6080_v54 }
 0xc5f   :  { %2862 = vmatpush1.bf16.msra.mxu1 %v6086_v42 }
 0xc60   :  { %3043 = vmatprep.subr.bf16.mxu1 %v6092_v39 }
 0xd25   :  { %v2701_v40 = vpop.f32.mrb[40].mxu1 }
 0xd26   :  { %v2703_v26 = vpop.f32.mrb[41].mxu1 }
 0xd27   :  { %v2710_v10 = vcombine.low %v2701_v40, %v2703_v26  ;;  %v2705_v27 = vpop.f32.mrb[42].mxu1 }
 0xd28   :  { %v2706_v16 = vpop.f32.mrb[43].mxu1 }
 0xd29   :  { %v2717_v53 = vrot.slane %v2710_v10, %v4930_v21 }
 0xd2b   :  { %v2719_v50 = vadd.f32 %v2717_v53, %v2661_v22 }
 0xd2d   :  { %2727 = vrot.lane.b32.xlu1 %v2719_v50, %s4847_s12  ;;  %v4347_v57 = vmul.f32 -1.442695, %v2719_v50 }
 0xd2f   :  { %4649 = vpow2.f32 %v4347_v57 }
 0xd39   :  { %v4650_v29 = vpop.eup %4649 }
 0xd3a   :  { %v2723_v49 = vadd.f32 1.0, %v4650_v29 }
 0xd3c   :  { %4651 = vrcp.f32 %v2723_v49 }
 0xd46   :  { %v4652_v47 = vpop.eup %4651 }
 0xd47   :  { %v2732_v34 = vmul.f32 %v4652_v47, %v2644_v56  ;;  %v2741_v38 = vrot.slane %v4652_v47, 2 }
 0xd9f   :  { %v2728_v43 = vpop.permute.xlu1 %2727 }
 0xda0   :  { %v2729_v52 = vrot.slane %v2728_v43, 2 }
 0xda2   :  { %4653 = vtanh.f32 %v2729_v52 }
 0xdac   :  { %v4654_v18 = vpop.eup %4653 }
 0xdad   :  { %v2733_v60 = vmul.f32 %v4654_v18, %v4652_v47 }
 0xdaf   :  { %2735 = vrot.lane.b32.xlu0 %v2733_v60, %s4847_s12  ;;  %v6844_v60 = vld [vmem:[#allocation54_spill] sm:$0xff] }
 0xe21   :  { %v2736_v35 = vpop.permute.xlu0 %2735 }
 0xe22   :  { %v2738_v41 = vadd.f32 %v2736_v35, %v2732_v34  ;;  %v2849_v34 = vrot.slane %v6844_v60, 4 }
 0xe24   :  { %4655 = vtanh.f32 %v2738_v41 }
 0xe2e   :  { %v4656_v17 = vpop.eup %4655 }
 0xe2f   :  { %2744 = vrot.lane.b32.xlu1 %v4656_v17, %s4847_s12 }
 0xea1   :  { %v2745_v8 = vpop.permute.xlu1 %2744 }
 0xea2   :  { %v6180_v25 = vmul.f32 %v2745_v8, %v2741_v38 }
 0xea4   :  { %v2757_v2 = vpack.c.bf16 %v6180_v25, %v6180_v25 }
 0xea6   :  { %4348 = vmatmul.mubr.msk.bf16.vlgmr.msra.gmra.mrb[44].mxu0 %vm2193_vm3, %v2757_v2 }
 0xea7   :  { %2950 = vmatpush1.bf16.msra.mxu0 %v6049_v20  ;;  %2981 = vmatprep.mubr.bf16.mxu0 %v6839_v33 }
 0xea8   :  { %2951 = vmatprep.subr.bf16.mxu0 %v6056_v51 }
 0xeab   :  { %2952 = vmatpush1.bf16.msra.mxu0 %v6062_v9 }
 0xeac   :  { %2953 = vmatprep.subr.bf16.mxu0 %v6068_v24 }
 0xeaf   :  { %2954 = vmatpush1.bf16.msra.mxu0 %v6074_v46 }
 0xeb0   :  { %2955 = vmatprep.subr.bf16.mxu0 %v6080_v54 }
 0xeb3   :  { %2956 = vmatpush1.bf16.msra.mxu0 %v6086_v42 }
 0xeb4   :  { %3137 = vmatprep.subr.bf16.mxu0 %v6092_v39 }
 0xf79   :  { %v2795_v13 = vpop.f32.mrb[44].mxu0 }
 0xf7a   :  { %v2797_v11 = vpop.f32.mrb[45].mxu0 }
 0xf7b   :  { %v2804_v5 = vcombine.low %v2795_v13, %v2797_v11  ;;  %v2799_v30 = vpop.f32.mrb[46].mxu0 }
 0xf7c   :  { %v2800_v28 = vpop.f32.mrb[47].mxu0 }
 0xf7d   :  { %v2811_v32 = vrot.slane %v2804_v5, %v4930_v21 }
 0xf7f   :  { %v2813_v62 = vadd.f32 %v2811_v32, %v2755_v4 }
 0xf81   :  { %2821 = vrot.lane.b32.xlu0 %v2813_v62, %s4847_s12  ;;  %v4349_v14 = vmul.f32 -1.442695, %v2813_v62 }
 0xf83   :  { %4657 = vpow2.f32 %v4349_v14 }
 0xf8d   :  { %v4658_v56 = vpop.eup %4657 }
 0xf8e   :  { %v2817_v7 = vadd.f32 1.0, %v4658_v56 }
 0xf90   :  { %4659 = vrcp.f32 %v2817_v7 }
 0xf9a   :  { %v4660_v59 = vpop.eup %4659 }
 0xf9b   :  { %v2826_v10 = vmul.f32 %v4660_v59, %v2738_v41  ;;  %v2835_v37 = vrot.slane %v4660_v59, 2 }
 0xff3   :  { %v2822_v61 = vpop.permute.xlu0 %2821 }
 0xff4   :  { %v2823_v15 = vrot.slane %v2822_v61, 2 }
 0xff6   :  { %4661 = vtanh.f32 %v2823_v15 }
0x1000   :  { %v4662_v40 = vpop.eup %4661 }
0x1001   :  { %v2827_v26 = vmul.f32 %v4662_v40, %v4660_v59 }
0x1003   :  { %2829 = vrot.lane.b32.xlu1 %v2827_v26, %s4847_s12 }
0x1075   :  { %v2830_v27 = vpop.permute.xlu1 %2829 }
0x1076   :  { %v2832_v16 = vadd.f32 %v2830_v27, %v2826_v10  ;;  %v6845_v10 = vld [vmem:[#allocation44_spill] sm:$0xff] }
0x1077   :  { %v2943_v27 = vrot.slane %v6845_v10, 4 }
0x1078   :  { %4663 = vtanh.f32 %v2832_v16 }
0x1082   :  { %v4664_v53 = vpop.eup %4663 }
0x1083   :  { %2838 = vrot.lane.b32.xlu0 %v4664_v53, %s4847_s12 }
0x10f5   :  { %v2839_v22 = vpop.permute.xlu0 %2838 }
0x10f6   :  { %v6199_v50 = vmul.f32 %v2839_v22, %v2835_v37 }
0x10f8   :  { %v2851_v57 = vpack.c.bf16 %v6199_v50, %v6199_v50 }
0x10fa   :  { %4350 = vmatmul.mubr.msk.bf16.vlgmr.msra.gmra.mrb[44].mxu1 %vm2193_vm3, %v2851_v57 }
0x10fb   :  { %3044 = vmatpush1.bf16.msra.mxu1 %v6049_v20  ;;  %3075 = vmatprep.mubr.bf16.mxu1 %v6839_v33 }
0x10fc   :  { %3045 = vmatprep.subr.bf16.mxu1 %v6056_v51 }
0x10ff   :  { %3046 = vmatpush1.bf16.msra.mxu1 %v6062_v9 }
0x1100   :  { %3047 = vmatprep.subr.bf16.mxu1 %v6068_v24 }
0x1103   :  { %3048 = vmatpush1.bf16.msra.mxu1 %v6074_v46 }
0x1104   :  { %3049 = vmatprep.subr.bf16.mxu1 %v6080_v54 }
0x1107   :  { %3050 = vmatpush1.bf16.msra.mxu1 %v6086_v42 }
0x1108   :  { %3231 = vmatprep.subr.bf16.mxu1 %v6092_v39 }
0x11cd   :  { %v2889_v29 = vpop.f32.mrb[44].mxu1 }
0x11ce   :  { %v2891_v49 = vpop.f32.mrb[45].mxu1 }
0x11cf   :  { %v2898_v43 = vcombine.low %v2889_v29, %v2891_v49  ;;  %v2893_v52 = vpop.f32.mrb[46].mxu1 }
0x11d0   :  { %v2894_v47 = vpop.f32.mrb[47].mxu1 }
0x11d1   :  { %v2905_v18 = vrot.slane %v2898_v43, %v4930_v21 }
0x11d3   :  { %v2907_v35 = vadd.f32 %v2905_v18, %v2849_v34 }
0x11d5   :  { %2915 = vrot.lane.b32.xlu1 %v2907_v35, %s4847_s12  ;;  %v4351_v41 = vmul.f32 -1.442695, %v2907_v35 }
0x11d7   :  { %4665 = vpow2.f32 %v4351_v41 }
0x11e1   :  { %v4666_v17 = vpop.eup %4665 }
0x11e2   :  { %v2911_v38 = vadd.f32 1.0, %v4666_v17 }
0x11e4   :  { %4667 = vrcp.f32 %v2911_v38 }
0x11ee   :  { %v4668_v13 = vpop.eup %4667 }
0x11ef   :  { %v2920_v30 = vmul.f32 %v4668_v13, %v2832_v16  ;;  %v2929_v4 = vrot.slane %v4668_v13, 2 }
0x1247   :  { %v2916_v8 = vpop.permute.xlu1 %2915 }
0x1248   :  { %v2917_v2 = vrot.slane %v2916_v8, 2 }
0x124a   :  { %4669 = vtanh.f32 %v2917_v2 }
0x1254   :  { %v4670_v11 = vpop.eup %4669 }
0x1255   :  { %v2921_v5 = vmul.f32 %v4670_v11, %v4668_v13 }
0x1257   :  { %2923 = vrot.lane.b32.xlu0 %v2921_v5, %s4847_s12 }
0x12c9   :  { %v2924_v28 = vpop.permute.xlu0 %2923 }
0x12ca   :  { %v2926_v32 = vadd.f32 %v2924_v28, %v2920_v30  ;;  %v6846_v28 = vld [vmem:[#allocation41_spill] sm:$0xff] }
0x12cc   :  { %4671 = vtanh.f32 %v2926_v32 }
0x12d6   :  { %v4672_v63 = vpop.eup %4671 }
0x12d7   :  { %2932 = vrot.lane.b32.xlu1 %v4672_v63, %s4847_s12 }
0x1349   :  { %v2933_v62 = vpop.permute.xlu1 %2932 }
0x134a   :  { %v6218_v14 = vmul.f32 %v2933_v62, %v2929_v4 }
0x134c   :  { %v2945_v56 = vpack.c.bf16 %v6218_v14, %v6218_v14 }
0x134e   :  { %4352 = vmatmul.mubr.msk.bf16.vlgmr.msra.gmra.mrb[48].mxu0 %vm2193_vm3, %v2945_v56 }
0x134f   :  { %3138 = vmatpush1.bf16.msra.mxu0 %v6049_v20  ;;  %3169 = vmatprep.mubr.bf16.mxu0 %v6839_v33 }
0x1350   :  { %3139 = vmatprep.subr.bf16.mxu0 %v6056_v51 }
0x1353   :  { %3140 = vmatpush1.bf16.msra.mxu0 %v6062_v9 }
0x1354   :  { %3141 = vmatprep.subr.bf16.mxu0 %v6068_v24 }
0x1357   :  { %3142 = vmatpush1.bf16.msra.mxu0 %v6074_v46 }
0x1358   :  { %3143 = vmatprep.subr.bf16.mxu0 %v6080_v54 }
0x135b   :  { %3144 = vmatpush1.bf16.msra.mxu0 %v6086_v42 }
0x135c   :  { %3325 = vmatprep.subr.bf16.mxu0 %v6092_v39 }
0x1421   :  { %v2983_v7 = vpop.f32.mrb[48].mxu0 }
0x1422   :  { %v2985_v61 = vpop.f32.mrb[49].mxu0 }
0x1423   :  { %v2992_v15 = vcombine.low %v2983_v7, %v2985_v61  ;;  %v2987_v59 = vpop.f32.mrb[50].mxu0 }
0x1424   :  { %v2988_v40 = vpop.f32.mrb[51].mxu0 }
0x1425   :  { %v2999_v26 = vrot.slane %v2992_v15, %v4930_v21 }
0x1427   :  { %v3001_v16 = vadd.f32 %v2999_v26, %v2943_v27 }
0x1429   :  { %3009 = vrot.lane.b32.xlu0 %v3001_v16, %s4847_s12  ;;  %v4353_v53 = vmul.f32 -1.442695, %v3001_v16 }
0x142b   :  { %4673 = vpow2.f32 %v4353_v53 }
0x1435   :  { %v4674_v37 = vpop.eup %4673 }
0x1436   :  { %v3005_v22 = vadd.f32 1.0, %v4674_v37 }
0x1438   :  { %4675 = vrcp.f32 %v3005_v22 }
0x1442   :  { %v4676_v49 = vpop.eup %4675 }
0x1443   :  { %v3014_v47 = vmul.f32 %v4676_v49, %v2926_v32  ;;  %v3023_v35 = vrot.slane %v4676_v49, 2  ;;  %v3037_v32 = vrot.slane %v6846_v28, 4 }
0x149b   :  { %v3010_v57 = vpop.permute.xlu0 %3009 }
0x149c   :  { %v3011_v29 = vrot.slane %v3010_v57, 2 }
0x149e   :  { %4677 = vtanh.f32 %v3011_v29 }
0x14a8   :  { %v4678_v43 = vpop.eup %4677 }
0x14a9   :  { %v3015_v52 = vmul.f32 %v4678_v43, %v4676_v49 }
0x14ab   :  { %3017 = vrot.lane.b32.xlu1 %v3015_v52, %s4847_s12 }
0x151d   :  { %v3018_v18 = vpop.permute.xlu1 %3017 }
0x151e   :  { %v3020_v60 = vadd.f32 %v3018_v18, %v3014_v47 }
0x1520   :  { %4679 = vtanh.f32 %v3020_v60 }
0x152a   :  { %v4680_v34 = vpop.eup %4679 }
0x152b   :  { %3026 = vrot.lane.b32.xlu0 %v4680_v34, %s4847_s12 }
0x159d   :  { %v3027_v41 = vpop.permute.xlu0 %3026 }
0x159e   :  { %v6237_v17 = vmul.f32 %v3027_v41, %v3023_v35 }
0x15a0   :  { %v3039_v38 = vpack.c.bf16 %v6237_v17, %v6237_v17 }
0x15a2   :  { %4354 = vmatmul.mubr.msk.bf16.vlgmr.msra.gmra.mrb[48].mxu1 %vm2193_vm3, %v3039_v38 }
0x15a3   :  { %3232 = vmatpush1.bf16.msra.mxu1 %v6049_v20  ;;  %3263 = vmatprep.mubr.bf16.mxu1 %v6839_v33 }
0x15a4   :  { %3233 = vmatprep.subr.bf16.mxu1 %v6056_v51 }
0x15a7   :  { %3234 = vmatpush1.bf16.msra.mxu1 %v6062_v9 }
0x15a8   :  { %3235 = vmatprep.subr.bf16.mxu1 %v6068_v24 }
0x15ab   :  { %3236 = vmatpush1.bf16.msra.mxu1 %v6074_v46 }
0x15ac   :  { %3237 = vmatprep.subr.bf16.mxu1 %v6080_v54 }
0x15af   :  { %3238 = vmatpush1.bf16.msra.mxu1 %v6086_v42 }
0x15b0   :  { %3419 = vmatprep.subr.bf16.mxu1 %v6092_v39 }
0x1675   :  { %v3077_v8 = vpop.f32.mrb[48].mxu1 }
0x1676   :  { %v3079_v2 = vpop.f32.mrb[49].mxu1 }
0x1677   :  { %v3086_v13 = vcombine.low %v3077_v8, %v3079_v2  ;;  %v3081_v11 = vpop.f32.mrb[50].mxu1 }
0x1678   :  { %v3082_v5 = vpop.f32.mrb[51].mxu1 }
0x1679   :  { %v3093_v30 = vrot.slane %v3086_v13, %v4930_v21 }
0x167b   :  { %v3095_v63 = vadd.f32 %v3093_v30, %v3037_v32 }
0x167d   :  { %3103 = vrot.lane.b32.xlu1 %v3095_v63, %s4847_s12  ;;  %v4355_v4 = vmul.f32 -1.442695, %v3095_v63 }
0x167f   :  { %4681 = vpow2.f32 %v4355_v4 }
0x1689   :  { %v4682_v62 = vpop.eup %4681 }
0x168a   :  { %v3099_v56 = vadd.f32 1.0, %v4682_v62 }
0x168c   :  { %4683 = vrcp.f32 %v3099_v56 }
0x1696   :  { %v4684_v15 = vpop.eup %4683 }
0x1697   :  { %v3108_v26 = vmul.f32 %v4684_v15, %v3020_v60  ;;  %v3117_v53 = vrot.slane %v4684_v15, 2  ;;  %v6847_v60 = vld [vmem:[#allocation55_spill] sm:$0xff] }
0x1698   :  { %v3131_v34 = vrot.slane %v6847_v60, 4 }
0x16ef   :  { %v3104_v7 = vpop.permute.xlu1 %3103 }
0x16f0   :  { %v3105_v61 = vrot.slane %v3104_v7, 2 }
0x16f2   :  { %4685 = vtanh.f32 %v3105_v61 }
0x16fc   :  { %v4686_v59 = vpop.eup %4685 }
0x16fd   :  { %v3109_v40 = vmul.f32 %v4686_v59, %v4684_v15 }
0x16ff   :  { %3111 = vrot.lane.b32.xlu0 %v3109_v40, %s4847_s12 }
0x1771   :  { %v3112_v10 = vpop.permute.xlu0 %3111 }
0x1772   :  { %v3114_v27 = vadd.f32 %v3112_v10, %v3108_v26 }
0x1774   :  { %4687 = vtanh.f32 %v3114_v27 }
0x177e   :  { %v4688_v16 = vpop.eup %4687 }
0x177f   :  { %3120 = vrot.lane.b32.xlu1 %v4688_v16, %s4847_s12  ;;  %v6848_v16 = vld [vmem:[#allocation56_spill] sm:$0xff] }
0x17f1   :  { %v3121_v37 = vpop.permute.xlu1 %3120 }
0x17f2   :  { %v6256_v22 = vmul.f32 %v3121_v37, %v3117_v53  ;;  %v3225_v53 = vrot.slane %v6848_v16, 4 }
0x17f4   :  { %v3133_v57 = vpack.c.bf16 %v6256_v22, %v6256_v22 }
0x17f6   :  { %4356 = vmatmul.mubr.msk.bf16.vlgmr.msra.gmra.mrb[52].mxu0 %vm2193_vm3, %v3133_v57 }
0x17f7   :  { %3326 = vmatpush1.bf16.msra.mxu0 %v6049_v20  ;;  %3357 = vmatprep.mubr.bf16.mxu0 %v6839_v33 }
0x17f8   :  { %3327 = vmatprep.subr.bf16.mxu0 %v6056_v51 }
0x17fb   :  { %3328 = vmatpush1.bf16.msra.mxu0 %v6062_v9 }
0x17fc   :  { %3329 = vmatprep.subr.bf16.mxu0 %v6068_v24 }
0x17ff   :  { %3330 = vmatpush1.bf16.msra.mxu0 %v6074_v46 }
0x1800   :  { %3331 = vmatprep.subr.bf16.mxu0 %v6080_v54 }
0x1803   :  { %3332 = vmatpush1.bf16.msra.mxu0 %v6086_v42 }
0x1804   :  { %3513 = vmatprep.subr.bf16.mxu0 %v6092_v39 }
0x18c9   :  { %v3171_v29 = vpop.f32.mrb[52].mxu0 }
0x18ca   :  { %v3173_v49 = vpop.f32.mrb[53].mxu0 }
0x18cb   :  { %v3180_v43 = vcombine.low %v3171_v29, %v3173_v49  ;;  %v3175_v52 = vpop.f32.mrb[54].mxu0 }
0x18cc   :  { %v3176_v47 = vpop.f32.mrb[55].mxu0 }
0x18cd   :  { %v3187_v18 = vrot.slane %v3180_v43, %v4930_v21 }
0x18cf   :  { %v3189_v35 = vadd.f32 %v3187_v18, %v3131_v34 }
0x18d1   :  { %3197 = vrot.lane.b32.xlu0 %v3189_v35, %s4847_s12  ;;  %v4357_v41 = vmul.f32 -1.442695, %v3189_v35 }
0x18d3   :  { %4689 = vpow2.f32 %v4357_v41 }
0x18dd   :  { %v4690_v38 = vpop.eup %4689 }
0x18de   :  { %v3193_v8 = vadd.f32 1.0, %v4690_v38 }
0x18e0   :  { %4691 = vrcp.f32 %v3193_v8 }
0x18ea   :  { %v4692_v11 = vpop.eup %4691 }
0x18eb   :  { %v3202_v28 = vmul.f32 %v4692_v11, %v3114_v27  ;;  %v3211_v62 = vrot.slane %v4692_v11, 2 }
0x1943   :  { %v3198_v2 = vpop.permute.xlu0 %3197 }
0x1944   :  { %v3199_v13 = vrot.slane %v3198_v2, 2 }
0x1946   :  { %4693 = vtanh.f32 %v3199_v13 }
0x1950   :  { %v4694_v5 = vpop.eup %4693 }
0x1951   :  { %v3203_v30 = vmul.f32 %v4694_v5, %v4692_v11 }
0x1953   :  { %3205 = vrot.lane.b32.xlu1 %v3203_v30, %s4847_s12 }
0x19c5   :  { %v3206_v32 = vpop.permute.xlu1 %3205 }
0x19c6   :  { %v3208_v63 = vadd.f32 %v3206_v32, %v3202_v28 }
0x19c8   :  { %4695 = vtanh.f32 %v3208_v63 }
0x19d2   :  { %v4696_v4 = vpop.eup %4695 }
0x19d3   :  { %3214 = vrot.lane.b32.xlu0 %v4696_v4, %s4847_s12  ;;  %v3319_v4 = vrot.slane %v5826_v55, 4 }
0x1a45   :  { %v3215_v56 = vpop.permute.xlu0 %3214 }
0x1a46   :  { %v6275_v7 = vmul.f32 %v3215_v56, %v3211_v62 }
0x1a48   :  { %v3227_v61 = vpack.c.bf16 %v6275_v7, %v6275_v7 }
0x1a4a   :  { %4358 = vmatmul.mubr.msk.bf16.vlgmr.msra.gmra.mrb[52].mxu1 %vm2193_vm3, %v3227_v61 }
0x1a4b   :  { %3420 = vmatpush1.bf16.msra.mxu1 %v6049_v20  ;;  %3451 = vmatprep.mubr.bf16.mxu1 %v6839_v33 }
0x1a4c   :  { %3421 = vmatprep.subr.bf16.mxu1 %v6056_v51 }
0x1a4f   :  { %3422 = vmatpush1.bf16.msra.mxu1 %v6062_v9 }
0x1a50   :  { %3423 = vmatprep.subr.bf16.mxu1 %v6068_v24 }
0x1a53   :  { %3424 = vmatpush1.bf16.msra.mxu1 %v6074_v46 }
0x1a54   :  { %3425 = vmatprep.subr.bf16.mxu1 %v6080_v54 }
0x1a57   :  { %3426 = vmatpush1.bf16.msra.mxu1 %v6086_v42 }
0x1a58   :  { %3607 = vmatprep.subr.bf16.mxu1 %v6092_v39 }
0x1b1d   :  { %v3265_v15 = vpop.f32.mrb[52].mxu1 }
0x1b1e   :  { %v3267_v59 = vpop.f32.mrb[53].mxu1 }
0x1b1f   :  { %v3274_v40 = vcombine.low %v3265_v15, %v3267_v59  ;;  %v3269_v26 = vpop.f32.mrb[54].mxu1 }
0x1b20   :  { %v3270_v10 = vpop.f32.mrb[55].mxu1 }
0x1b21   :  { %v3281_v27 = vrot.slane %v3274_v40, %v4930_v21 }
0x1b23   :  { %v3283_v37 = vadd.f32 %v3281_v27, %v3225_v53 }
0x1b25   :  { %3291 = vrot.lane.b32.xlu1 %v3283_v37, %s4847_s12  ;;  %v4359_v57 = vmul.f32 -1.442695, %v3283_v37 }
0x1b27   :  { %4697 = vpow2.f32 %v4359_v57 }
0x1b31   :  { %v4698_v29 = vpop.eup %4697 }
0x1b32   :  { %v3287_v49 = vadd.f32 1.0, %v4698_v29 }
0x1b34   :  { %4699 = vrcp.f32 %v3287_v49 }
0x1b3e   :  { %v4700_v39 = vpop.eup %4699 }
0x1b3f   :  { %v3296_v60 = vmul.f32 %v4700_v39, %v3208_v63  ;;  %v3305_v38 = vrot.slane %v4700_v39, 2 }
0x1b97   :  { %v3292_v43 = vpop.permute.xlu1 %3291 }
0x1b98   :  { %v3293_v52 = vrot.slane %v3292_v43, 2 }
0x1b9a   :  { %4701 = vtanh.f32 %v3293_v52 }
0x1ba4   :  { %v4702_v47 = vpop.eup %4701 }
0x1ba5   :  { %v3297_v18 = vmul.f32 %v4702_v47, %v4700_v39 }
0x1ba7   :  { %3299 = vrot.lane.b32.xlu0 %v3297_v18, %s4847_s12 }
0x1c19   :  { %v3300_v34 = vpop.permute.xlu0 %3299 }
0x1c1a   :  { %v3302_v35 = vadd.f32 %v3300_v34, %v3296_v60 }
0x1c1c   :  { %4703 = vtanh.f32 %v3302_v35 }
0x1c26   :  { %v4704_v41 = vpop.eup %4703 }
0x1c27   :  { %3308 = vrot.lane.b32.xlu1 %v4704_v41, %s4847_s12 }
0x1c99   :  { %v3309_v8 = vpop.permute.xlu1 %3308 }
0x1c9a   :  { %v6294_v2 = vmul.f32 %v3309_v8, %v3305_v38 }
0x1c9c   :  { %v3321_v13 = vpack.c.bf16 %v6294_v2, %v6294_v2 }
0x1c9e   :  { %4360 = vmatmul.mubr.msk.bf16.vlgmr.msra.gmra.mrb[56].mxu0 %vm2193_vm3, %v3321_v13 }
0x1c9f   :  { %3514 = vmatpush1.bf16.msra.mxu0 %v6049_v20  ;;  %3545 = vmatprep.mubr.bf16.mxu0 %v6839_v33 }
0x1ca0   :  { %3515 = vmatprep.subr.bf16.mxu0 %v6056_v51 }
0x1ca3   :  { %3516 = vmatpush1.bf16.msra.mxu0 %v6062_v9 }
0x1ca4   :  { %3517 = vmatprep.subr.bf16.mxu0 %v6068_v24 }
0x1ca7   :  { %3518 = vmatpush1.bf16.msra.mxu0 %v6074_v46 }
0x1ca8   :  { %3519 = vmatprep.subr.bf16.mxu0 %v6080_v54 }
0x1cab   :  { %3520 = vmatpush1.bf16.msra.mxu0 %v6086_v42 }
0x1d71   :  { %v3359_v11 = vpop.f32.mrb[56].mxu0 }
0x1d72   :  { %v3361_v5 = vpop.f32.mrb[57].mxu0 }
0x1d73   :  { %v3368_v30 = vcombine.low %v3359_v11, %v3361_v5  ;;  %v3363_v28 = vpop.f32.mrb[58].mxu0 }
0x1d74   :  { %v3364_v32 = vpop.f32.mrb[59].mxu0 }
0x1d75   :  { %v3375_v63 = vrot.slane %v3368_v30, %v4930_v21 }
0x1d77   :  { %v3377_v62 = vadd.f32 %v3375_v63, %v3319_v4 }
0x1d79   :  { %3385 = vrot.lane.b32.xlu0 %v3377_v62, %s4847_s12  ;;  %v4361_v56 = vmul.f32 -1.442695, %v3377_v62 }
0x1d7b   :  { %4705 = vpow2.f32 %v4361_v56 }
0x1d85   :  { %v4706_v61 = vpop.eup %4705 }
0x1d86   :  { %v3381_v15 = vadd.f32 1.0, %v4706_v61 }
0x1d88   :  { %4707 = vrcp.f32 %v3381_v15  ;;  %v3507_v15 = vrot.slane %v5842_v1, 4  ;;  %v2135_v1 = vld [vmem:[%s6636_s1] sm:$0x3] }
0x1d92   :  { %v4708_v26 = vpop.eup %4707 }
0x1d93   :  { %v3390_v16 = vmul.f32 %v4708_v26, %v3302_v35  ;;  %v3399_v57 = vrot.slane %v4708_v26, 2 }
0x1deb   :  { %v3386_v59 = vpop.permute.xlu0 %3385 }
0x1dec   :  { %v3387_v40 = vrot.slane %v3386_v59, 2 }
0x1dee   :  { %4709 = vtanh.f32 %v3387_v40 }
0x1df8   :  { %v4710_v10 = vpop.eup %4709 }
0x1df9   :  { %v3391_v27 = vmul.f32 %v4710_v10, %v4708_v26 }
0x1dfb   :  { %3393 = vrot.lane.b32.xlu1 %v3391_v27, %s4847_s12 }
0x1e6d   :  { %v3394_v53 = vpop.permute.xlu1 %3393 }
0x1e6e   :  { %v3396_v37 = vadd.f32 %v3394_v53, %v3390_v16 }
0x1e70   :  { %4711 = vtanh.f32 %v3396_v37 }
0x1e7a   :  { %v4712_v55 = vpop.eup %4711 }
0x1e7b   :  { %3402 = vrot.lane.b32.xlu0 %v4712_v55, %s4847_s12 }
0x1eed   :  { %v3403_v29 = vpop.permute.xlu0 %3402 }
0x1eee   :  { %v6312_v49 = vmul.f32 %v3403_v29, %v3399_v57  ;;  %v2137_v57 = vld [vmem:[%s6636_s1 + $0x4] sm:$0x3]  ;;  %v2138_v29 = vld [vmem:[%s6636_s1 + $0x6] sm:$0x3] }
0x1ef0   :  { %v3415_v43 = vpack.c.bf16 %v6312_v49, %v6312_v49 }
0x1ef2   :  { %4362 = vmatmul.mubr.msk.bf16.vlgmr.msra.gmra.mrb[56].mxu1 %vm2193_vm3, %v3415_v43  ;;  %v2140_v43 = vld [vmem:[%s6636_s1 + $0xa] sm:$0x3] }
0x1ef3   :  { %3608 = vmatpush1.bf16.msra.mxu1 %v6049_v20  ;;  %3639 = vmatprep.mubr.bf16.mxu1 %v6839_v33  ;;  %v3413_v33 = vrot.slane %v5828_v3, 4 }
0x1ef4   :  { %3609 = vmatprep.subr.bf16.mxu1 %v6056_v51 }
0x1ef7   :  { %3610 = vmatpush1.bf16.msra.mxu1 %v6062_v9 }
0x1ef8   :  { %3611 = vmatprep.subr.bf16.mxu1 %v6068_v24 }
0x1efb   :  { %3612 = vmatpush1.bf16.msra.mxu1 %v6074_v46 }
0x1efc   :  { %3613 = vmatprep.subr.bf16.mxu1 %v6080_v54 }
0x1eff   :  { %3614 = vmatpush1.bf16.msra.mxu1 %v6086_v42 }
0x1fc5   :  { %v3453_v52 = vpop.f32.mrb[56].mxu1 }
0x1fc6   :  { %v3455_v39 = vpop.f32.mrb[57].mxu1 }
0x1fc7   :  { %v3462_v47 = vcombine.low %v3453_v52, %v3455_v39  ;;  %v3457_v18 = vpop.f32.mrb[58].mxu1  ;;  %v2142_v52 = vld [vmem:[%s6636_s1 + $0xe] sm:$0x3]  ;;  %v2144_v39 = vld [vmem:[%s6636_s1 + $0x12] sm:$0x3] }
0x1fc8   :  { %v3458_v60 = vpop.f32.mrb[59].mxu1  ;;  %v2148_v18 = vld [vmem:[%s6636_s1 + $0x1a] sm:$0x3] }
0x1fc9   :  { %v3469_v20 = vrot.slane %v3462_v47, %v4930_v21  ;;  %v2146_v47 = vld [vmem:[%s6636_s1 + $0x16] sm:$0x3]  ;;  %v2150_v60 = vld [vmem:[%s6636_s1 + $0x1e] sm:$0x3] }
0x1fcb   :  { %v3471_v51 = vadd.f32 %v3469_v20, %v3413_v33 }
0x1fcd   :  { %3479 = vrot.lane.b32.xlu1 %v3471_v51, %s4847_s12  ;;  %v4363_v9 = vmul.f32 -1.442695, %v3471_v51 }
0x1fcf   :  { %4713 = vpow2.f32 %v4363_v9  ;;  %v3874_v9 = vld [vmem:[#allocation5 + $0x80] sm:$0xff] }
0x1fd9   :  { %v4714_v24 = vpop.eup %4713 }
0x1fda   :  { %v3475_v46 = vadd.f32 1.0, %v4714_v24  ;;  %v3875_v24 = vld [vmem:[#allocation5 + $0x88] sm:$0xff] }
0x1fdc   :  { %4715 = vrcp.f32 %v3475_v46  ;;  %v4455_v46 = vpack.c.bf16 %v3875_v24, %v3874_v9  ;;  %v3860_v9 = vld [vmem:[#allocation5 + $0x10] sm:$0xff]  ;;  %v3861_v24 = vld [vmem:[#allocation5 + $0x18] sm:$0xff] }
0x1fde   :  { %4456 = vmatprep.subr.bf16.mxu1 %v4455_v46  ;;  %v3878_v46 = vld [vmem:[#allocation5 + $0xa0] sm:$0xff] }
0x1fe6   :  { %v4716_v42 = vpop.eup %4715 }
0x1fe7   :  { %v3484_v38 = vmul.f32 %v4716_v42, %v3396_v37  ;;  %v3493_v11 = vrot.slane %v4716_v42, 2 }
0x203f   :  { %v3480_v34 = vpop.permute.xlu1 %3479 }
0x2040   :  { %v3481_v54 = vrot.slane %v3480_v34, 2 }
0x2042   :  { %4717 = vtanh.f32 %v3481_v54  ;;  %v2136_v54 = vld [vmem:[%s6636_s1 + $0x2] sm:$0x3] }
0x204c   :  { %v4718_v35 = vpop.eup %4717 }
0x204d   :  { %v3485_v41 = vmul.f32 %v4718_v35, %v4716_v42  ;;  %v2139_v42 = vld [vmem:[%s6636_s1 + $0x8] sm:$0x3]  ;;  %v2141_v35 = vld [vmem:[%s6636_s1 + $0xc] sm:$0x3] }
0x204f   :  { %3487 = vrot.lane.b32.xlu0 %v3485_v41, %s4847_s12  ;;  %v2143_v41 = vld [vmem:[%s6636_s1 + $0x10] sm:$0x3] }
0x20c1   :  { %v3488_v8 = vpop.permute.xlu0 %3487 }
0x20c2   :  { %v3490_v13 = vadd.f32 %v3488_v8, %v3484_v38  ;;  %v2145_v38 = vld [vmem:[%s6636_s1 + $0x14] sm:$0x3]  ;;  %v2147_v8 = vld [vmem:[%s6636_s1 + $0x18] sm:$0x3] }
0x20c4   :  { %4719 = vtanh.f32 %v3490_v13 }
0x20ce   :  { %v4720_v3 = vpop.eup %4719 }
0x20cf   :  { %3496 = vrot.lane.b32.xlu1 %v4720_v3, %s4847_s12  ;;  %v3744_v3 = vld [vmem:[%s6639_s4 + $0x8] sm:$0xff] }
0x2141   :  { %v3497_v5 = vpop.permute.xlu1 %3496 }
0x2142   :  { %v6330_v30 = vmul.f32 %v3497_v5, %v3493_v11  ;;  %v3746_v11 = vld [vmem:[%s6639_s4 + $0x18] sm:$0xff]  ;;  %v3743_v5 = vld [vmem:[%s6639_s4] sm:$0xff] }
0x2144   :  { %v3509_v28 = vpack.c.bf16 %v6330_v30, %v6330_v30 }
0x2146   :  { %4364 = vmatmul.mubr.msk.bf16.vlgmr.msra.gmra.mrb[60].mxu0 %vm2193_vm3, %v3509_v28  ;;  %v4447_v28 = vpack.c.bf16 %v3746_v11, %v3744_v3 }
0x2148   :  { %4448 = vmatprep.subr.bf16.mxu0 %v4447_v28  ;;  %v3865_v28 = vld [vmem:[#allocation5 + $0x38] sm:$0xff] }
0x2219   :  { %v3547_v32 = vpop.f32.mrb[60].mxu0 }
0x221a   :  { %v3549_v63 = vpop.f32.mrb[61].mxu0 }
0x221b   :  { %v3556_v4 = vcombine.low %v3547_v32, %v3549_v63  ;;  %v3551_v62 = vpop.f32.mrb[62].mxu0  ;;  %v3745_v32 = vld [vmem:[%s6639_s4 + $0x10] sm:$0xff] }
0x221c   :  { %v3552_v56 = vpop.f32.mrb[63].mxu0  ;;  %v4449_v63 = vpack.c.bf16 %v3745_v32, %v3743_v5  ;;  %v3750_v62 = vld [vmem:[%s6639_s4 + $0x38] sm:$0xff]  ;;  %v3864_v5 = vld [vmem:[#allocation5 + $0x30] sm:$0xff]  ;;  %v3882_v32 = vld [vmem:[#allocation5 + $0xc0] sm:$0xff] }
0x221d   :  { %v3563_v61 = vrot.slane %v3556_v4, %v4930_v21  ;;  %v3748_v4 = vld [vmem:[%s6639_s4 + $0x28] sm:$0xff]  ;;  %v3747_v56 = vld [vmem:[%s6639_s4 + $0x20] sm:$0xff] }
0x221e   :  { %4450 = vmatpush1.bf16.msra.mxu0 %v4449_v63  ;;  %v3883_v63 = vld [vmem:[#allocation5 + $0xc8] sm:$0xff] }
0x221f   :  { %v3565_v59 = vadd.f32 %v3563_v61, %v3507_v15  ;;  %v4451_v61 = vpack.c.bf16 %v3750_v62, %v3748_v4  ;;  %v3749_v15 = vld [vmem:[%s6639_s4 + $0x30] sm:$0xff]  ;;  %v4469_v62 = vpack.c.bf16 %v3865_v28, %v3864_v5 }
0x2221   :  { %3573 = vrot.lane.b32.xlu0 %v3565_v59, %s4847_s12  ;;  %v4365_v40 = vmul.f32 -1.442695, %v3565_v59  ;;  %v4453_v59 = vpack.c.bf16 %v3749_v15, %v3747_v56  ;;  %4452 = vmatprep.subr.bf16.mxu0 %v4451_v61  ;;  %v4471_v56 = vpack.c.bf16 %v3883_v63, %v3882_v32  ;;  %v3866_v61 = vld [vmem:[#allocation5 + $0x40] sm:$0xff]  ;;  %v3867_v15 = vld [vmem:[#allocation5 + $0x48] sm:$0xff] }
0x2222   :  { %v3870_v32 = vld [vmem:[#allocation5 + $0x60] sm:$0xff]  ;;  %v3871_v63 = vld [vmem:[#allocation5 + $0x68] sm:$0xff] }
0x2223   :  { %4721 = vpow2.f32 %v4365_v40  ;;  %v3752_v40 = vld [vmem:[%s6639_s4 + $0x48] sm:$0x1]  ;;  %4454 = vmatpush1.bf16.msra.mxu0 %v4453_v59  ;;  %v4758_v59 = vld [vmem:[%s6635_s0 + $0x4] sm:$0x3] }
0x2224   :  { %4368 = vmatprep.subr.msk.mxu0 %vm409_vm0, %v3752_v40 }
0x222d   :  { %v4722_v26 = vpop.eup %4721 }
0x222e   :  { %v3569_v10 = vadd.f32 1.0, %v4722_v26  ;;  %v3906_v26 = vld [vmem:[#allocation5 + $0x180] sm:$0xff] }
0x2230   :  { %4723 = vrcp.f32 %v3569_v10  ;;  %v4853_v10 = vmov 0.0  }
0x2231   :  { %3826 = vmatprep.mubr.f32.mxu0 %v4853_v10 }
0x223a   :  { %v6338_v53 = vpop.eup %4723 }
0x223b   :  { %v3578_v20 = vmul.f32 %v6338_v53, %v3490_v13  ;;  %v2149_v13 = vld [vmem:[%s6636_s1 + $0x1c] sm:$0x3] }
0x2293   :  { %v3574_v27 = vpop.permute.xlu0 %3573 }
0x2294   :  { %v3575_v16 = vrot.slane %v3574_v27, 2  ;;  %v3907_v27 = vld [vmem:[#allocation5 + $0x188] sm:$0xff] }
0x2296   :  { %4725 = vtanh.f32 %v3575_v16  ;;  %v3751_v16 = vld [vmem:[%s6639_s4 + $0x40] sm:$0x1] }
0x2297   :  { %4369 = vmatpush1.msk.msra.mxu0 %vm409_vm0, %v3751_v16 }
0x22a0   :  { %v4726_v37 = vpop.eup %4725 }
0x22a1   :  { %v3579_v55 = vmul.f32 %v4726_v37, %v6338_v53  ;;  %v4487_v37 = vpack.c.bf16 %v3907_v27, %v3906_v26  ;;  %v3884_v26 = vld [vmem:[#allocation5 + $0xd0] sm:$0xff]  ;;  %v3885_v27 = vld [vmem:[#allocation5 + $0xd8] sm:$0xff] }
0x22a3   :  { %3581 = vrot.lane.b32.xlu1 %v3579_v55, %s4847_s12  ;;  %4488 = vmatprep.subr.bf16.mxu0 %v4487_v37  ;;  %v4759_v37 = vld [vmem:[%s6635_s0 + $0x6] sm:$0x3] }
0x22a7   :  { %2280 = vperm.xlu1 %4579, %v2135_v1  }
0x22ab   :  { %2468 = vperm.xlu1 %4579, %v2137_v57   ;;  %v3587_v57 = vrot.slane %v6338_v53, 2  ;;  %v4461_v53 = vpack.c.bf16 %v3861_v24, %v3860_v9 }
0x22af   :  { %2562 = vperm.xlu1 %4579, %v2138_v29   ;;  %v3858_v29 = vld [vmem:[#allocation5] sm:$0xff] }
0x22b3   :  { %2750 = vperm.xlu1 %4579, %v2140_v43   ;;  %v3859_v43 = vld [vmem:[#allocation5 + $0x8] sm:$0xff] }
0x22b7   :  { %2938 = vperm.xlu1 %4579, %v2142_v52  }
0x22bb   :  { %3126 = vperm.xlu1 %4579, %v2144_v39   ;;  %v3876_v39 = vld [vmem:[#allocation5 + $0x90] sm:$0xff] }
0x22bf   :  { %3314 = vperm.xlu1 %4579, %v2146_v47   ;;  %v3877_v47 = vld [vmem:[#allocation5 + $0x98] sm:$0xff] }
0x22c3   :  { %3502 = vperm.xlu1 %4579, %v2148_v18  }
0x22c7   :  { %3690 = vperm.xlu1 %4579, %v2150_v60   ;;  %v4457_v60 = vpack.c.bf16 %v3859_v43, %v3858_v29 }
0x2315   :  { %v3582_v33 = vpop.permute.xlu1 %3581 }
0x2316   :  { %v6370_v51 = vadd.f32 %v3582_v33, %v3578_v20  ;;  %v4459_v33 = vpack.c.bf16 %v3877_v47, %v3876_v39  ;;  %v4760_v47 = vld [vmem:[%s6635_s0 + $0x2] sm:$0x3] }
0x2318   :  { %4727 = vtanh.f32 %v6370_v51 }
0x2322   :  { %v4728_v34 = vpop.eup %4727 }
0x2323   :  { %3590 = vrot.lane.b32.xlu0 %v4728_v34, %s4847_s12  ;;  %v3879_v34 = vld [vmem:[#allocation5 + $0xa8] sm:$0xff] }
0x2326   :  { %v2281_v55 = vpop.permute.xlu1 %2280 }
0x2327   :  { %2374 = vperm.xlu0 %4580, %v2136_v54   ;;  %v2283_v16 = vmul.f32 %v2281_v55, %v6041_v23  ;;  %v4475_v23 = vpack.c.bf16 %v3885_v27, %v3884_v26 }
0x232a   :  { %v6428_v1 = vpop.permute.xlu1 %2468 }
0x232b   :  { %2656 = vperm.xlu0 %4580, %v2139_v42   ;;  %v4463_v42 = vpack.c.bf16 %v3879_v34, %v3878_v46  ;;  %v3697_v40 = vmul.f32 %v4758_v59, %v6428_v1  ;;  %v2471_v9 = vmul.f32 %v6428_v1, %v6123_v12  ;;  %v4762_v1 = vld [vmem:[%s6635_s0 + $0x8] sm:$0x3]  ;;  %v4763_v59 = vld [vmem:[%s6635_s0 + $0xe] sm:$0x3] }
0x232d   :  { %v3715_v24 = vsel %vm3711_vm4, %v3697_v40, 0.0 }
0x232e   :  { %v2563_v54 = vpop.permute.xlu1 %2562 }
0x232f   :  { %2844 = vperm.xlu0 %4580, %v2141_v35   ;;  %v3862_v35 = vld [vmem:[#allocation5 + $0x20] sm:$0xff] }
0x2332   :  { %v6437_v3 = vpop.permute.xlu1 %2750 }
0x2333   :  { %3032 = vperm.xlu0 %4580, %v2143_v41   ;;  %v3863_v41 = vld [vmem:[#allocation5 + $0x28] sm:$0xff] }
0x2336   :  { %v2939_v29 = vpop.permute.xlu1 %2938 }
0x2337   :  { %3220 = vperm.xlu0 %4580, %v2145_v38   ;;  %v3880_v38 = vld [vmem:[#allocation5 + $0xb0] sm:$0xff]  ;;  %v3702_v40 = vmul.f32 %v4763_v59, %v2939_v29 }
0x233a   :  { %v3127_v28 = vpop.permute.xlu1 %3126 }
0x233b   :  { %3408 = vperm.xlu0 %4580, %v2147_v8   ;;  %v3881_v8 = vld [vmem:[#allocation5 + $0xb8] sm:$0xff] }
0x233c   :  { %v4467_v11 = vpack.c.bf16 %v3881_v8, %v3880_v38  ;;  %v4761_v8 = vld [vmem:[%s6635_s0 + $0xa] sm:$0x3] }
0x233f   :  { %3596 = vperm.xlu0 %4580, %v2149_v13   ;;  %v4465_v13 = vpack.c.bf16 %v3863_v41, %v3862_v35 }
0x2395   :  { %v3591_v52 = vpop.permute.xlu0 %3590 }
0x2396   :  { %v6431_v18 = vmul.f32 %v3591_v52, %v3587_v57  ;;  %v3698_v57 = vmul.f32 %v4759_v37, %v2563_v54 }
0x2398   :  { %v3603_v20 = vpack.c.bf16 %v6431_v18, %v6431_v18  ;;  %v3717_v35 = vsel %vm3711_vm4, %v3698_v57, 0.0 }
0x239a   :  { %4366 = vmatmul.mubr.msk.bf16.vlgmr.msra.gmra.mrb[60].mxu1 %vm2193_vm3, %v3603_v20  ;;  %v4473_v20 = vpack.c.bf16 %v3867_v15, %v3866_v61  ;;  %v3889_v61 = vld [vmem:[#allocation5 + $0xf8] sm:$0xff]  ;;  %v2753_v15 = vmul.f32 %v6437_v3, %v6180_v25 }
0x239b   :  { %4458 = vmatpush3.bf16.msra.mxu1 %v4457_v60  ;;  %4010 = vmatprep.mubr.f32.mxu1 %v5968_v58  ;;  %v4757_v58 = vld [vmem:[%s6635_s0] sm:$0x3] }
0x239c   :  { %4460 = vmatprep.subr.bf16.mxu1 %v4459_v33  ;;  %v3695_v4 = vmul.f32 %v4757_v58, %v2281_v55  ;;  %v3868_v55 = vld [vmem:[#allocation5 + $0x50] sm:$0xff]  ;;  %v3869_v33 = vld [vmem:[#allocation5 + $0x58] sm:$0xff] }
0x239d   :  { %v4477_v5 = vpack.c.bf16 %v3869_v33, %v3868_v55  ;;  %v3725_v55 = vsel %vm3711_vm4, %v3702_v40, 0.0  ;;  %v3315_v33 = vpop.permute.xlu1 %3314 }
0x239e   :  { %v3712_v52 = vsel %vm3711_vm4, %v3695_v4, 0.0 }
0x239f   :  { %4462 = vmatpush3.bf16.msra.mxu1 %v4461_v53  ;;  %v3886_v53 = vld [vmem:[#allocation5 + $0xe0] sm:$0xff] }
0x23a0   :  { %4464 = vmatprep.subr.bf16.mxu1 %v4463_v42  ;;  %v2565_v42 = vmul.f32 %v2563_v54, %v6142_v45 }
0x23a3   :  { %4466 = vmatpush3.bf16.msra.mxu1 %v4465_v13  ;;  %v3700_v13 = vmul.f32 %v4761_v8, %v6437_v3  ;;  %v3872_v3 = vld [vmem:[#allocation5 + $0x70] sm:$0xff] }
0x23a4   :  { %4468 = vmatprep.subr.bf16.mxu1 %v4467_v11 }
0x23a6   :  { %v2375_v43 = vpop.permute.xlu0 %2374 }
0x23a7   :  { %4470 = vmatpush3.bf16.msra.mxu1 %v4469_v62  ;;  %v2377_v39 = vmul.f32 %v2375_v43, %v6102_v44  ;;  %v3696_v60 = vmul.f32 %v4760_v47, %v2375_v43  ;;  %v3887_v44 = vld [vmem:[#allocation5 + $0xe8] sm:$0xff]  ;;  %v4481_v43 = vpack.c.bf16 %v3871_v63, %v3870_v32 }
0x23a8   :  { %4472 = vmatprep.subr.bf16.mxu1 %v4471_v56  ;;  %v4479_v54 = vpack.c.bf16 %v3887_v44, %v3886_v53  ;;  %v3888_v56 = vld [vmem:[#allocation5 + $0xf0] sm:$0xff] }
0x23a9   :  { %v2378_v46 = vadd.f32 %v2377_v39, %v2283_v16  ;;  %v3713_v34 = vsel %vm3711_vm4, %v3696_v60, 0.0  ;;  %v3721_v16 = vsel %vm3711_vm4, %v3700_v13, 0.0  ;;  %v4483_v25 = vpack.c.bf16 %v3889_v61, %v3888_v56  ;;  %v3873_v39 = vld [vmem:[#allocation5 + $0x78] sm:$0xff] }
0x23aa   :  { %v3714_v41 = vadd.f32 %v3713_v34, %v3712_v52  ;;  %v2657_v38 = vpop.permute.xlu0 %2656  ;;  %v4769_v61 = vld [vmem:[%s6635_s0 + $0x1a] sm:$0x3] }
0x23ab   :  { %v2472_v12 = vadd.f32 %v2471_v9, %v2378_v46  ;;  %4474 = vmatpush3.bf16.msra.mxu1 %v4473_v20  ;;  %v3699_v11 = vmul.f32 %v4762_v1, %v2657_v38  ;;  %v2659_v4 = vmul.f32 %v2657_v38, %v6161_v19  ;;  %v4764_v19 = vld [vmem:[%s6635_s0 + $0xc] sm:$0x3]  ;;  %v4765_v46 = vld [vmem:[%s6635_s0 + $0x12] sm:$0x3]  ;;  %v3129_v38 = vmul.f32 %v3127_v28, %v6256_v22  ;;  %v4767_v1 = vld [vmem:[%s6635_s0 + $0x16] sm:$0x3] }
0x23ac   :  { %v3716_v45 = vadd.f32 %v3715_v24, %v3714_v41  ;;  %4476 = vmatprep.subr.bf16.mxu1 %v4475_v23  ;;  %v2941_v23 = vmul.f32 %v2939_v29, %v6218_v14  ;;  %v3704_v34 = vmul.f32 %v4765_v46, %v3127_v28 }
0x23ad   :  { %v2566_v58 = vadd.f32 %v2565_v42, %v2472_v12  ;;  %v3719_v62 = vsel %vm3711_vm4, %v3699_v11, 0.0  ;;  %v4485_v42 = vpack.c.bf16 %v3873_v39, %v3872_v3  ;;  %v3706_v11 = vmul.f32 %v4767_v1, %v3315_v33 }
0x23ae   :  { %v3718_v26 = vadd.f32 %v3717_v35, %v3716_v45  ;;  %v2845_v27 = vpop.permute.xlu0 %2844  ;;  %v3729_v12 = vsel %vm3711_vm4, %v3704_v34, 0.0  ;;  %v4768_v45 = vld [vmem:[%s6635_s0 + $0x14] sm:$0x3] }
0x23af   :  { %v2660_v37 = vadd.f32 %v2659_v4, %v2566_v58  ;;  %4478 = vmatpush3.bf16.msra.mxu1 %v4477_v5  ;;  %v3701_v57 = vmul.f32 %v4764_v19, %v2845_v27  ;;  %v2847_v60 = vmul.f32 %v2845_v27, %v6199_v50  ;;  %v4766_v50 = vld [vmem:[%s6635_s0 + $0x10] sm:$0x3]  ;;  %v3317_v58 = vmul.f32 %v3315_v33, %v6294_v2 }
0x23b0   :  { %v3720_v52 = vadd.f32 %v3719_v62, %v3718_v26  ;;  %4480 = vmatprep.subr.bf16.mxu1 %v4479_v54  ;;  %v3503_v54 = vpop.permute.xlu1 %3502  ;;  %v3733_v56 = vsel %vm3711_vm4, %v3706_v11, 0.0  ;;  %v3896_v11 = vld [vmem:[#allocation5 + $0x130] sm:$0xff] }
0x23b1   :  { %v2754_v47 = vadd.f32 %v2753_v15, %v2660_v37  ;;  %v3723_v20 = vsel %vm3711_vm4, %v3701_v57, 0.0  ;;  %v3708_v15 = vmul.f32 %v4769_v61, %v3503_v54  ;;  %v3918_v61 = vld [vmem:[#allocation5 + $0x1e0] sm:$0xff] }
0x23b2   :  { %v3722_v9 = vadd.f32 %v3721_v16, %v3720_v52  ;;  %v3033_v24 = vpop.permute.xlu0 %3032 }
0x23b3   :  { %v2848_v53 = vadd.f32 %v2847_v60, %v2754_v47  ;;  %4482 = vmatpush3.bf16.msra.mxu1 %v4481_v43  ;;  %v3703_v44 = vmul.f32 %v4766_v50, %v3033_v24  ;;  %v3035_v29 = vmul.f32 %v3033_v24, %v6237_v17  ;;  %v3737_v19 = vsel %vm3711_vm4, %v3708_v15, 0.0  ;;  %v4771_v43 = vld [vmem:[%s6635_s0 + $0x1c] sm:$0x3]  ;;  %v3919_v15 = vld [vmem:[#allocation5 + $0x1e8] sm:$0xff] }
0x23b4   :  { %v3724_v35 = vadd.f32 %v3723_v20, %v3722_v9  ;;  %4484 = vmatprep.subr.bf16.mxu1 %v4483_v25  ;;  %v6512_v26 = vpop.permute.xlu1 %3690  ;;  %v4772_v25 = vld [vmem:[%s6635_s0 + $0x1e] sm:$0x3]  ;;  %v3890_v20 = vld [vmem:[#allocation5 + $0x100] sm:$0xff]  ;;  %v3908_v9 = vld [vmem:[#allocation5 + $0x190] sm:$0xff] }
0x23b5   :  { %v2942_v14 = vadd.f32 %v2941_v23, %v2848_v53  ;;  %v3727_v41 = vsel %vm3711_vm4, %v3703_v44, 0.0  ;;  %v3891_v23 = vld [vmem:[#allocation5 + $0x108] sm:$0xff]  ;;  %v3909_v24 = vld [vmem:[#allocation5 + $0x198] sm:$0xff]  ;;  %v3892_v44 = vld [vmem:[#allocation5 + $0x110] sm:$0xff] }
0x23b6   :  { %v3726_v8 = vadd.f32 %v3725_v55, %v3724_v35  ;;  %v3221_v13 = vpop.permute.xlu0 %3220  ;;  %v4489_v34 = vpack.c.bf16 %v3891_v23, %v3890_v20  ;;  %v4491_v50 = vpack.c.bf16 %v3909_v24, %v3908_v9  ;;  %v3910_v35 = vld [vmem:[#allocation5 + $0x1a0] sm:$0xff] }
0x23b7   :  { %v3036_v5 = vadd.f32 %v3035_v29, %v2942_v14  ;;  %4486 = vmatpush3.bf16.msra.mxu1 %v4485_v42  ;;  %v3705_v17 = vmul.f32 %v4768_v45, %v3221_v13  ;;  %v3223_v22 = vmul.f32 %v3221_v13, %v6275_v7  ;;  %v4770_v7 = vld [vmem:[%s6635_s0 + $0x18] sm:$0x3]  ;;  %v3911_v14 = vld [vmem:[#allocation5 + $0x1a8] sm:$0xff]  ;;  %v3914_v45 = vld [vmem:[#allocation5 + $0x1c0] sm:$0xff] }
0x23b8   :  { %v3728_v32 = vadd.f32 %v3727_v41, %v3726_v8  ;;  %v3893_v42 = vld [vmem:[#allocation5 + $0x118] sm:$0xff]  ;;  %v4495_v29 = vpack.c.bf16 %v3911_v14, %v3910_v35  ;;  %v3894_v41 = vld [vmem:[#allocation5 + $0x120] sm:$0xff]  ;;  %v3912_v8 = vld [vmem:[#allocation5 + $0x1b0] sm:$0xff] }
0x23b9   :  { %v3130_v63 = vadd.f32 %v3129_v38, %v3036_v5  ;;  %v3731_v28 = vsel %vm3711_vm4, %v3705_v17, 0.0  ;;  %v3895_v38 = vld [vmem:[#allocation5 + $0x128] sm:$0xff]  ;;  %v3913_v13 = vld [vmem:[#allocation5 + $0x1b8] sm:$0xff] }
0x23ba   :  { %v3730_v4 = vadd.f32 %v3729_v12, %v3728_v32  ;;  %4011 = vmatmul.mubr.f32.vlgmr.msra.gmra.mrb[64].mxu1 %v1667_v6  ;;  %v3409_v62 = vpop.permute.xlu0 %3408  ;;  %v3505_v6 = vmul.f32 %v3503_v54, %v6330_v30  ;;  %v4497_v12 = vpack.c.bf16 %v3895_v38, %v3894_v41  ;;  %v4499_v1 = vpack.c.bf16 %v3913_v13, %v3912_v8  ;;  %v3897_v5 = vld [vmem:[#allocation5 + $0x138] sm:$0xff]  ;;  %v3915_v17 = vld [vmem:[#allocation5 + $0x1c8] sm:$0xff] }
0x23bb   :  { %v3224_v59 = vadd.f32 %v3223_v22, %v3130_v63  ;;  %v3707_v40 = vmul.f32 %v4770_v7, %v3409_v62  ;;  %v3411_v0 = vmul.f32 %v3409_v62, %v6312_v49  ;;  %v3710_v49 = vmul.f32 %v4772_v25, %v6512_v26  ;;  %v3899_v63 = vld [vmem:[#allocation5 + $0x148] sm:$0xff]  ;;  %v3916_v22 = vld [vmem:[#allocation5 + $0x1d0] sm:$0xff] }
0x23bc   :  { %v3732_v2 = vadd.f32 %v3731_v28, %v3730_v4  ;;  %v4501_v54 = vpack.c.bf16 %v3897_v5, %v3896_v11  ;;  %v4503_v32 = vpack.c.bf16 %v3915_v17, %v3914_v45  ;;  %v3917_v28 = vld [vmem:[#allocation5 + $0x1d8] sm:$0xff]  ;;  %v3900_v62 = vld [vmem:[#allocation5 + $0x150] sm:$0xff]  ;;  %v4511_v7 = vpack.c.bf16 %v3919_v15, %v3918_v61  ;;  %v3922_v17 = vld [vmem:[#allocation5 + $0x200] sm:$0xff] }
0x23bd   :  { %v3318_v27 = vadd.f32 %v3317_v58, %v3224_v59  ;;  %v3735_v48 = vsel %vm3711_vm4, %v3707_v40, 0.0  ;;  %v3741_v33 = vsel %vm3711_vm4, %v3710_v49, 0.0  ;;  %v4507_v4 = vpack.c.bf16 %v3917_v28, %v3916_v22  ;;  %v3902_v40 = vld [vmem:[#allocation5 + $0x160] sm:$0xff]  ;;  %v3925_v22 = vld [vmem:[#allocation5 + $0x218] sm:$0xff] }
0x23be   :  { %v3734_v16 = vadd.f32 %v3733_v56, %v3732_v2  ;;  %v3597_v37 = vpop.permute.xlu0 %3596  ;;  %v3901_v56 = vld [vmem:[#allocation5 + $0x158] sm:$0xff]  ;;  %v3903_v2 = vld [vmem:[#allocation5 + $0x168] sm:$0xff] }
0x23bf   :  { %v3412_v57 = vadd.f32 %v3411_v0, %v3318_v27  ;;  %v3709_v52 = vmul.f32 %v4771_v43, %v3597_v37  ;;  %v3599_v30 = vmul.f32 %v3597_v37, %v6431_v18  ;;  %v4493_v18 = vpack.c.bf16 %v3893_v42, %v3892_v44  ;;  %v3920_v27 = vld [vmem:[#allocation5 + $0x1f0] sm:$0xff]  ;;  %v3921_v0 = vld [vmem:[#allocation5 + $0x1f8] sm:$0xff] }
0x23c0   :  { %v3736_v3 = vadd.f32 %v3735_v48, %v3734_v16  ;;  %v4509_v59 = vpack.c.bf16 %v3901_v56, %v3900_v62  ;;  %v4513_v48 = vpack.c.bf16 %v3903_v2, %v3902_v40  ;;  %v3904_v16 = vld [vmem:[#allocation5 + $0x170] sm:$0xff]  ;;  %v3905_v37 = vld [vmem:[#allocation5 + $0x178] sm:$0xff]  ;;  %v3930_v2 = vld [vmem:[#allocation5 + $0x240] sm:$0xff] }
0x23c1   :  { %v3506_v39 = vadd.f32 %v3505_v6, %v3412_v57  ;;  %v3739_v47 = vsel %vm3711_vm4, %v3709_v52, 0.0  ;;  %v4515_v6 = vpack.c.bf16 %v3921_v0, %v3920_v27  ;;  %v3928_v56 = vld [vmem:[#allocation5 + $0x230] sm:$0xff]  ;;  %v3929_v61 = vld [vmem:[#allocation5 + $0x238] sm:$0xff]  ;;  %v3931_v27 = vld [vmem:[#allocation5 + $0x248] sm:$0xff] }
0x23c2   :  { %v3738_v60 = vadd.f32 %v3737_v19, %v3736_v3  ;;  %v4517_v19 = vpack.c.bf16 %v3905_v37, %v3904_v16  ;;  %v4532_v0 = vpack.c.bf16 %v3931_v27, %v3930_v2  ;;  %v3934_v37 = vld [vmem:[#allocation5 + $0x260] sm:$0xff] }
0x23c3   :  { %v6527_v55 = vadd.f32 %v3599_v30, %v3506_v39  ;;  %v6849_v39 = vld [vmem:[#allocation47_spill] sm:$0xff] }
0x23c4   :  { %v3740_v46 = vadd.f32 %v3739_v47, %v3738_v60  ;;  %v3601_v30 = vrot.slane %v6849_v39, 4 }
0x23c6   :  { %v3742_v53 = vadd.f32 %v3741_v33, %v3740_v46 }
0x23c8   :  { %4370 = vmatmul.mubr.msk.f32.vlgmr.msra.gmra.mrb[64].mxu0 %vm402_vm1, %v3742_v53 }
0x23c9   :  { %4490 = vmatpush3.bf16.msra.mxu0 %v4489_v34  ;;  %4080 = vmatprep.mubr.f32.mxu0 %v6031_v36  ;;  %v3898_v36 = vld [vmem:[#allocation5 + $0x140] sm:$0xff] }
0x23ca   :  { %4492 = vmatprep.subr.bf16.mxu0 %v4491_v50  ;;  %v4505_v58 = vpack.c.bf16 %v3899_v63, %v3898_v36  ;;  %v4854_v36 = vmov 0.0|0.0  }
0x23cb   :  { %4519 = vmatprep.subr.bf16.mxu1 %v4854_v36 }
0x23cd   :  { %4494 = vmatpush3.bf16.msra.mxu0 %v4493_v18 }
0x23ce   :  { %4496 = vmatprep.subr.bf16.mxu0 %v4495_v29 }
0x23d1   :  { %4498 = vmatpush3.bf16.msra.mxu0 %v4497_v12 }
0x23d2   :  { %4500 = vmatprep.subr.bf16.mxu0 %v4499_v1 }
0x23d5   :  { %4502 = vmatpush3.bf16.msra.mxu0 %v4501_v54  ;;  %v3923_v54 = vld [vmem:[#allocation5 + $0x208] sm:$0xff] }
0x23d6   :  { %4504 = vmatprep.subr.bf16.mxu0 %v4503_v32  ;;  %v3924_v32 = vld [vmem:[#allocation5 + $0x210] sm:$0xff]  ;;  %v4520_v63 = vpack.c.bf16 %v3923_v54, %v3922_v17 }
0x23d7   :  { %v4523_v28 = vpack.c.bf16 %v3925_v22, %v3924_v32 }
0x23d8   :  { %4521 = vmatpush1.bf16.msra.mxu1 %v4520_v63  ;;  %v4171_v63 = vld [vmem:[%s6641_s6 + $0x70] sm:$0xff] }
0x23d9   :  { %4506 = vmatpush3.bf16.msra.mxu0 %v4505_v58  ;;  %4522 = vmatprep.subr.bf16.mxu1 %v4854_v36  ;;  %v3926_v58 = vld [vmem:[#allocation5 + $0x220] sm:$0xff] }
0x23da   :  { %4508 = vmatprep.subr.bf16.mxu0 %v4507_v4  ;;  %v3927_v4 = vld [vmem:[#allocation5 + $0x228] sm:$0xff] }
0x23db   :  { %v4526_v62 = vpack.c.bf16 %v3927_v4, %v3926_v58 }
0x23dc   :  { %4524 = vmatpush1.bf16.msra.mxu1 %v4523_v28 }
0x23dd   :  { %4510 = vmatpush3.bf16.msra.mxu0 %v4509_v59  ;;  %4525 = vmatprep.subr.bf16.mxu1 %v4854_v36 }
0x23de   :  { %4512 = vmatprep.subr.bf16.mxu0 %v4511_v7  ;;  %v4529_v7 = vpack.c.bf16 %v3929_v61, %v3928_v56 }
0x23e0   :  { %4527 = vmatpush1.bf16.msra.mxu1 %v4526_v62 }
0x23e1   :  { %4514 = vmatpush3.bf16.msra.mxu0 %v4513_v48  ;;  %4528 = vmatprep.subr.bf16.mxu1 %v4854_v36  ;;  %v3932_v48 = vld [vmem:[#allocation5 + $0x250] sm:$0xff] }
0x23e2   :  { %4516 = vmatprep.subr.bf16.mxu0 %v4515_v6  ;;  %v3933_v6 = vld [vmem:[#allocation5 + $0x258] sm:$0xff] }
0x23e3   :  { %v4535_v16 = vpack.c.bf16 %v3933_v6, %v3932_v48 }
0x23e4   :  { %4530 = vmatpush1.bf16.msra.mxu1 %v4529_v7 }
0x23e5   :  { %4518 = vmatpush3.bf16.msra.mxu0 %v4517_v19  ;;  %4531 = vmatprep.subr.bf16.mxu1 %v4854_v36  ;;  %v3935_v19 = vld [vmem:[#allocation5 + $0x268] sm:$0xff] }
0x23e6   :  { %4543 = vmatprep.subr.bf16.mxu0 %v4854_v36 }
0x23e8   :  { %4081 = vmatmul.mubr.f32.vlgmr.msra.gmra.mrb[66].mxu0 %v6036_v31  ;;  %4533 = vmatpush1.bf16.msra.mxu1 %v4532_v0 }
0x23e9   :  { %4534 = vmatprep.subr.bf16.mxu1 %v4854_v36 }
0x23ec   :  { %4536 = vmatpush1.bf16.msra.mxu1 %v4535_v16 }
0x23ed   :  { %4537 = vmatprep.subr.bf16.mxu1 %v4854_v36 }
0x246d   :  { %v3641_v57 = vpop.f32.mrb[60].mxu1 }
0x246e   :  { %v3643_v43 = vpop.f32.mrb[61].mxu1 }
0x246f   :  { %v3650_v52 = vcombine.low %v3641_v57, %v3643_v43  ;;  %v3645_v25 = vpop.f32.mrb[62].mxu1  ;;  %v4538_v57 = vpack.c.bf16 %v3935_v19, %v3934_v37 }
0x2470   :  { %v3646_v49 = vpop.f32.mrb[63].mxu1 }
0x2471   :  { %v3657_v3 = vrot.slane %v3650_v52, %v4930_v21  ;;  %4539 = vmatpush1.bf16.msra.mxu1 %v4538_v57  ;;  %v3936_v49 = vld [vmem:[#allocation5 + $0x270] sm:$0xff] }
0x2472   :  { %4540 = vmatprep.subr.bf16.mxu1 %v4854_v36 }
0x2473   :  { %v3659_v47 = vadd.f32 %v3657_v3, %v3601_v30  ;;  %v3937_v3 = vld [vmem:[#allocation5 + $0x278] sm:$0xff]  ;;  %v4855_v30 = vmov 1.0  }
0x2474   :  { %v4541_v39 = vpack.c.bf16 %v3937_v3, %v3936_v49  ;;  %4374 = vmatprep.mubr.msk.f32.mxu1 %vm3939_vm5, %v4855_v30  ;;  %4376 = vmatprep.mubr.msk.f32.mxu0 %vm3939_vm5, %v4855_v30 }
0x2475   :  { %3667 = vrot.lane.b32.xlu0 %v3659_v47, %s4847_s12  ;;  %v4367_v21 = vmul.f32 -1.442695, %v3659_v47  ;;  %v4157_v47 = vld [vmem:[%s6641_s6] sm:$0xff] }
0x2476   :  { %4542 = vmatpush1.bf16.msra.mxu1 %v4541_v39 }
0x2477   :  { %4118 = vmatprep.subr.mxu1 %v4853_v10 }
0x248d   :  { %v4409_v60 = vpop.f32.mrb[64].mxu1 }
0x248e   :  { %v4410_v20 = vpop.f32.mrb[65].mxu1 }
0x248f   :  { %v4411_v23 = vadd.f32 %v4410_v20, %v4409_v60  ;;  %v4158_v60 = vld [vmem:[%s6641_s6 + $0x8] sm:$0xff]  ;;  %v3938_v20 = vld [vmem:[#allocation5 + $0x280] sm:$0x1] }
0x2490   :  { %4373 = vmatpush1.msk.msra.mxu1 %vm409_vm0, %v3938_v20 }
0x249b   :  { %v3828_v33 = vpop.f32.mrb[64].mxu0 }
0x249c   :  { %v3830_v9 = vpop.f32.mrb[65].mxu0  ;;  %v4371_v41 = vmul.f32 -1.442695, %v3828_v33  ;;  %v4160_v33 = vld [vmem:[%s6641_s6 + $0x18] sm:$0xff] }
0x249d   :  { %4729 = vtanh.f32 %v3830_v9  ;;  %v4372_v38 = vmul.f32 -1.442695, %v3830_v9 }
0x249e   :  { %4731 = vpow2.f32 %v4367_v21  ;;  %v4163_v21 = vld [vmem:[%s6641_s6 + $0x30] sm:$0xff] }
0x24a7   :  { %v4730_v24 = vpop.eup %4729 }
0x24a8   :  { %3847 = vrot.lane.b32.xlu0 %v4730_v24, %s4847_s12  ;;  %v4732_v50 = vpop.eup %4731  ;;  %v4161_v24 = vld [vmem:[%s6641_s6 + $0x20] sm:$0xff] }
0x24a9   :  { %v3663_v44 = vadd.f32 1.0, %v4732_v50  ;;  %v4164_v50 = vld [vmem:[%s6641_s6 + $0x38] sm:$0xff] }
0x24ab   :  { %4733 = vrcp.f32 %v3663_v44  ;;  %v4553_v44 = vpack.c.bf16 %v4164_v50, %v4163_v21 }
0x24b5   :  { %v6539_v14 = vpop.eup %4733 }
0x24b6   :  { %v3672_v43 = vmul.f32 %v6539_v14, %v6370_v51  ;;  %v4159_v51 = vld [vmem:[%s6641_s6 + $0x10] sm:$0xff] }
0x24b7   :  { %v4547_v9 = vpack.c.bf16 %v4160_v33, %v4159_v51 }
0x24bb   :  { %v4444_v31 = vpop.f32.mrb[66].mxu0 }
0x24bc   :  { %v4445_v46 = vpop.f32.mrb[67].mxu0 }
0x24bd   :  { %v4446_v34 = vadd.f32 %v4445_v46, %v4444_v31  ;;  %v4162_v31 = vld [vmem:[%s6641_s6 + $0x28] sm:$0xff] }
0x24bf   :  { %v6537_v53 = vadd.f32 %v4446_v34, %v4411_v23  ;;  %v4544_v23 = vpack.c.bf16 %v4158_v60, %v4157_v47  ;;  %v4550_v34 = vpack.c.bf16 %v4162_v31, %v4161_v24 }
0x24c1   :  { %4545 = vmatpush1.bf16.msra.mxu0 %v4544_v23 }
0x24c2   :  { %4546 = vmatprep.subr.bf16.mxu0 %v4854_v36 }
0x24c5   :  { %4548 = vmatpush1.bf16.msra.mxu0 %v4547_v9 }
0x24c6   :  { %4549 = vmatprep.subr.bf16.mxu0 %v4854_v36 }
0x24c9   :  { %4551 = vmatpush1.bf16.msra.mxu0 %v4550_v34 }
0x24ca   :  { %4552 = vmatprep.subr.bf16.mxu0 %v4854_v36 }
0x24cd   :  { %4554 = vmatpush1.bf16.msra.mxu0 %v4553_v44 }
0x24ce   :  { %4555 = vmatprep.subr.bf16.mxu0 %v4854_v36 }
0x24e7   :  { %v3668_v42 = vpop.permute.xlu0 %3667 }
0x24e8   :  { %v3669_v35 = vrot.slane %v3668_v42, 2  ;;  %v4165_v42 = vld [vmem:[%s6641_s6 + $0x40] sm:$0xff] }
0x24ea   :  { %4735 = vtanh.f32 %v3669_v35  ;;  %v4166_v35 = vld [vmem:[%s6641_s6 + $0x48] sm:$0xff] }
0x24eb   :  { %4737 = vpow2.f32 %v4371_v41  ;;  %v4168_v41 = vld [vmem:[%s6641_s6 + $0x58] sm:$0xff] }
0x24ec   :  { %4739 = vpow2.f32 %v4372_v38 }
0x24f4   :  { %v4736_v18 = vpop.eup %4735 }
0x24f5   :  { %v3673_v29 = vmul.f32 %v4736_v18, %v6539_v14  ;;  %v4738_v8 = vpop.eup %4737  ;;  %v4556_v18 = vpack.c.bf16 %v4166_v35, %v4165_v42 }
0x24f6   :  { %v3839_v13 = vadd.f32 1.0, %v4738_v8  ;;  %v4740_v12 = vpop.eup %4739  ;;  %v4169_v8 = vld [vmem:[%s6641_s6 + $0x60] sm:$0xff] }
0x24f7   :  { %3675 = vrot.lane.b32.xlu1 %v3673_v29, %s4847_s12  ;;  %v3840_v1 = vadd.f32 1.0, %v4740_v12  ;;  %v4167_v29 = vld [vmem:[%s6641_s6 + $0x50] sm:$0xff]  ;;  %4557 = vmatpush1.bf16.msra.mxu0 %v4556_v18 }
0x24f8   :  { %4741 = vrcp.f32 %v3839_v13  ;;  %v4559_v38 = vpack.c.bf16 %v4168_v41, %v4167_v29  ;;  %4558 = vmatprep.subr.bf16.mxu0 %v4854_v36  ;;  %v4170_v13 = vld [vmem:[%s6641_s6 + $0x68] sm:$0xff] }
0x24f9   :  { %4743 = vrcp.f32 %v3840_v1  ;;  %v4562_v12 = vpack.c.bf16 %v4170_v13, %v4169_v8  ;;  %v3681_v1 = vrot.slane %v6539_v14, 2 }
0x24fb   :  { %4560 = vmatpush1.bf16.msra.mxu0 %v4559_v38 }
0x24fc   :  { %4561 = vmatprep.subr.bf16.mxu0 %v4854_v36 }
0x24ff   :  { %4563 = vmatpush1.bf16.msra.mxu0 %v4562_v12 }
0x2500   :  { %4564 = vmatprep.subr.bf16.mxu0 %v4854_v36  ;;  %v4172_v36 = vld [vmem:[%s6641_s6 + $0x78] sm:$0xff] }
0x2501   :  { %v4565_v22 = vpack.c.bf16 %v4172_v36, %v4171_v63 }
0x2502   :  { %v4742_v11 = vpop.eup %4741 }
0x2503   :  { %v4744_v15 = vpop.eup %4743  ;;  %4566 = vmatpush1.bf16.msra.mxu0 %v4565_v22 }
0x2504   :  { %4209 = vmatprep.subr.mxu0 %v4853_v10 }
0x251a   :  { %v3848_v5 = vpop.permute.xlu0 %3847 }
0x251b   :  { %v3850_v45 = vmul.f32 %v4742_v11, %v3848_v5 }
0x251d   :  { %4745 = vtanh.f32 %v3850_v45 }
0x2527   :  { %v4746_v59 = vpop.eup %4745 }
0x2528   :  { %v3852_v40 = vmul.f32 %v4746_v59, %v4744_v15 }
0x252a   :  { %3854 = vrot.lane.b32.xlu0 %v3852_v40, %s4847_s12 }
0x2569   :  { %v3676_v52 = vpop.permute.xlu1 %3675 }
0x256a   :  { %v3678_v25 = vadd.f32 %v3676_v52, %v3672_v43 }
0x256c   :  { %4747 = vtanh.f32 %v3678_v25 }
0x2576   :  { %v4748_v46 = vpop.eup %4747 }
0x2577   :  { %3684 = vrot.lane.b32.xlu1 %v4748_v46, %s4847_s12 }
0x259c   :  { %v3855_v54 = vpop.permute.xlu0 %3854 }
0x25e9   :  { %v3685_v11 = vpop.permute.xlu1 %3684 }
0x25ea   :  { %v3687_v5 = vmul.f32 %v3685_v11, %v3681_v1 }
0x25ec   :  { %v3693_v45 = vmul.f32 %v6512_v26, %v3687_v5  ;;  %v4173_v26 = vld [vmem:[%s6641_s6 + $0x80] sm:$0x1] }
0x25ed   :  { %4375 = vmatpush1.msk.msra.mxu0 %vm409_vm0, %v4173_v26 }
0x25ee   :  { %v3694_v17 = vadd.f32 %v3693_v45, %v6527_v55 }
0x25f0   :  { %v3857_v32 = vsel %vm2193_vm3, %v3694_v17, %v3855_v54 }
0x25f1   :  { %4151 = vmatmul.mubr.f32.vlgmr.msra.gmra.mrb[66].mxu1 %v3857_v32 }
0x26c4   :  { %v4152_v55 = vpop.f32.mrb[66].mxu1 }
0x26c5   :  { %v4153_v14 = vadd.f32 %v4152_v55, %v6537_v53  ;;  %v4154_v28 = vpop.f32.mrb[67].mxu1 }
0x26c7   :  { %v4156_v58 = vmax.f32 %v4153_v14, 0.0 }
0x26c9   :  { %4242 = vmatmul.mubr.f32.vlgmr.msra.gmra.mrb[68].mxu0 %v4156_v58 }
0x279c   :  { %v4243_v4 = vpop.f32.mrb[68].mxu0 }
0x279d   :  { %v4245_v62 = vpop.f32.mrb[69].mxu0  ;;  %4248 = vst.msk [vmem:[#allocation7] sm:$0x3] %vm4247_vm6, %v4243_v4 }
0x279e   :  { %4828 = shalt.err (!%p4825_p6)
}
0x279f   :  { %s4829_s8 = scalar_lea.hbm %s6642_s7, 32 }
0x27a0   :  { %p4830_p7 = scmp.ne.s32.totalorder %s6642_s7, %s4829_s8  ;;  %p4833_p8 = scmp.lt.u32.totalorder %s4829_s8, %s6642_s7 }
0x27a2   :  { %p4835_p9 = pnand %p4833_p8, %p4830_p7 }
0x27a4   :  { %4838 = shalt.err (!%p4835_p9)
}
0x27a5   :  { %4258 = dma.vmem_to_hbm [thread:$0]  %s4256_s28, 32, %s6642_s7, [#allocation4]  }
0x27a6   :  { %4843 = dma.done.wait [#allocation4], 32  }
0x27a7   :  { %4844 = vsyncadd [#allocation4], 4294967264 }
0x27a8   :  { %4262 = vsyncpa [#allocation3], 1 }
0x27a9   :  { %4263 = vsyncpa [#allocation6], 1 }
0x27aa   :  { %4264 = vsyncpa [#allocation4], 1 }

</bundles_post_ra>
